<compile_context>
chip_gen: v6e
topology: v6e:2x2x1
jax: 0.10.0
libtpu: 0.0.40
codegen_flags: <defaults>
</compile_context>

<pallas_src>
import jax
import jax.numpy as jnp
import numpy as np
from jax.experimental import pallas as pl
from jax.experimental.pallas import tpu as pltpu

_NS = 8                                   # samples processed per grid step
# conv1 channels reordered so the three row sets needed by conv2's pooled
# outputs ({0,4,8,12}, {1,5,9,13}, {2,6,10,14}) become contiguous slices;
# channels 3,7,11,15 are unused downstream and are dropped.
_PERM12 = np.array([0, 4, 8, 12, 1, 5, 9, 13, 2, 6, 10, 14])


def _elu(x):
    # F.elu, alpha = 1.0
    return jnp.where(x > 0, x, jnp.exp(jnp.minimum(x, 0.0)) - 1.0)


# ----------------------------------------------------------------------------
# The fused kernel
# ----------------------------------------------------------------------------
def _eegnet_kernel(xt_ref, w1_ref, e1_ref, t2_ref, e2_ref, w3_ref, e3_ref,
                   wfc_ref, bfc_ref, o_ref, p2_ref):
    """One grid step = _NS samples, everything kept in VMEM.

    xt_ref : (NS, 64, 120) bf16   input, time axis in lanes
    w1_ref : (12, 64)      bf16   conv1 weights (permuted / pruned channels)
    e1_ref : (3, 12, 1)    f32    conv1 bias, BN1 scale, BN1 shift
    t2_ref : (2, 120, 256) bf16   conv2 Toeplitz (kh = 0, 1); pad folded in
    e2_ref : (3, 256)      f32    conv2 bias/scale/shift per output column
    w3_ref : (4, 128, 512) bf16   conv3 folded weights (one matrix per pool2 row)
    e3_ref : (3, 512)      f32    conv3 bias/scale/shift per output column
    wfc_ref: (1, 64)       f32    fc1 weights (padded with zeros to 64 lanes)
    bfc_ref: (1, 1)        f32    fc1 bias
    o_ref  : (NS, 1)       f32    sigmoid output
    p2_ref : (4, NS, 128)  f32    scratch: pooled conv2 plane, rows = pool2 h
    """
    ns = xt_ref.shape[0]

    w1 = w1_ref[...]
    e1 = e1_ref[...]
    c1b, c1s, c1t = e1[0], e1[1], e1[2]            # (12, 1)
    t2k0 = t2_ref[0]                               # (120, 256)
    t2k1 = t2_ref[1]
    e2 = e2_ref[...]
    c2b, c2s, c2t = e2[0:1], e2[1:2], e2[2:3]      # (1, 256)

    # ---- per sample: conv1 + ELU/BN1, conv2 (Toeplitz) + ELU/BN2 + maxpool2
    for s in range(ns):                            # static unroll (ns == 8)
        xs = xt_ref[s]                             # (64, 120) bf16
        y = jnp.dot(w1, xs, preferred_element_type=jnp.float32)   # (12, 120)
        y = _elu(y + c1b) * c1s + c1t              # ELU + BatchNorm1 (eval)
        yb = y.astype(jnp.bfloat16)
        m0, m1, m2 = yb[0:4], yb[4:8], yb[8:12]    # (4, 120) row sets
        # conv2 output at the 2x2 max-pool sample points, as Toeplitz matmuls
        # over the time axis.  Rows = pool2 h index, columns = (window-col
        # offset b, conv2 channel, pooled col j) with b split in 128-lane halves.
        a0 = (jnp.dot(m0, t2k0, preferred_element_type=jnp.float32) +
              jnp.dot(m1, t2k1, preferred_element_type=jnp.float32))  # (4, 256)
        a1 = (jnp.dot(m1, t2k0, preferred_element_type=jnp.float32) +
              jnp.dot(m2, t2k1, preferred_element_type=jnp.float32))
        a0 = _elu(a0 + c2b) * c2s + c2t            # ELU + BatchNorm2 (eval)
        a1 = _elu(a1 + c2b) * c2s + c2t
        pool_h = jnp.maximum(a0, a1)               # max over window rows
        pooled = jnp.maximum(pool_h[:, :128], pool_h[:, 128:])  # ... and cols
        for i in range(4):                         # (4, 128) -> scratch rows
            p2_ref[i, s, :] = pooled[i, :]

    # ---- conv3 + ELU/BN3 + maxpool3 + fc1 + sigmoid, batched over the block
    e3 = e3_ref[...]
    c3b, c3s, c3t = e3[0:1], e3[1:2], e3[2:3]      # (1, 512)
    acc = jnp.zeros((ns, 512), jnp.float32)
    for i in range(4):                             # sum over pool2 rows
        acc = acc + jnp.dot(p2_ref[i].astype(jnp.bfloat16), w3_ref[i],
                            preferred_element_type=jnp.float32)
    z = _elu(acc + c3b) * c3s + c3t                # (ns, 512)
    # maxpool3: the 8 column groups are the 8 positions of each (2,4) window;
    # within a group, lane f = c3*14 + i'*7 + j' == torch reshape(-1,56) order.
    feat = z[:, 0:64]
    for g in range(1, 8):
        feat = jnp.maximum(feat, z[:, g * 64:(g + 1) * 64])      # (ns, 64)
    # fc1 (padded lanes carry zero weight) + sigmoid.
    logit = jnp.sum(feat * wfc_ref[...], axis=-1, keepdims=True) + bfc_ref[...]
    o_ref[...] = 1.0 / (1.0 + jnp.exp(-logit))


# ----------------------------------------------------------------------------
# Parameters: raw (PyTorch-shaped) init + packing into kernel-ready matrices
# ----------------------------------------------------------------------------
def init_params(key):
    """Deterministic synthetic parameters with the shapes of EEGNet.__init__."""
    ks = jax.random.split(key, 12)

    def normal(k, shape, scale=0.05):
        return scale * jax.random.normal(k, shape, jnp.float32)

    def bn(k, c):
        k1, k2, k3, k4 = jax.random.split(k, 4)
        return {"g": 1.0 + 0.1 * jax.random.normal(k1, (c,), jnp.float32),
                "b": 0.1 * jax.random.normal(k2, (c,), jnp.float32),
                "m": 0.1 * jax.random.normal(k3, (c,), jnp.float32),
                "v": 1.0 + 0.5 * jax.random.uniform(k4, (c,), jnp.float32)}

    return {
        "w1": normal(ks[0], (16, 1, 1, 64)), "b1": normal(ks[1], (16,)),
        "bn1": bn(ks[2], 16),
        "w2": normal(ks[3], (4, 1, 2, 32)), "b2": normal(ks[4], (4,)),
        "bn2": bn(ks[5], 4),
        "w3": normal(ks[6], (4, 4, 8, 4)), "b3": normal(ks[7], (4,)),
        "bn3": bn(ks[8], 4),
        "wfc": 0.1 * jax.random.normal(ks[9], (1, 56), jnp.float32),
        "bfc": 0.1 * jax.random.normal(ks[10], (1,), jnp.float32),
    }


def _bn_scale_shift(g, b, m, v):
    s = g / jnp.sqrt(v + 0.0)      # BatchNorm2d(C, False): eps = 0.0
    return s, b - m * s


def pack_params(p):
    """Fold pads / pooling selection / flatten order / BN into kernel matrices."""
    kp = {}

    # conv1 (its 1x64 kernel spans the full input width -> a plain matmul)
    s1, t1 = _bn_scale_shift(p["bn1"]["g"], p["bn1"]["b"],
                             p["bn1"]["m"], p["bn1"]["v"])
    w1 = p["w1"].reshape(16, 64)
    kp["w1"] = w1[_PERM12].astype(jnp.bfloat16)                      # (12, 64)
    kp["e1"] = jnp.stack([p["b1"][_PERM12], s1[_PERM12],
                          t1[_PERM12]]).reshape(3, 12, 1)

    # conv2 as a Toeplitz matmul over the time axis.  Column = b*128 +
    # (c2*31 + j): b = pool window column offset, c2 = conv2 channel,
    # j = pooled output column (lanes 124..127 of each half are zero pad).
    # ZeroPad2d((16,17,0,1)) is folded in via kw = 16 + t - (4*j + b).
    w2 = p["w2"].reshape(4, 2, 32)
    s2, t2 = _bn_scale_shift(p["bn2"]["g"], p["bn2"]["b"],
                             p["bn2"]["m"], p["bn2"]["v"])
    t_idx = np.arange(120)[:, None]
    col = np.arange(256)[None, :]
    boff = col // 128
    inner = col % 128
    c2 = np.minimum(inner // 31, 3)
    j = inner % 31
    col_ok = inner < 124
    kw = 16 + t_idx - (4 * j + boff)
    ok = col_ok & (kw >= 0) & (kw < 32)
    kwc = np.clip(kw, 0, 31)
    kp["t2"] = jnp.stack(
        [jnp.where(ok, w2[c2, kh, kwc], 0.0) for kh in range(2)]
    ).astype(jnp.bfloat16)                                           # (2,120,256)
    cv, okv = c2[0], col_ok[0]
    kp["e2"] = jnp.stack([jnp.where(okv, p["b2"][cv], 0.0),
                          jnp.where(okv, s2[cv], 0.0),
                          jnp.where(okv, t2[cv], 0.0)])              # (3, 256)

    # conv3 folded weights: rows = pool2 lane (cin*31 + j), columns = g*64 + f
    # with g = hh*4 + ww (the 8 positions of a MaxPool2d((2,4)) window) and
    # f = c3*14 + i'*7 + j' (the torch reshape(-1, 56) order, padded to 64).
    # ZeroPad2d((2,1,4,3)) is folded in (kh = i + 4 - h, kw = j - w + 2).
    w3 = p["w3"]
    s3, t3 = _bn_scale_shift(p["bn3"]["g"], p["bn3"]["b"],
                             p["bn3"]["m"], p["bn3"]["v"])
    rp = np.arange(128)[:, None]
    cin = np.minimum(rp // 31, 3)
    jj = rp % 31
    row_ok = rp < 124
    col = np.arange(512)[None, :]
    g, f = col // 64, col % 64
    hh, ww = g // 4, g % 4
    c3 = np.minimum(f // 14, 3)
    ip, jp = (f % 14) // 7, f % 7
    f_ok = f < 56
    h = 2 * ip + hh
    w = 4 * jp + ww
    kw3 = jj - w + 2
    ok3 = row_ok & f_ok & (kw3 >= 0) & (kw3 < 4)
    kw3c = np.clip(kw3, 0, 3)
    kp["w3m"] = jnp.stack(
        [jnp.where(ok3, w3[c3, cin, i + 4 - h, kw3c], 0.0) for i in range(4)]
    ).astype(jnp.bfloat16)                                           # (4,128,512)
    cv3, okf = c3[0], f_ok[0]
    kp["e3"] = jnp.stack([jnp.where(okf, p["b3"][cv3], 0.0),
                          jnp.where(okf, s3[cv3], 0.0),
                          jnp.where(okf, t3[cv3], 0.0)])             # (3, 512)

    # fc1 + sigmoid
    kp["wfc"] = jnp.pad(p["wfc"], ((0, 0), (0, 8)))                  # (1, 64)
    kp["bfc"] = p["bfc"].reshape(1, 1)
    return kp


# ----------------------------------------------------------------------------
# Forward pass
# ----------------------------------------------------------------------------
@jax.jit
def eegnet_forward(x, kp):
    """x: (N, 1, 120, 64) float32 (NCHW, as in PyTorch) -> (N, 1) in [0, 1]."""
    n = x.shape[0]
    npad = -(-n // _NS) * _NS
    # Only remaining XLA glue: squeeze the channel, put the time axis in lanes
    # (one transpose of the raw input), bf16-cast the matmul operand and pad
    # the batch to a multiple of the block size.
    xt = jnp.transpose(x.reshape(n, 120, 64), (0, 2, 1)).astype(jnp.bfloat16)
    if npad != n:
        xt = jnp.pad(xt, ((0, npad - n), (0, 0), (0, 0)))

    out = pl.pallas_call(
        _eegnet_kernel,
        out_shape=jax.ShapeDtypeStruct((npad, 1), jnp.float32),
        grid=(npad // _NS,),
        in_specs=[
            pl.BlockSpec((_NS, 64, 120), lambda b: (b, 0, 0)),   # input block
            pl.BlockSpec((12, 64), lambda b: (0, 0)),            # conv1 weight
            pl.BlockSpec((3, 12, 1), lambda b: (0, 0, 0)),       # conv1 epilogue
            pl.BlockSpec((2, 120, 256), lambda b: (0, 0, 0)),    # conv2 Toeplitz
            pl.BlockSpec((3, 256), lambda b: (0, 0)),            # conv2 epilogue
            pl.BlockSpec((4, 128, 512), lambda b: (0, 0, 0)),    # conv3 folded W
            pl.BlockSpec((3, 512), lambda b: (0, 0)),            # conv3 epilogue
            pl.BlockSpec((1, 64), lambda b: (0, 0)),             # fc1 weight
            pl.BlockSpec((1, 1), lambda b: (0, 0)),              # fc1 bias
        ],
        out_specs=pl.BlockSpec((_NS, 1), lambda b: (b, 0)),
        scratch_shapes=[pltpu.VMEM((4, _NS, 128), jnp.float32)],
        compiler_params=pltpu.CompilerParams(
            dimension_semantics=("parallel",)),
    )(xt, kp["w1"], kp["e1"], kp["t2"], kp["e2"], kp["w3m"], kp["e3"],
      kp["wfc"], kp["bfc"])
    return out[:n]


# ----------------------------------------------------------------------------
if __name__ == "__main__":
    key = jax.random.PRNGKey(0)
    kx, kparam = jax.random.split(key)
    # The fc1(4*2*7 -> 1) head pins the spatial trace to a (120, 64) input plane.
    x = jax.random.normal(kx, (2, 1, 120, 64), jnp.float32)
    raw_params = init_params(kparam)
    packed = pack_params(raw_params)

    out = eegnet_forward(x, packed)
    out = jax.block_until_ready(out)

    assert out.shape == (2, 1), out.shape
    assert bool(jnp.all(jnp.isfinite(out)))
    assert bool(jnp.all((out >= 0.0) & (out <= 1.0)))
    print("KERNEL_OK")
</pallas_src>

<mosaic_0001>
module attributes {stable_mosaic.version = 11 : i64} {
  func.func @_eegnet_kernel(%arg0: i32, %arg1: memref<8x64x120xbf16, #tpu.memory_space<vmem>>, %arg2: memref<12x64xbf16, #tpu.memory_space<vmem>>, %arg3: memref<3x12x1xf32, #tpu.memory_space<vmem>>, %arg4: memref<2x120x256xbf16, #tpu.memory_space<vmem>>, %arg5: memref<3x256xf32, #tpu.memory_space<vmem>>, %arg6: memref<4x128x512xbf16, #tpu.memory_space<vmem>>, %arg7: memref<3x512xf32, #tpu.memory_space<vmem>>, %arg8: memref<1x64xf32, #tpu.memory_space<vmem>>, %arg9: memref<1x1xf32, #tpu.memory_space<vmem>>, %arg10: memref<8x1xf32, #tpu.memory_space<vmem>>, %arg11: memref<4x8x128xf32, #tpu.memory_space<vmem>>) attributes {dimension_semantics = [#tpu.dimension_semantics<parallel>], iteration_bounds = array<i64: 1>, scalar_prefetch = 0 : i64, scratch_operands = 1 : i64, tpu.core_type = #tpu.core_type<tc>, window_params = [{transform_indices = @transform_0, window_bounds = array<i64: 8, 64, 120>}, {pipeline_mode = #tpu.pipeline_mode<synchronous>, transform_indices = @transform_1, window_bounds = array<i64: 12, 64>}, {pipeline_mode = #tpu.pipeline_mode<synchronous>, transform_indices = @transform_2, window_bounds = array<i64: 3, 12, 1>}, {pipeline_mode = #tpu.pipeline_mode<synchronous>, transform_indices = @transform_3, window_bounds = array<i64: 2, 120, 256>}, {pipeline_mode = #tpu.pipeline_mode<synchronous>, transform_indices = @transform_4, window_bounds = array<i64: 3, 256>}, {pipeline_mode = #tpu.pipeline_mode<synchronous>, transform_indices = @transform_5, window_bounds = array<i64: 4, 128, 512>}, {pipeline_mode = #tpu.pipeline_mode<synchronous>, transform_indices = @transform_6, window_bounds = array<i64: 3, 512>}, {pipeline_mode = #tpu.pipeline_mode<synchronous>, transform_indices = @transform_7, window_bounds = array<i64: 1, 64>}, {pipeline_mode = #tpu.pipeline_mode<synchronous>, transform_indices = @transform_8, window_bounds = array<i64: 1, 1>}, {transform_indices = @transform_9, window_bounds = array<i64: 8, 1>}]} {
    %c0 = arith.constant 0 : index
    %c0_0 = arith.constant 0 : index
    %0 = vector.load %arg2[%c0, %c0_0] : memref<12x64xbf16, #tpu.memory_space<vmem>>, vector<12x64xbf16>
    %c0_1 = arith.constant 0 : index
    %c0_2 = arith.constant 0 : index
    %c0_3 = arith.constant 0 : index
    %1 = vector.load %arg3[%c0_1, %c0_2, %c0_3] : memref<3x12x1xf32, #tpu.memory_space<vmem>>, vector<3x12x1xf32>
    %2 = vector.extract_strided_slice %1 {offsets = [0, 0, 0], sizes = [1, 12, 1], strides = [1, 1, 1]} : vector<3x12x1xf32> to vector<1x12x1xf32>
    %3 = vector.shape_cast %2 : vector<1x12x1xf32> to vector<12x1xf32>
    %4 = vector.extract_strided_slice %1 {offsets = [1, 0, 0], sizes = [1, 12, 1], strides = [1, 1, 1]} : vector<3x12x1xf32> to vector<1x12x1xf32>
    %5 = vector.shape_cast %4 : vector<1x12x1xf32> to vector<12x1xf32>
    %6 = vector.extract_strided_slice %1 {offsets = [2, 0, 0], sizes = [1, 12, 1], strides = [1, 1, 1]} : vector<3x12x1xf32> to vector<1x12x1xf32>
    %7 = vector.shape_cast %6 : vector<1x12x1xf32> to vector<12x1xf32>
    %c0_4 = arith.constant 0 : index
    %c0_5 = arith.constant 0 : index
    %c0_6 = arith.constant 0 : index
    %8 = vector.load %arg4[%c0_4, %c0_5, %c0_6] : memref<2x120x256xbf16, #tpu.memory_space<vmem>>, vector<1x120x256xbf16>
    %9 = vector.shape_cast %8 : vector<1x120x256xbf16> to vector<120x256xbf16>
    %c1 = arith.constant 1 : index
    %c0_7 = arith.constant 0 : index
    %c0_8 = arith.constant 0 : index
    %10 = vector.load %arg4[%c1, %c0_7, %c0_8] : memref<2x120x256xbf16, #tpu.memory_space<vmem>>, vector<1x120x256xbf16>
    %11 = vector.shape_cast %10 : vector<1x120x256xbf16> to vector<120x256xbf16>
    %c0_9 = arith.constant 0 : index
    %c0_10 = arith.constant 0 : index
    %12 = vector.load %arg5[%c0_9, %c0_10] : memref<3x256xf32, #tpu.memory_space<vmem>>, vector<3x256xf32>
    %13 = vector.extract_strided_slice %12 {offsets = [0, 0], sizes = [1, 256], strides = [1, 1]} : vector<3x256xf32> to vector<1x256xf32>
    %14 = vector.extract_strided_slice %12 {offsets = [1, 0], sizes = [1, 256], strides = [1, 1]} : vector<3x256xf32> to vector<1x256xf32>
    %15 = vector.extract_strided_slice %12 {offsets = [2, 0], sizes = [1, 256], strides = [1, 1]} : vector<3x256xf32> to vector<1x256xf32>
    %c0_11 = arith.constant 0 : index
    %c0_12 = arith.constant 0 : index
    %c0_13 = arith.constant 0 : index
    %16 = vector.load %arg1[%c0_11, %c0_12, %c0_13] : memref<8x64x120xbf16, #tpu.memory_space<vmem>>, vector<1x64x120xbf16>
    %17 = vector.shape_cast %16 : vector<1x64x120xbf16> to vector<64x120xbf16>
    %cst = arith.constant dense<0.000000e+00> : vector<12x120xf32>
    %18 = tpu.matmul %0, %17, %cst {dimension_numbers = #tpu.dot_dimension_numbers<[1], [0], [0], [1], [0, 0, 1, 1], [], []>} : vector<12x64xbf16>, vector<64x120xbf16>, vector<12x120xf32> -> vector<12x120xf32>
    %19 = vector.broadcast %3 : vector<12x1xf32> to vector<12x120xf32>
    %20 = arith.addf %18, %19 : vector<12x120xf32>
    %cst_14 = arith.constant 0.000000e+00 : f32
    %21 = vector.broadcast %cst_14 : f32 to vector<12x120xf32>
    %22 = arith.cmpf ogt, %20, %21 : vector<12x120xf32>
    %cst_15 = arith.constant 0.000000e+00 : f32
    %23 = vector.broadcast %cst_15 : f32 to vector<12x120xf32>
    %24 = arith.minimumf %20, %23 : vector<12x120xf32>
    %25 = math.exp %24 : vector<12x120xf32>
    %cst_16 = arith.constant 1.000000e+00 : f32
    %26 = vector.broadcast %cst_16 : f32 to vector<12x120xf32>
    %27 = arith.subf %25, %26 : vector<12x120xf32>
    %28 = arith.select %22, %20, %27 : vector<12x120xi1>, vector<12x120xf32>
    %29 = vector.broadcast %5 : vector<12x1xf32> to vector<12x120xf32>
    %30 = arith.mulf %28, %29 : vector<12x120xf32>
    %31 = vector.broadcast %7 : vector<12x1xf32> to vector<12x120xf32>
    %32 = arith.addf %30, %31 : vector<12x120xf32>
    %33 = arith.truncf %32 : vector<12x120xf32> to vector<12x120xbf16>
    %34 = vector.extract_strided_slice %33 {offsets = [0, 0], sizes = [4, 120], strides = [1, 1]} : vector<12x120xbf16> to vector<4x120xbf16>
    %35 = vector.extract_strided_slice %33 {offsets = [4, 0], sizes = [4, 120], strides = [1, 1]} : vector<12x120xbf16> to vector<4x120xbf16>
    %36 = vector.extract_strided_slice %33 {offsets = [8, 0], sizes = [4, 120], strides = [1, 1]} : vector<12x120xbf16> to vector<4x120xbf16>
    %cst_17 = arith.constant dense<0.000000e+00> : vector<4x256xf32>
    %37 = tpu.matmul %34, %9, %cst_17 {dimension_numbers = #tpu.dot_dimension_numbers<[1], [0], [0], [1], [0, 0, 1, 1], [], []>} : vector<4x120xbf16>, vector<120x256xbf16>, vector<4x256xf32> -> vector<4x256xf32>
    %cst_18 = arith.constant dense<0.000000e+00> : vector<4x256xf32>
    %38 = tpu.matmul %35, %11, %cst_18 {dimension_numbers = #tpu.dot_dimension_numbers<[1], [0], [0], [1], [0, 0, 1, 1], [], []>} : vector<4x120xbf16>, vector<120x256xbf16>, vector<4x256xf32> -> vector<4x256xf32>
    %39 = arith.addf %37, %38 : vector<4x256xf32>
    %cst_19 = arith.constant dense<0.000000e+00> : vector<4x256xf32>
    %40 = tpu.matmul %35, %9, %cst_19 {dimension_numbers = #tpu.dot_dimension_numbers<[1], [0], [0], [1], [0, 0, 1, 1], [], []>} : vector<4x120xbf16>, vector<120x256xbf16>, vector<4x256xf32> -> vector<4x256xf32>
    %cst_20 = arith.constant dense<0.000000e+00> : vector<4x256xf32>
    %41 = tpu.matmul %36, %11, %cst_20 {dimension_numbers = #tpu.dot_dimension_numbers<[1], [0], [0], [1], [0, 0, 1, 1], [], []>} : vector<4x120xbf16>, vector<120x256xbf16>, vector<4x256xf32> -> vector<4x256xf32>
    %42 = arith.addf %40, %41 : vector<4x256xf32>
    %43 = vector.broadcast %13 : vector<1x256xf32> to vector<4x256xf32>
    %44 = arith.addf %39, %43 : vector<4x256xf32>
    %cst_21 = arith.constant 0.000000e+00 : f32
    %45 = vector.broadcast %cst_21 : f32 to vector<4x256xf32>
    %46 = arith.cmpf ogt, %44, %45 : vector<4x256xf32>
    %cst_22 = arith.constant 0.000000e+00 : f32
    %47 = vector.broadcast %cst_22 : f32 to vector<4x256xf32>
    %48 = arith.minimumf %44, %47 : vector<4x256xf32>
    %49 = math.exp %48 : vector<4x256xf32>
    %cst_23 = arith.constant 1.000000e+00 : f32
    %50 = vector.broadcast %cst_23 : f32 to vector<4x256xf32>
    %51 = arith.subf %49, %50 : vector<4x256xf32>
    %52 = arith.select %46, %44, %51 : vector<4x256xi1>, vector<4x256xf32>
    %53 = vector.broadcast %14 : vector<1x256xf32> to vector<4x256xf32>
    %54 = arith.mulf %52, %53 : vector<4x256xf32>
    %55 = vector.broadcast %15 : vector<1x256xf32> to vector<4x256xf32>
    %56 = arith.addf %54, %55 : vector<4x256xf32>
    %57 = vector.broadcast %13 : vector<1x256xf32> to vector<4x256xf32>
    %58 = arith.addf %42, %57 : vector<4x256xf32>
    %cst_24 = arith.constant 0.000000e+00 : f32
    %59 = vector.broadcast %cst_24 : f32 to vector<4x256xf32>
    %60 = arith.cmpf ogt, %58, %59 : vector<4x256xf32>
    %cst_25 = arith.constant 0.000000e+00 : f32
    %61 = vector.broadcast %cst_25 : f32 to vector<4x256xf32>
    %62 = arith.minimumf %58, %61 : vector<4x256xf32>
    %63 = math.exp %62 : vector<4x256xf32>
    %cst_26 = arith.constant 1.000000e+00 : f32
    %64 = vector.broadcast %cst_26 : f32 to vector<4x256xf32>
    %65 = arith.subf %63, %64 : vector<4x256xf32>
    %66 = arith.select %60, %58, %65 : vector<4x256xi1>, vector<4x256xf32>
    %67 = vector.broadcast %14 : vector<1x256xf32> to vector<4x256xf32>
    %68 = arith.mulf %66, %67 : vector<4x256xf32>
    %69 = vector.broadcast %15 : vector<1x256xf32> to vector<4x256xf32>
    %70 = arith.addf %68, %69 : vector<4x256xf32>
    %71 = arith.maximumf %56, %70 : vector<4x256xf32>
    %72 = vector.extract_strided_slice %71 {offsets = [0, 0], sizes = [4, 128], strides = [1, 1]} : vector<4x256xf32> to vector<4x128xf32>
    %73 = vector.extract_strided_slice %71 {offsets = [0, 128], sizes = [4, 128], strides = [1, 1]} : vector<4x256xf32> to vector<4x128xf32>
    %74 = arith.maximumf %72, %73 : vector<4x128xf32>
    %75 = vector.extract_strided_slice %74 {offsets = [0, 0], sizes = [1, 128], strides = [1, 1]} : vector<4x128xf32> to vector<1x128xf32>
    %76 = vector.shape_cast %75 : vector<1x128xf32> to vector<128xf32>
    %c0_27 = arith.constant 0 : index
    %c0_28 = arith.constant 0 : index
    %c0_29 = arith.constant 0 : index
    %77 = vector.load %arg11[%c0_27, %c0_28, %c0_29] : memref<4x8x128xf32, #tpu.memory_space<vmem>>, vector<1x1x128xf32>
    %78 = vector.shape_cast %77 : vector<1x1x128xf32> to vector<128xf32>
    %79 = vector.shape_cast %76 : vector<128xf32> to vector<1x1x128xf32>
    tpu.vector_store %arg11[%c0_27, %c0_28, %c0_29], %79 {strides = array<i32>} : memref<4x8x128xf32, #tpu.memory_space<vmem>>, vector<1x1x128xf32>,
    %80 = vector.extract_strided_slice %74 {offsets = [1, 0], sizes = [1, 128], strides = [1, 1]} : vector<4x128xf32> to vector<1x128xf32>
    %81 = vector.shape_cast %80 : vector<1x128xf32> to vector<128xf32>
    %c1_30 = arith.constant 1 : index
    %c0_31 = arith.constant 0 : index
    %c0_32 = arith.constant 0 : index
    %82 = vector.load %arg11[%c1_30, %c0_31, %c0_32] : memref<4x8x128xf32, #tpu.memory_space<vmem>>, vector<1x1x128xf32>
    %83 = vector.shape_cast %82 : vector<1x1x128xf32> to vector<128xf32>
    %84 = vector.shape_cast %81 : vector<128xf32> to vector<1x1x128xf32>
    tpu.vector_store %arg11[%c1_30, %c0_31, %c0_32], %84 {strides = array<i32>} : memref<4x8x128xf32, #tpu.memory_space<vmem>>, vector<1x1x128xf32>,
    %85 = vector.extract_strided_slice %74 {offsets = [2, 0], sizes = [1, 128], strides = [1, 1]} : vector<4x128xf32> to vector<1x128xf32>
    %86 = vector.shape_cast %85 : vector<1x128xf32> to vector<128xf32>
    %c2 = arith.constant 2 : index
    %c0_33 = arith.constant 0 : index
    %c0_34 = arith.constant 0 : index
    %87 = vector.load %arg11[%c2, %c0_33, %c0_34] : memref<4x8x128xf32, #tpu.memory_space<vmem>>, vector<1x1x128xf32>
    %88 = vector.shape_cast %87 : vector<1x1x128xf32> to vector<128xf32>
    %89 = vector.shape_cast %86 : vector<128xf32> to vector<1x1x128xf32>
    tpu.vector_store %arg11[%c2, %c0_33, %c0_34], %89 {strides = array<i32>} : memref<4x8x128xf32, #tpu.memory_space<vmem>>, vector<1x1x128xf32>,
    %90 = vector.extract_strided_slice %74 {offsets = [3, 0], sizes = [1, 128], strides = [1, 1]} : vector<4x128xf32> to vector<1x128xf32>
    %91 = vector.shape_cast %90 : vector<1x128xf32> to vector<128xf32>
    %c3 = arith.constant 3 : index
    %c0_35 = arith.constant 0 : index
    %c0_36 = arith.constant 0 : index
    %92 = vector.load %arg11[%c3, %c0_35, %c0_36] : memref<4x8x128xf32, #tpu.memory_space<vmem>>, vector<1x1x128xf32>
    %93 = vector.shape_cast %92 : vector<1x1x128xf32> to vector<128xf32>
    %94 = vector.shape_cast %91 : vector<128xf32> to vector<1x1x128xf32>
    tpu.vector_store %arg11[%c3, %c0_35, %c0_36], %94 {strides = array<i32>} : memref<4x8x128xf32, #tpu.memory_space<vmem>>, vector<1x1x128xf32>,
    %c1_37 = arith.constant 1 : index
    %c0_38 = arith.constant 0 : index
    %c0_39 = arith.constant 0 : index
    %95 = vector.load %arg1[%c1_37, %c0_38, %c0_39] : memref<8x64x120xbf16, #tpu.memory_space<vmem>>, vector<1x64x120xbf16>
    %96 = vector.shape_cast %95 : vector<1x64x120xbf16> to vector<64x120xbf16>
    %cst_40 = arith.constant dense<0.000000e+00> : vector<12x120xf32>
    %97 = tpu.matmul %0, %96, %cst_40 {dimension_numbers = #tpu.dot_dimension_numbers<[1], [0], [0], [1], [0, 0, 1, 1], [], []>} : vector<12x64xbf16>, vector<64x120xbf16>, vector<12x120xf32> -> vector<12x120xf32>
    %98 = vector.broadcast %3 : vector<12x1xf32> to vector<12x120xf32>
    %99 = arith.addf %97, %98 : vector<12x120xf32>
    %cst_41 = arith.constant 0.000000e+00 : f32
    %100 = vector.broadcast %cst_41 : f32 to vector<12x120xf32>
    %101 = arith.cmpf ogt, %99, %100 : vector<12x120xf32>
    %cst_42 = arith.constant 0.000000e+00 : f32
    %102 = vector.broadcast %cst_42 : f32 to vector<12x120xf32>
    %103 = arith.minimumf %99, %102 : vector<12x120xf32>
    %104 = math.exp %103 : vector<12x120xf32>
    %cst_43 = arith.constant 1.000000e+00 : f32
    %105 = vector.broadcast %cst_43 : f32 to vector<12x120xf32>
    %106 = arith.subf %104, %105 : vector<12x120xf32>
    %107 = arith.select %101, %99, %106 : vector<12x120xi1>, vector<12x120xf32>
    %108 = vector.broadcast %5 : vector<12x1xf32> to vector<12x120xf32>
    %109 = arith.mulf %107, %108 : vector<12x120xf32>
    %110 = vector.broadcast %7 : vector<12x1xf32> to vector<12x120xf32>
    %111 = arith.addf %109, %110 : vector<12x120xf32>
    %112 = arith.truncf %111 : vector<12x120xf32> to vector<12x120xbf16>
    %113 = vector.extract_strided_slice %112 {offsets = [0, 0], sizes = [4, 120], strides = [1, 1]} : vector<12x120xbf16> to vector<4x120xbf16>
    %114 = vector.extract_strided_slice %112 {offsets = [4, 0], sizes = [4, 120], strides = [1, 1]} : vector<12x120xbf16> to vector<4x120xbf16>
    %115 = vector.extract_strided_slice %112 {offsets = [8, 0], sizes = [4, 120], strides = [1, 1]} : vector<12x120xbf16> to vector<4x120xbf16>
    %cst_44 = arith.constant dense<0.000000e+00> : vector<4x256xf32>
    %116 = tpu.matmul %113, %9, %cst_44 {dimension_numbers = #tpu.dot_dimension_numbers<[1], [0], [0], [1], [0, 0, 1, 1], [], []>} : vector<4x120xbf16>, vector<120x256xbf16>, vector<4x256xf32> -> vector<4x256xf32>
    %cst_45 = arith.constant dense<0.000000e+00> : vector<4x256xf32>
    %117 = tpu.matmul %114, %11, %cst_45 {dimension_numbers = #tpu.dot_dimension_numbers<[1], [0], [0], [1], [0, 0, 1, 1], [], []>} : vector<4x120xbf16>, vector<120x256xbf16>, vector<4x256xf32> -> vector<4x256xf32>
    %118 = arith.addf %116, %117 : vector<4x256xf32>
    %cst_46 = arith.constant dense<0.000000e+00> : vector<4x256xf32>
    %119 = tpu.matmul %114, %9, %cst_46 {dimension_numbers = #tpu.dot_dimension_numbers<[1], [0], [0], [1], [0, 0, 1, 1], [], []>} : vector<4x120xbf16>, vector<120x256xbf16>, vector<4x256xf32> -> vector<4x256xf32>
    %cst_47 = arith.constant dense<0.000000e+00> : vector<4x256xf32>
    %120 = tpu.matmul %115, %11, %cst_47 {dimension_numbers = #tpu.dot_dimension_numbers<[1], [0], [0], [1], [0, 0, 1, 1], [], []>} : vector<4x120xbf16>, vector<120x256xbf16>, vector<4x256xf32> -> vector<4x256xf32>
    %121 = arith.addf %119, %120 : vector<4x256xf32>
    %122 = vector.broadcast %13 : vector<1x256xf32> to vector<4x256xf32>
    %123 = arith.addf %118, %122 : vector<4x256xf32>
    %cst_48 = arith.constant 0.000000e+00 : f32
    %124 = vector.broadcast %cst_48 : f32 to vector<4x256xf32>
    %125 = arith.cmpf ogt, %123, %124 : vector<4x256xf32>
    %cst_49 = arith.constant 0.000000e+00 : f32
    %126 = vector.broadcast %cst_49 : f32 to vector<4x256xf32>
    %127 = arith.minimumf %123, %126 : vector<4x256xf32>
    %128 = math.exp %127 : vector<4x256xf32>
    %cst_50 = arith.constant 1.000000e+00 : f32
    %129 = vector.broadcast %cst_50 : f32 to vector<4x256xf32>
    %130 = arith.subf %128, %129 : vector<4x256xf32>
    %131 = arith.select %125, %123, %130 : vector<4x256xi1>, vector<4x256xf32>
    %132 = vector.broadcast %14 : vector<1x256xf32> to vector<4x256xf32>
    %133 = arith.mulf %131, %132 : vector<4x256xf32>
    %134 = vector.broadcast %15 : vector<1x256xf32> to vector<4x256xf32>
    %135 = arith.addf %133, %134 : vector<4x256xf32>
    %136 = vector.broadcast %13 : vector<1x256xf32> to vector<4x256xf32>
    %137 = arith.addf %121, %136 : vector<4x256xf32>
    %cst_51 = arith.constant 0.000000e+00 : f32
    %138 = vector.broadcast %cst_51 : f32 to vector<4x256xf32>
    %139 = arith.cmpf ogt, %137, %138 : vector<4x256xf32>
    %cst_52 = arith.constant 0.000000e+00 : f32
    %140 = vector.broadcast %cst_52 : f32 to vector<4x256xf32>
    %141 = arith.minimumf %137, %140 : vector<4x256xf32>
    %142 = math.exp %141 : vector<4x256xf32>
    %cst_53 = arith.constant 1.000000e+00 : f32
    %143 = vector.broadcast %cst_53 : f32 to vector<4x256xf32>
    %144 = arith.subf %142, %143 : vector<4x256xf32>
    %145 = arith.select %139, %137, %144 : vector<4x256xi1>, vector<4x256xf32>
    %146 = vector.broadcast %14 : vector<1x256xf32> to vector<4x256xf32>
    %147 = arith.mulf %145, %146 : vector<4x256xf32>
    %148 = vector.broadcast %15 : vector<1x256xf32> to vector<4x256xf32>
    %149 = arith.addf %147, %148 : vector<4x256xf32>
    %150 = arith.maximumf %135, %149 : vector<4x256xf32>
    %151 = vector.extract_strided_slice %150 {offsets = [0, 0], sizes = [4, 128], strides = [1, 1]} : vector<4x256xf32> to vector<4x128xf32>
    %152 = vector.extract_strided_slice %150 {offsets = [0, 128], sizes = [4, 128], strides = [1, 1]} : vector<4x256xf32> to vector<4x128xf32>
    %153 = arith.maximumf %151, %152 : vector<4x128xf32>
    %154 = vector.extract_strided_slice %153 {offsets = [0, 0], sizes = [1, 128], strides = [1, 1]} : vector<4x128xf32> to vector<1x128xf32>
    %155 = vector.shape_cast %154 : vector<1x128xf32> to vector<128xf32>
    %c0_54 = arith.constant 0 : index
    %c1_55 = arith.constant 1 : index
    %c0_56 = arith.constant 0 : index
    %156 = vector.load %arg11[%c0_54, %c1_55, %c0_56] : memref<4x8x128xf32, #tpu.memory_space<vmem>>, vector<1x1x128xf32>
    %157 = vector.shape_cast %156 : vector<1x1x128xf32> to vector<128xf32>
    %158 = vector.shape_cast %155 : vector<128xf32> to vector<1x1x128xf32>
    tpu.vector_store %arg11[%c0_54, %c1_55, %c0_56], %158 {strides = array<i32>} : memref<4x8x128xf32, #tpu.memory_space<vmem>>, vector<1x1x128xf32>,
    %159 = vector.extract_strided_slice %153 {offsets = [1, 0], sizes = [1, 128], strides = [1, 1]} : vector<4x128xf32> to vector<1x128xf32>
    %160 = vector.shape_cast %159 : vector<1x128xf32> to vector<128xf32>
    %c1_57 = arith.constant 1 : index
    %c1_58 = arith.constant 1 : index
    %c0_59 = arith.constant 0 : index
    %161 = vector.load %arg11[%c1_57, %c1_58, %c0_59] : memref<4x8x128xf32, #tpu.memory_space<vmem>>, vector<1x1x128xf32>
    %162 = vector.shape_cast %161 : vector<1x1x128xf32> to vector<128xf32>
    %163 = vector.shape_cast %160 : vector<128xf32> to vector<1x1x128xf32>
    tpu.vector_store %arg11[%c1_57, %c1_58, %c0_59], %163 {strides = array<i32>} : memref<4x8x128xf32, #tpu.memory_space<vmem>>, vector<1x1x128xf32>,
    %164 = vector.extract_strided_slice %153 {offsets = [2, 0], sizes = [1, 128], strides = [1, 1]} : vector<4x128xf32> to vector<1x128xf32>
    %165 = vector.shape_cast %164 : vector<1x128xf32> to vector<128xf32>
    %c2_60 = arith.constant 2 : index
    %c1_61 = arith.constant 1 : index
    %c0_62 = arith.constant 0 : index
    %166 = vector.load %arg11[%c2_60, %c1_61, %c0_62] : memref<4x8x128xf32, #tpu.memory_space<vmem>>, vector<1x1x128xf32>
    %167 = vector.shape_cast %166 : vector<1x1x128xf32> to vector<128xf32>
    %168 = vector.shape_cast %165 : vector<128xf32> to vector<1x1x128xf32>
    tpu.vector_store %arg11[%c2_60, %c1_61, %c0_62], %168 {strides = array<i32>} : memref<4x8x128xf32, #tpu.memory_space<vmem>>, vector<1x1x128xf32>,
    %169 = vector.extract_strided_slice %153 {offsets = [3, 0], sizes = [1, 128], strides = [1, 1]} : vector<4x128xf32> to vector<1x128xf32>
    %170 = vector.shape_cast %169 : vector<1x128xf32> to vector<128xf32>
    %c3_63 = arith.constant 3 : index
    %c1_64 = arith.constant 1 : index
    %c0_65 = arith.constant 0 : index
    %171 = vector.load %arg11[%c3_63, %c1_64, %c0_65] : memref<4x8x128xf32, #tpu.memory_space<vmem>>, vector<1x1x128xf32>
    %172 = vector.shape_cast %171 : vector<1x1x128xf32> to vector<128xf32>
    %173 = vector.shape_cast %170 : vector<128xf32> to vector<1x1x128xf32>
    tpu.vector_store %arg11[%c3_63, %c1_64, %c0_65], %173 {strides = array<i32>} : memref<4x8x128xf32, #tpu.memory_space<vmem>>, vector<1x1x128xf32>,
    %c2_66 = arith.constant 2 : index
    %c0_67 = arith.constant 0 : index
    %c0_68 = arith.constant 0 : index
    %174 = vector.load %arg1[%c2_66, %c0_67, %c0_68] : memref<8x64x120xbf16, #tpu.memory_space<vmem>>, vector<1x64x120xbf16>
    %175 = vector.shape_cast %174 : vector<1x64x120xbf16> to vector<64x120xbf16>
    %cst_69 = arith.constant dense<0.000000e+00> : vector<12x120xf32>
    %176 = tpu.matmul %0, %175, %cst_69 {dimension_numbers = #tpu.dot_dimension_numbers<[1], [0], [0], [1], [0, 0, 1, 1], [], []>} : vector<12x64xbf16>, vector<64x120xbf16>, vector<12x120xf32> -> vector<12x120xf32>
    %177 = vector.broadcast %3 : vector<12x1xf32> to vector<12x120xf32>
    %178 = arith.addf %176, %177 : vector<12x120xf32>
    %cst_70 = arith.constant 0.000000e+00 : f32
    %179 = vector.broadcast %cst_70 : f32 to vector<12x120xf32>
    %180 = arith.cmpf ogt, %178, %179 : vector<12x120xf32>
    %cst_71 = arith.constant 0.000000e+00 : f32
    %181 = vector.broadcast %cst_71 : f32 to vector<12x120xf32>
    %182 = arith.minimumf %178, %181 : vector<12x120xf32>
    %183 = math.exp %182 : vector<12x120xf32>
    %cst_72 = arith.constant 1.000000e+00 : f32
    %184 = vector.broadcast %cst_72 : f32 to vector<12x120xf32>
    %185 = arith.subf %183, %184 : vector<12x120xf32>
    %186 = arith.select %180, %178, %185 : vector<12x120xi1>, vector<12x120xf32>
    %187 = vector.broadcast %5 : vector<12x1xf32> to vector<12x120xf32>
    %188 = arith.mulf %186, %187 : vector<12x120xf32>
    %189 = vector.broadcast %7 : vector<12x1xf32> to vector<12x120xf32>
    %190 = arith.addf %188, %189 : vector<12x120xf32>
    %191 = arith.truncf %190 : vector<12x120xf32> to vector<12x120xbf16>
    %192 = vector.extract_strided_slice %191 {offsets = [0, 0], sizes = [4, 120], strides = [1, 1]} : vector<12x120xbf16> to vector<4x120xbf16>
    %193 = vector.extract_strided_slice %191 {offsets = [4, 0], sizes = [4, 120], strides = [1, 1]} : vector<12x120xbf16> to vector<4x120xbf16>
    %194 = vector.extract_strided_slice %191 {offsets = [8, 0], sizes = [4, 120], strides = [1, 1]} : vector<12x120xbf16> to vector<4x120xbf16>
    %cst_73 = arith.constant dense<0.000000e+00> : vector<4x256xf32>
    %195 = tpu.matmul %192, %9, %cst_73 {dimension_numbers = #tpu.dot_dimension_numbers<[1], [0], [0], [1], [0, 0, 1, 1], [], []>} : vector<4x120xbf16>, vector<120x256xbf16>, vector<4x256xf32> -> vector<4x256xf32>
    %cst_74 = arith.constant dense<0.000000e+00> : vector<4x256xf32>
    %196 = tpu.matmul %193, %11, %cst_74 {dimension_numbers = #tpu.dot_dimension_numbers<[1], [0], [0], [1], [0, 0, 1, 1], [], []>} : vector<4x120xbf16>, vector<120x256xbf16>, vector<4x256xf32> -> vector<4x256xf32>
    %197 = arith.addf %195, %196 : vector<4x256xf32>
    %cst_75 = arith.constant dense<0.000000e+00> : vector<4x256xf32>
    %198 = tpu.matmul %193, %9, %cst_75 {dimension_numbers = #tpu.dot_dimension_numbers<[1], [0], [0], [1], [0, 0, 1, 1], [], []>} : vector<4x120xbf16>, vector<120x256xbf16>, vector<4x256xf32> -> vector<4x256xf32>
    %cst_76 = arith.constant dense<0.000000e+00> : vector<4x256xf32>
    %199 = tpu.matmul %194, %11, %cst_76 {dimension_numbers = #tpu.dot_dimension_numbers<[1], [0], [0], [1], [0, 0, 1, 1], [], []>} : vector<4x120xbf16>, vector<120x256xbf16>, vector<4x256xf32> -> vector<4x256xf32>
    %200 = arith.addf %198, %199 : vector<4x256xf32>
    %201 = vector.broadcast %13 : vector<1x256xf32> to vector<4x256xf32>
    %202 = arith.addf %197, %201 : vector<4x256xf32>
    %cst_77 = arith.constant 0.000000e+00 : f32
    %203 = vector.broadcast %cst_77 : f32 to vector<4x256xf32>
    %204 = arith.cmpf ogt, %202, %203 : vector<4x256xf32>
    %cst_78 = arith.constant 0.000000e+00 : f32
    %205 = vector.broadcast %cst_78 : f32 to vector<4x256xf32>
    %206 = arith.minimumf %202, %205 : vector<4x256xf32>
    %207 = math.exp %206 : vector<4x256xf32>
    %cst_79 = arith.constant 1.000000e+00 : f32
    %208 = vector.broadcast %cst_79 : f32 to vector<4x256xf32>
    %209 = arith.subf %207, %208 : vector<4x256xf32>
    %210 = arith.select %204, %202, %209 : vector<4x256xi1>, vector<4x256xf32>
    %211 = vector.broadcast %14 : vector<1x256xf32> to vector<4x256xf32>
    %212 = arith.mulf %210, %211 : vector<4x256xf32>
    %213 = vector.broadcast %15 : vector<1x256xf32> to vector<4x256xf32>
    %214 = arith.addf %212, %213 : vector<4x256xf32>
    %215 = vector.broadcast %13 : vector<1x256xf32> to vector<4x256xf32>
    %216 = arith.addf %200, %215 : vector<4x256xf32>
    %cst_80 = arith.constant 0.000000e+00 : f32
    %217 = vector.broadcast %cst_80 : f32 to vector<4x256xf32>
    %218 = arith.cmpf ogt, %216, %217 : vector<4x256xf32>
    %cst_81 = arith.constant 0.000000e+00 : f32
    %219 = vector.broadcast %cst_81 : f32 to vector<4x256xf32>
    %220 = arith.minimumf %216, %219 : vector<4x256xf32>
    %221 = math.exp %220 : vector<4x256xf32>
    %cst_82 = arith.constant 1.000000e+00 : f32
    %222 = vector.broadcast %cst_82 : f32 to vector<4x256xf32>
    %223 = arith.subf %221, %222 : vector<4x256xf32>
    %224 = arith.select %218, %216, %223 : vector<4x256xi1>, vector<4x256xf32>
    %225 = vector.broadcast %14 : vector<1x256xf32> to vector<4x256xf32>
    %226 = arith.mulf %224, %225 : vector<4x256xf32>
    %227 = vector.broadcast %15 : vector<1x256xf32> to vector<4x256xf32>
    %228 = arith.addf %226, %227 : vector<4x256xf32>
    %229 = arith.maximumf %214, %228 : vector<4x256xf32>
    %230 = vector.extract_strided_slice %229 {offsets = [0, 0], sizes = [4, 128], strides = [1, 1]} : vector<4x256xf32> to vector<4x128xf32>
    %231 = vector.extract_strided_slice %229 {offsets = [0, 128], sizes = [4, 128], strides = [1, 1]} : vector<4x256xf32> to vector<4x128xf32>
    %232 = arith.maximumf %230, %231 : vector<4x128xf32>
    %233 = vector.extract_strided_slice %232 {offsets = [0, 0], sizes = [1, 128], strides = [1, 1]} : vector<4x128xf32> to vector<1x128xf32>
    %234 = vector.shape_cast %233 : vector<1x128xf32> to vector<128xf32>
    %c0_83 = arith.constant 0 : index
    %c2_84 = arith.constant 2 : index
    %c0_85 = arith.constant 0 : index
    %235 = vector.load %arg11[%c0_83, %c2_84, %c0_85] : memref<4x8x128xf32, #tpu.memory_space<vmem>>, vector<1x1x128xf32>
    %236 = vector.shape_cast %235 : vector<1x1x128xf32> to vector<128xf32>
    %237 = vector.shape_cast %234 : vector<128xf32> to vector<1x1x128xf32>
    tpu.vector_store %arg11[%c0_83, %c2_84, %c0_85], %237 {strides = array<i32>} : memref<4x8x128xf32, #tpu.memory_space<vmem>>, vector<1x1x128xf32>,
    %238 = vector.extract_strided_slice %232 {offsets = [1, 0], sizes = [1, 128], strides = [1, 1]} : vector<4x128xf32> to vector<1x128xf32>
    %239 = vector.shape_cast %238 : vector<1x128xf32> to vector<128xf32>
    %c1_86 = arith.constant 1 : index
    %c2_87 = arith.constant 2 : index
    %c0_88 = arith.constant 0 : index
    %240 = vector.load %arg11[%c1_86, %c2_87, %c0_88] : memref<4x8x128xf32, #tpu.memory_space<vmem>>, vector<1x1x128xf32>
    %241 = vector.shape_cast %240 : vector<1x1x128xf32> to vector<128xf32>
    %242 = vector.shape_cast %239 : vector<128xf32> to vector<1x1x128xf32>
    tpu.vector_store %arg11[%c1_86, %c2_87, %c0_88], %242 {strides = array<i32>} : memref<4x8x128xf32, #tpu.memory_space<vmem>>, vector<1x1x128xf32>,
    %243 = vector.extract_strided_slice %232 {offsets = [2, 0], sizes = [1, 128], strides = [1, 1]} : vector<4x128xf32> to vector<1x128xf32>
    %244 = vector.shape_cast %243 : vector<1x128xf32> to vector<128xf32>
    %c2_89 = arith.constant 2 : index
    %c2_90 = arith.constant 2 : index
    %c0_91 = arith.constant 0 : index
    %245 = vector.load %arg11[%c2_89, %c2_90, %c0_91] : memref<4x8x128xf32, #tpu.memory_space<vmem>>, vector<1x1x128xf32>
    %246 = vector.shape_cast %245 : vector<1x1x128xf32> to vector<128xf32>
    %247 = vector.shape_cast %244 : vector<128xf32> to vector<1x1x128xf32>
    tpu.vector_store %arg11[%c2_89, %c2_90, %c0_91], %247 {strides = array<i32>} : memref<4x8x128xf32, #tpu.memory_space<vmem>>, vector<1x1x128xf32>,
    %248 = vector.extract_strided_slice %232 {offsets = [3, 0], sizes = [1, 128], strides = [1, 1]} : vector<4x128xf32> to vector<1x128xf32>
    %249 = vector.shape_cast %248 : vector<1x128xf32> to vector<128xf32>
    %c3_92 = arith.constant 3 : index
    %c2_93 = arith.constant 2 : index
    %c0_94 = arith.constant 0 : index
    %250 = vector.load %arg11[%c3_92, %c2_93, %c0_94] : memref<4x8x128xf32, #tpu.memory_space<vmem>>, vector<1x1x128xf32>
    %251 = vector.shape_cast %250 : vector<1x1x128xf32> to vector<128xf32>
    %252 = vector.shape_cast %249 : vector<128xf32> to vector<1x1x128xf32>
    tpu.vector_store %arg11[%c3_92, %c2_93, %c0_94], %252 {strides = array<i32>} : memref<4x8x128xf32, #tpu.memory_space<vmem>>, vector<1x1x128xf32>,
    %c3_95 = arith.constant 3 : index
    %c0_96 = arith.constant 0 : index
    %c0_97 = arith.constant 0 : index
    %253 = vector.load %arg1[%c3_95, %c0_96, %c0_97] : memref<8x64x120xbf16, #tpu.memory_space<vmem>>, vector<1x64x120xbf16>
    %254 = vector.shape_cast %253 : vector<1x64x120xbf16> to vector<64x120xbf16>
    %cst_98 = arith.constant dense<0.000000e+00> : vector<12x120xf32>
    %255 = tpu.matmul %0, %254, %cst_98 {dimension_numbers = #tpu.dot_dimension_numbers<[1], [0], [0], [1], [0, 0, 1, 1], [], []>} : vector<12x64xbf16>, vector<64x120xbf16>, vector<12x120xf32> -> vector<12x120xf32>
    %256 = vector.broadcast %3 : vector<12x1xf32> to vector<12x120xf32>
    %257 = arith.addf %255, %256 : vector<12x120xf32>
    %cst_99 = arith.constant 0.000000e+00 : f32
    %258 = vector.broadcast %cst_99 : f32 to vector<12x120xf32>
    %259 = arith.cmpf ogt, %257, %258 : vector<12x120xf32>
    %cst_100 = arith.constant 0.000000e+00 : f32
    %260 = vector.broadcast %cst_100 : f32 to vector<12x120xf32>
    %261 = arith.minimumf %257, %260 : vector<12x120xf32>
    %262 = math.exp %261 : vector<12x120xf32>
    %cst_101 = arith.constant 1.000000e+00 : f32
    %263 = vector.broadcast %cst_101 : f32 to vector<12x120xf32>
    %264 = arith.subf %262, %263 : vector<12x120xf32>
    %265 = arith.select %259, %257, %264 : vector<12x120xi1>, vector<12x120xf32>
    %266 = vector.broadcast %5 : vector<12x1xf32> to vector<12x120xf32>
    %267 = arith.mulf %265, %266 : vector<12x120xf32>
    %268 = vector.broadcast %7 : vector<12x1xf32> to vector<12x120xf32>
    %269 = arith.addf %267, %268 : vector<12x120xf32>
    %270 = arith.truncf %269 : vector<12x120xf32> to vector<12x120xbf16>
    %271 = vector.extract_strided_slice %270 {offsets = [0, 0], sizes = [4, 120], strides = [1, 1]} : vector<12x120xbf16> to vector<4x120xbf16>
    %272 = vector.extract_strided_slice %270 {offsets = [4, 0], sizes = [4, 120], strides = [1, 1]} : vector<12x120xbf16> to vector<4x120xbf16>
    %273 = vector.extract_strided_slice %270 {offsets = [8, 0], sizes = [4, 120], strides = [1, 1]} : vector<12x120xbf16> to vector<4x120xbf16>
    %cst_102 = arith.constant dense<0.000000e+00> : vector<4x256xf32>
    %274 = tpu.matmul %271, %9, %cst_102 {dimension_numbers = #tpu.dot_dimension_numbers<[1], [0], [0], [1], [0, 0, 1, 1], [], []>} : vector<4x120xbf16>, vector<120x256xbf16>, vector<4x256xf32> -> vector<4x256xf32>
    %cst_103 = arith.constant dense<0.000000e+00> : vector<4x256xf32>
    %275 = tpu.matmul %272, %11, %cst_103 {dimension_numbers = #tpu.dot_dimension_numbers<[1], [0], [0], [1], [0, 0, 1, 1], [], []>} : vector<4x120xbf16>, vector<120x256xbf16>, vector<4x256xf32> -> vector<4x256xf32>
    %276 = arith.addf %274, %275 : vector<4x256xf32>
    %cst_104 = arith.constant dense<0.000000e+00> : vector<4x256xf32>
    %277 = tpu.matmul %272, %9, %cst_104 {dimension_numbers = #tpu.dot_dimension_numbers<[1], [0], [0], [1], [0, 0, 1, 1], [], []>} : vector<4x120xbf16>, vector<120x256xbf16>, vector<4x256xf32> -> vector<4x256xf32>
    %cst_105 = arith.constant dense<0.000000e+00> : vector<4x256xf32>
    %278 = tpu.matmul %273, %11, %cst_105 {dimension_numbers = #tpu.dot_dimension_numbers<[1], [0], [0], [1], [0, 0, 1, 1], [], []>} : vector<4x120xbf16>, vector<120x256xbf16>, vector<4x256xf32> -> vector<4x256xf32>
    %279 = arith.addf %277, %278 : vector<4x256xf32>
    %280 = vector.broadcast %13 : vector<1x256xf32> to vector<4x256xf32>
    %281 = arith.addf %276, %280 : vector<4x256xf32>
    %cst_106 = arith.constant 0.000000e+00 : f32
    %282 = vector.broadcast %cst_106 : f32 to vector<4x256xf32>
    %283 = arith.cmpf ogt, %281, %282 : vector<4x256xf32>
    %cst_107 = arith.constant 0.000000e+00 : f32
    %284 = vector.broadcast %cst_107 : f32 to vector<4x256xf32>
    %285 = arith.minimumf %281, %284 : vector<4x256xf32>
    %286 = math.exp %285 : vector<4x256xf32>
    %cst_108 = arith.constant 1.000000e+00 : f32
    %287 = vector.broadcast %cst_108 : f32 to vector<4x256xf32>
    %288 = arith.subf %286, %287 : vector<4x256xf32>
    %289 = arith.select %283, %281, %288 : vector<4x256xi1>, vector<4x256xf32>
    %290 = vector.broadcast %14 : vector<1x256xf32> to vector<4x256xf32>
    %291 = arith.mulf %289, %290 : vector<4x256xf32>
    %292 = vector.broadcast %15 : vector<1x256xf32> to vector<4x256xf32>
    %293 = arith.addf %291, %292 : vector<4x256xf32>
    %294 = vector.broadcast %13 : vector<1x256xf32> to vector<4x256xf32>
    %295 = arith.addf %279, %294 : vector<4x256xf32>
    %cst_109 = arith.constant 0.000000e+00 : f32
    %296 = vector.broadcast %cst_109 : f32 to vector<4x256xf32>
    %297 = arith.cmpf ogt, %295, %296 : vector<4x256xf32>
    %cst_110 = arith.constant 0.000000e+00 : f32
    %298 = vector.broadcast %cst_110 : f32 to vector<4x256xf32>
    %299 = arith.minimumf %295, %298 : vector<4x256xf32>
    %300 = math.exp %299 : vector<4x256xf32>
    %cst_111 = arith.constant 1.000000e+00 : f32
    %301 = vector.broadcast %cst_111 : f32 to vector<4x256xf32>
    %302 = arith.subf %300, %301 : vector<4x256xf32>
    %303 = arith.select %297, %295, %302 : vector<4x256xi1>, vector<4x256xf32>
    %304 = vector.broadcast %14 : vector<1x256xf32> to vector<4x256xf32>
    %305 = arith.mulf %303, %304 : vector<4x256xf32>
    %306 = vector.broadcast %15 : vector<1x256xf32> to vector<4x256xf32>
    %307 = arith.addf %305, %306 : vector<4x256xf32>
    %308 = arith.maximumf %293, %307 : vector<4x256xf32>
    %309 = vector.extract_strided_slice %308 {offsets = [0, 0], sizes = [4, 128], strides = [1, 1]} : vector<4x256xf32> to vector<4x128xf32>
    %310 = vector.extract_strided_slice %308 {offsets = [0, 128], sizes = [4, 128], strides = [1, 1]} : vector<4x256xf32> to vector<4x128xf32>
    %311 = arith.maximumf %309, %310 : vector<4x128xf32>
    %312 = vector.extract_strided_slice %311 {offsets = [0, 0], sizes = [1, 128], strides = [1, 1]} : vector<4x128xf32> to vector<1x128xf32>
    %313 = vector.shape_cast %312 : vector<1x128xf32> to vector<128xf32>
    %c0_112 = arith.constant 0 : index
    %c3_113 = arith.constant 3 : index
    %c0_114 = arith.constant 0 : index
    %314 = vector.load %arg11[%c0_112, %c3_113, %c0_114] : memref<4x8x128xf32, #tpu.memory_space<vmem>>, vector<1x1x128xf32>
    %315 = vector.shape_cast %314 : vector<1x1x128xf32> to vector<128xf32>
    %316 = vector.shape_cast %313 : vector<128xf32> to vector<1x1x128xf32>
    tpu.vector_store %arg11[%c0_112, %c3_113, %c0_114], %316 {strides = array<i32>} : memref<4x8x128xf32, #tpu.memory_space<vmem>>, vector<1x1x128xf32>,
    %317 = vector.extract_strided_slice %311 {offsets = [1, 0], sizes = [1, 128], strides = [1, 1]} : vector<4x128xf32> to vector<1x128xf32>
    %318 = vector.shape_cast %317 : vector<1x128xf32> to vector<128xf32>
    %c1_115 = arith.constant 1 : index
    %c3_116 = arith.constant 3 : index
    %c0_117 = arith.constant 0 : index
    %319 = vector.load %arg11[%c1_115, %c3_116, %c0_117] : memref<4x8x128xf32, #tpu.memory_space<vmem>>, vector<1x1x128xf32>
    %320 = vector.shape_cast %319 : vector<1x1x128xf32> to vector<128xf32>
    %321 = vector.shape_cast %318 : vector<128xf32> to vector<1x1x128xf32>
    tpu.vector_store %arg11[%c1_115, %c3_116, %c0_117], %321 {strides = array<i32>} : memref<4x8x128xf32, #tpu.memory_space<vmem>>, vector<1x1x128xf32>,
    %322 = vector.extract_strided_slice %311 {offsets = [2, 0], sizes = [1, 128], strides = [1, 1]} : vector<4x128xf32> to vector<1x128xf32>
    %323 = vector.shape_cast %322 : vector<1x128xf32> to vector<128xf32>
    %c2_118 = arith.constant 2 : index
    %c3_119 = arith.constant 3 : index
    %c0_120 = arith.constant 0 : index
    %324 = vector.load %arg11[%c2_118, %c3_119, %c0_120] : memref<4x8x128xf32, #tpu.memory_space<vmem>>, vector<1x1x128xf32>
    %325 = vector.shape_cast %324 : vector<1x1x128xf32> to vector<128xf32>
    %326 = vector.shape_cast %323 : vector<128xf32> to vector<1x1x128xf32>
    tpu.vector_store %arg11[%c2_118, %c3_119, %c0_120], %326 {strides = array<i32>} : memref<4x8x128xf32, #tpu.memory_space<vmem>>, vector<1x1x128xf32>,
    %327 = vector.extract_strided_slice %311 {offsets = [3, 0], sizes = [1, 128], strides = [1, 1]} : vector<4x128xf32> to vector<1x128xf32>
    %328 = vector.shape_cast %327 : vector<1x128xf32> to vector<128xf32>
    %c3_121 = arith.constant 3 : index
    %c3_122 = arith.constant 3 : index
    %c0_123 = arith.constant 0 : index
    %329 = vector.load %arg11[%c3_121, %c3_122, %c0_123] : memref<4x8x128xf32, #tpu.memory_space<vmem>>, vector<1x1x128xf32>
    %330 = vector.shape_cast %329 : vector<1x1x128xf32> to vector<128xf32>
    %331 = vector.shape_cast %328 : vector<128xf32> to vector<1x1x128xf32>
    tpu.vector_store %arg11[%c3_121, %c3_122, %c0_123], %331 {strides = array<i32>} : memref<4x8x128xf32, #tpu.memory_space<vmem>>, vector<1x1x128xf32>,
    %c4 = arith.constant 4 : index
    %c0_124 = arith.constant 0 : index
    %c0_125 = arith.constant 0 : index
    %332 = vector.load %arg1[%c4, %c0_124, %c0_125] : memref<8x64x120xbf16, #tpu.memory_space<vmem>>, vector<1x64x120xbf16>
    %333 = vector.shape_cast %332 : vector<1x64x120xbf16> to vector<64x120xbf16>
    %cst_126 = arith.constant dense<0.000000e+00> : vector<12x120xf32>
    %334 = tpu.matmul %0, %333, %cst_126 {dimension_numbers = #tpu.dot_dimension_numbers<[1], [0], [0], [1], [0, 0, 1, 1], [], []>} : vector<12x64xbf16>, vector<64x120xbf16>, vector<12x120xf32> -> vector<12x120xf32>
    %335 = vector.broadcast %3 : vector<12x1xf32> to vector<12x120xf32>
    %336 = arith.addf %334, %335 : vector<12x120xf32>
    %cst_127 = arith.constant 0.000000e+00 : f32
    %337 = vector.broadcast %cst_127 : f32 to vector<12x120xf32>
    %338 = arith.cmpf ogt, %336, %337 : vector<12x120xf32>
    %cst_128 = arith.constant 0.000000e+00 : f32
    %339 = vector.broadcast %cst_128 : f32 to vector<12x120xf32>
    %340 = arith.minimumf %336, %339 : vector<12x120xf32>
    %341 = math.exp %340 : vector<12x120xf32>
    %cst_129 = arith.constant 1.000000e+00 : f32
    %342 = vector.broadcast %cst_129 : f32 to vector<12x120xf32>
    %343 = arith.subf %341, %342 : vector<12x120xf32>
    %344 = arith.select %338, %336, %343 : vector<12x120xi1>, vector<12x120xf32>
    %345 = vector.broadcast %5 : vector<12x1xf32> to vector<12x120xf32>
    %346 = arith.mulf %344, %345 : vector<12x120xf32>
    %347 = vector.broadcast %7 : vector<12x1xf32> to vector<12x120xf32>
    %348 = arith.addf %346, %347 : vector<12x120xf32>
    %349 = arith.truncf %348 : vector<12x120xf32> to vector<12x120xbf16>
    %350 = vector.extract_strided_slice %349 {offsets = [0, 0], sizes = [4, 120], strides = [1, 1]} : vector<12x120xbf16> to vector<4x120xbf16>
    %351 = vector.extract_strided_slice %349 {offsets = [4, 0], sizes = [4, 120], strides = [1, 1]} : vector<12x120xbf16> to vector<4x120xbf16>
    %352 = vector.extract_strided_slice %349 {offsets = [8, 0], sizes = [4, 120], strides = [1, 1]} : vector<12x120xbf16> to vector<4x120xbf16>
    %cst_130 = arith.constant dense<0.000000e+00> : vector<4x256xf32>
    %353 = tpu.matmul %350, %9, %cst_130 {dimension_numbers = #tpu.dot_dimension_numbers<[1], [0], [0], [1], [0, 0, 1, 1], [], []>} : vector<4x120xbf16>, vector<120x256xbf16>, vector<4x256xf32> -> vector<4x256xf32>
    %cst_131 = arith.constant dense<0.000000e+00> : vector<4x256xf32>
    %354 = tpu.matmul %351, %11, %cst_131 {dimension_numbers = #tpu.dot_dimension_numbers<[1], [0], [0], [1], [0, 0, 1, 1], [], []>} : vector<4x120xbf16>, vector<120x256xbf16>, vector<4x256xf32> -> vector<4x256xf32>
    %355 = arith.addf %353, %354 : vector<4x256xf32>
    %cst_132 = arith.constant dense<0.000000e+00> : vector<4x256xf32>
    %356 = tpu.matmul %351, %9, %cst_132 {dimension_numbers = #tpu.dot_dimension_numbers<[1], [0], [0], [1], [0, 0, 1, 1], [], []>} : vector<4x120xbf16>, vector<120x256xbf16>, vector<4x256xf32> -> vector<4x256xf32>
    %cst_133 = arith.constant dense<0.000000e+00> : vector<4x256xf32>
    %357 = tpu.matmul %352, %11, %cst_133 {dimension_numbers = #tpu.dot_dimension_numbers<[1], [0], [0], [1], [0, 0, 1, 1], [], []>} : vector<4x120xbf16>, vector<120x256xbf16>, vector<4x256xf32> -> vector<4x256xf32>
    %358 = arith.addf %356, %357 : vector<4x256xf32>
    %359 = vector.broadcast %13 : vector<1x256xf32> to vector<4x256xf32>
    %360 = arith.addf %355, %359 : vector<4x256xf32>
    %cst_134 = arith.constant 0.000000e+00 : f32
    %361 = vector.broadcast %cst_134 : f32 to vector<4x256xf32>
    %362 = arith.cmpf ogt, %360, %361 : vector<4x256xf32>
    %cst_135 = arith.constant 0.000000e+00 : f32
    %363 = vector.broadcast %cst_135 : f32 to vector<4x256xf32>
    %364 = arith.minimumf %360, %363 : vector<4x256xf32>
    %365 = math.exp %364 : vector<4x256xf32>
    %cst_136 = arith.constant 1.000000e+00 : f32
    %366 = vector.broadcast %cst_136 : f32 to vector<4x256xf32>
    %367 = arith.subf %365, %366 : vector<4x256xf32>
    %368 = arith.select %362, %360, %367 : vector<4x256xi1>, vector<4x256xf32>
    %369 = vector.broadcast %14 : vector<1x256xf32> to vector<4x256xf32>
    %370 = arith.mulf %368, %369 : vector<4x256xf32>
    %371 = vector.broadcast %15 : vector<1x256xf32> to vector<4x256xf32>
    %372 = arith.addf %370, %371 : vector<4x256xf32>
    %373 = vector.broadcast %13 : vector<1x256xf32> to vector<4x256xf32>
    %374 = arith.addf %358, %373 : vector<4x256xf32>
    %cst_137 = arith.constant 0.000000e+00 : f32
    %375 = vector.broadcast %cst_137 : f32 to vector<4x256xf32>
    %376 = arith.cmpf ogt, %374, %375 : vector<4x256xf32>
    %cst_138 = arith.constant 0.000000e+00 : f32
    %377 = vector.broadcast %cst_138 : f32 to vector<4x256xf32>
    %378 = arith.minimumf %374, %377 : vector<4x256xf32>
    %379 = math.exp %378 : vector<4x256xf32>
    %cst_139 = arith.constant 1.000000e+00 : f32
    %380 = vector.broadcast %cst_139 : f32 to vector<4x256xf32>
    %381 = arith.subf %379, %380 : vector<4x256xf32>
    %382 = arith.select %376, %374, %381 : vector<4x256xi1>, vector<4x256xf32>
    %383 = vector.broadcast %14 : vector<1x256xf32> to vector<4x256xf32>
    %384 = arith.mulf %382, %383 : vector<4x256xf32>
    %385 = vector.broadcast %15 : vector<1x256xf32> to vector<4x256xf32>
    %386 = arith.addf %384, %385 : vector<4x256xf32>
    %387 = arith.maximumf %372, %386 : vector<4x256xf32>
    %388 = vector.extract_strided_slice %387 {offsets = [0, 0], sizes = [4, 128], strides = [1, 1]} : vector<4x256xf32> to vector<4x128xf32>
    %389 = vector.extract_strided_slice %387 {offsets = [0, 128], sizes = [4, 128], strides = [1, 1]} : vector<4x256xf32> to vector<4x128xf32>
    %390 = arith.maximumf %388, %389 : vector<4x128xf32>
    %391 = vector.extract_strided_slice %390 {offsets = [0, 0], sizes = [1, 128], strides = [1, 1]} : vector<4x128xf32> to vector<1x128xf32>
    %392 = vector.shape_cast %391 : vector<1x128xf32> to vector<128xf32>
    %c0_140 = arith.constant 0 : index
    %c4_141 = arith.constant 4 : index
    %c0_142 = arith.constant 0 : index
    %393 = vector.load %arg11[%c0_140, %c4_141, %c0_142] : memref<4x8x128xf32, #tpu.memory_space<vmem>>, vector<1x1x128xf32>
    %394 = vector.shape_cast %393 : vector<1x1x128xf32> to vector<128xf32>
    %395 = vector.shape_cast %392 : vector<128xf32> to vector<1x1x128xf32>
    tpu.vector_store %arg11[%c0_140, %c4_141, %c0_142], %395 {strides = array<i32>} : memref<4x8x128xf32, #tpu.memory_space<vmem>>, vector<1x1x128xf32>,
    %396 = vector.extract_strided_slice %390 {offsets = [1, 0], sizes = [1, 128], strides = [1, 1]} : vector<4x128xf32> to vector<1x128xf32>
    %397 = vector.shape_cast %396 : vector<1x128xf32> to vector<128xf32>
    %c1_143 = arith.constant 1 : index
    %c4_144 = arith.constant 4 : index
    %c0_145 = arith.constant 0 : index
    %398 = vector.load %arg11[%c1_143, %c4_144, %c0_145] : memref<4x8x128xf32, #tpu.memory_space<vmem>>, vector<1x1x128xf32>
    %399 = vector.shape_cast %398 : vector<1x1x128xf32> to vector<128xf32>
    %400 = vector.shape_cast %397 : vector<128xf32> to vector<1x1x128xf32>
    tpu.vector_store %arg11[%c1_143, %c4_144, %c0_145], %400 {strides = array<i32>} : memref<4x8x128xf32, #tpu.memory_space<vmem>>, vector<1x1x128xf32>,
    %401 = vector.extract_strided_slice %390 {offsets = [2, 0], sizes = [1, 128], strides = [1, 1]} : vector<4x128xf32> to vector<1x128xf32>
    %402 = vector.shape_cast %401 : vector<1x128xf32> to vector<128xf32>
    %c2_146 = arith.constant 2 : index
    %c4_147 = arith.constant 4 : index
    %c0_148 = arith.constant 0 : index
    %403 = vector.load %arg11[%c2_146, %c4_147, %c0_148] : memref<4x8x128xf32, #tpu.memory_space<vmem>>, vector<1x1x128xf32>
    %404 = vector.shape_cast %403 : vector<1x1x128xf32> to vector<128xf32>
    %405 = vector.shape_cast %402 : vector<128xf32> to vector<1x1x128xf32>
    tpu.vector_store %arg11[%c2_146, %c4_147, %c0_148], %405 {strides = array<i32>} : memref<4x8x128xf32, #tpu.memory_space<vmem>>, vector<1x1x128xf32>,
    %406 = vector.extract_strided_slice %390 {offsets = [3, 0], sizes = [1, 128], strides = [1, 1]} : vector<4x128xf32> to vector<1x128xf32>
    %407 = vector.shape_cast %406 : vector<1x128xf32> to vector<128xf32>
    %c3_149 = arith.constant 3 : index
    %c4_150 = arith.constant 4 : index
    %c0_151 = arith.constant 0 : index
    %408 = vector.load %arg11[%c3_149, %c4_150, %c0_151] : memref<4x8x128xf32, #tpu.memory_space<vmem>>, vector<1x1x128xf32>
    %409 = vector.shape_cast %408 : vector<1x1x128xf32> to vector<128xf32>
    %410 = vector.shape_cast %407 : vector<128xf32> to vector<1x1x128xf32>
    tpu.vector_store %arg11[%c3_149, %c4_150, %c0_151], %410 {strides = array<i32>} : memref<4x8x128xf32, #tpu.memory_space<vmem>>, vector<1x1x128xf32>,
    %c5 = arith.constant 5 : index
    %c0_152 = arith.constant 0 : index
    %c0_153 = arith.constant 0 : index
    %411 = vector.load %arg1[%c5, %c0_152, %c0_153] : memref<8x64x120xbf16, #tpu.memory_space<vmem>>, vector<1x64x120xbf16>
    %412 = vector.shape_cast %411 : vector<1x64x120xbf16> to vector<64x120xbf16>
    %cst_154 = arith.constant dense<0.000000e+00> : vector<12x120xf32>
    %413 = tpu.matmul %0, %412, %cst_154 {dimension_numbers = #tpu.dot_dimension_numbers<[1], [0], [0], [1], [0, 0, 1, 1], [], []>} : vector<12x64xbf16>, vector<64x120xbf16>, vector<12x120xf32> -> vector<12x120xf32>
    %414 = vector.broadcast %3 : vector<12x1xf32> to vector<12x120xf32>
    %415 = arith.addf %413, %414 : vector<12x120xf32>
    %cst_155 = arith.constant 0.000000e+00 : f32
    %416 = vector.broadcast %cst_155 : f32 to vector<12x120xf32>
    %417 = arith.cmpf ogt, %415, %416 : vector<12x120xf32>
    %cst_156 = arith.constant 0.000000e+00 : f32
    %418 = vector.broadcast %cst_156 : f32 to vector<12x120xf32>
    %419 = arith.minimumf %415, %418 : vector<12x120xf32>
    %420 = math.exp %419 : vector<12x120xf32>
    %cst_157 = arith.constant 1.000000e+00 : f32
    %421 = vector.broadcast %cst_157 : f32 to vector<12x120xf32>
    %422 = arith.subf %420, %421 : vector<12x120xf32>
    %423 = arith.select %417, %415, %422 : vector<12x120xi1>, vector<12x120xf32>
    %424 = vector.broadcast %5 : vector<12x1xf32> to vector<12x120xf32>
    %425 = arith.mulf %423, %424 : vector<12x120xf32>
    %426 = vector.broadcast %7 : vector<12x1xf32> to vector<12x120xf32>
    %427 = arith.addf %425, %426 : vector<12x120xf32>
    %428 = arith.truncf %427 : vector<12x120xf32> to vector<12x120xbf16>
    %429 = vector.extract_strided_slice %428 {offsets = [0, 0], sizes = [4, 120], strides = [1, 1]} : vector<12x120xbf16> to vector<4x120xbf16>
    %430 = vector.extract_strided_slice %428 {offsets = [4, 0], sizes = [4, 120], strides = [1, 1]} : vector<12x120xbf16> to vector<4x120xbf16>
    %431 = vector.extract_strided_slice %428 {offsets = [8, 0], sizes = [4, 120], strides = [1, 1]} : vector<12x120xbf16> to vector<4x120xbf16>
    %cst_158 = arith.constant dense<0.000000e+00> : vector<4x256xf32>
    %432 = tpu.matmul %429, %9, %cst_158 {dimension_numbers = #tpu.dot_dimension_numbers<[1], [0], [0], [1], [0, 0, 1, 1], [], []>} : vector<4x120xbf16>, vector<120x256xbf16>, vector<4x256xf32> -> vector<4x256xf32>
    %cst_159 = arith.constant dense<0.000000e+00> : vector<4x256xf32>
    %433 = tpu.matmul %430, %11, %cst_159 {dimension_numbers = #tpu.dot_dimension_numbers<[1], [0], [0], [1], [0, 0, 1, 1], [], []>} : vector<4x120xbf16>, vector<120x256xbf16>, vector<4x256xf32> -> vector<4x256xf32>
    %434 = arith.addf %432, %433 : vector<4x256xf32>
    %cst_160 = arith.constant dense<0.000000e+00> : vector<4x256xf32>
    %435 = tpu.matmul %430, %9, %cst_160 {dimension_numbers = #tpu.dot_dimension_numbers<[1], [0], [0], [1], [0, 0, 1, 1], [], []>} : vector<4x120xbf16>, vector<120x256xbf16>, vector<4x256xf32> -> vector<4x256xf32>
    %cst_161 = arith.constant dense<0.000000e+00> : vector<4x256xf32>
    %436 = tpu.matmul %431, %11, %cst_161 {dimension_numbers = #tpu.dot_dimension_numbers<[1], [0], [0], [1], [0, 0, 1, 1], [], []>} : vector<4x120xbf16>, vector<120x256xbf16>, vector<4x256xf32> -> vector<4x256xf32>
    %437 = arith.addf %435, %436 : vector<4x256xf32>
    %438 = vector.broadcast %13 : vector<1x256xf32> to vector<4x256xf32>
    %439 = arith.addf %434, %438 : vector<4x256xf32>
    %cst_162 = arith.constant 0.000000e+00 : f32
    %440 = vector.broadcast %cst_162 : f32 to vector<4x256xf32>
    %441 = arith.cmpf ogt, %439, %440 : vector<4x256xf32>
    %cst_163 = arith.constant 0.000000e+00 : f32
    %442 = vector.broadcast %cst_163 : f32 to vector<4x256xf32>
    %443 = arith.minimumf %439, %442 : vector<4x256xf32>
    %444 = math.exp %443 : vector<4x256xf32>
    %cst_164 = arith.constant 1.000000e+00 : f32
    %445 = vector.broadcast %cst_164 : f32 to vector<4x256xf32>
    %446 = arith.subf %444, %445 : vector<4x256xf32>
    %447 = arith.select %441, %439, %446 : vector<4x256xi1>, vector<4x256xf32>
    %448 = vector.broadcast %14 : vector<1x256xf32> to vector<4x256xf32>
    %449 = arith.mulf %447, %448 : vector<4x256xf32>
    %450 = vector.broadcast %15 : vector<1x256xf32> to vector<4x256xf32>
    %451 = arith.addf %449, %450 : vector<4x256xf32>
    %452 = vector.broadcast %13 : vector<1x256xf32> to vector<4x256xf32>
    %453 = arith.addf %437, %452 : vector<4x256xf32>
    %cst_165 = arith.constant 0.000000e+00 : f32
    %454 = vector.broadcast %cst_165 : f32 to vector<4x256xf32>
    %455 = arith.cmpf ogt, %453, %454 : vector<4x256xf32>
    %cst_166 = arith.constant 0.000000e+00 : f32
    %456 = vector.broadcast %cst_166 : f32 to vector<4x256xf32>
    %457 = arith.minimumf %453, %456 : vector<4x256xf32>
    %458 = math.exp %457 : vector<4x256xf32>
    %cst_167 = arith.constant 1.000000e+00 : f32
    %459 = vector.broadcast %cst_167 : f32 to vector<4x256xf32>
    %460 = arith.subf %458, %459 : vector<4x256xf32>
    %461 = arith.select %455, %453, %460 : vector<4x256xi1>, vector<4x256xf32>
    %462 = vector.broadcast %14 : vector<1x256xf32> to vector<4x256xf32>
    %463 = arith.mulf %461, %462 : vector<4x256xf32>
    %464 = vector.broadcast %15 : vector<1x256xf32> to vector<4x256xf32>
    %465 = arith.addf %463, %464 : vector<4x256xf32>
    %466 = arith.maximumf %451, %465 : vector<4x256xf32>
    %467 = vector.extract_strided_slice %466 {offsets = [0, 0], sizes = [4, 128], strides = [1, 1]} : vector<4x256xf32> to vector<4x128xf32>
    %468 = vector.extract_strided_slice %466 {offsets = [0, 128], sizes = [4, 128], strides = [1, 1]} : vector<4x256xf32> to vector<4x128xf32>
    %469 = arith.maximumf %467, %468 : vector<4x128xf32>
    %470 = vector.extract_strided_slice %469 {offsets = [0, 0], sizes = [1, 128], strides = [1, 1]} : vector<4x128xf32> to vector<1x128xf32>
    %471 = vector.shape_cast %470 : vector<1x128xf32> to vector<128xf32>
    %c0_168 = arith.constant 0 : index
    %c5_169 = arith.constant 5 : index
    %c0_170 = arith.constant 0 : index
    %472 = vector.load %arg11[%c0_168, %c5_169, %c0_170] : memref<4x8x128xf32, #tpu.memory_space<vmem>>, vector<1x1x128xf32>
    %473 = vector.shape_cast %472 : vector<1x1x128xf32> to vector<128xf32>
    %474 = vector.shape_cast %471 : vector<128xf32> to vector<1x1x128xf32>
    tpu.vector_store %arg11[%c0_168, %c5_169, %c0_170], %474 {strides = array<i32>} : memref<4x8x128xf32, #tpu.memory_space<vmem>>, vector<1x1x128xf32>,
    %475 = vector.extract_strided_slice %469 {offsets = [1, 0], sizes = [1, 128], strides = [1, 1]} : vector<4x128xf32> to vector<1x128xf32>
    %476 = vector.shape_cast %475 : vector<1x128xf32> to vector<128xf32>
    %c1_171 = arith.constant 1 : index
    %c5_172 = arith.constant 5 : index
    %c0_173 = arith.constant 0 : index
    %477 = vector.load %arg11[%c1_171, %c5_172, %c0_173] : memref<4x8x128xf32, #tpu.memory_space<vmem>>, vector<1x1x128xf32>
    %478 = vector.shape_cast %477 : vector<1x1x128xf32> to vector<128xf32>
    %479 = vector.shape_cast %476 : vector<128xf32> to vector<1x1x128xf32>
    tpu.vector_store %arg11[%c1_171, %c5_172, %c0_173], %479 {strides = array<i32>} : memref<4x8x128xf32, #tpu.memory_space<vmem>>, vector<1x1x128xf32>,
    %480 = vector.extract_strided_slice %469 {offsets = [2, 0], sizes = [1, 128], strides = [1, 1]} : vector<4x128xf32> to vector<1x128xf32>
    %481 = vector.shape_cast %480 : vector<1x128xf32> to vector<128xf32>
    %c2_174 = arith.constant 2 : index
    %c5_175 = arith.constant 5 : index
    %c0_176 = arith.constant 0 : index
    %482 = vector.load %arg11[%c2_174, %c5_175, %c0_176] : memref<4x8x128xf32, #tpu.memory_space<vmem>>, vector<1x1x128xf32>
    %483 = vector.shape_cast %482 : vector<1x1x128xf32> to vector<128xf32>
    %484 = vector.shape_cast %481 : vector<128xf32> to vector<1x1x128xf32>
    tpu.vector_store %arg11[%c2_174, %c5_175, %c0_176], %484 {strides = array<i32>} : memref<4x8x128xf32, #tpu.memory_space<vmem>>, vector<1x1x128xf32>,
    %485 = vector.extract_strided_slice %469 {offsets = [3, 0], sizes = [1, 128], strides = [1, 1]} : vector<4x128xf32> to vector<1x128xf32>
    %486 = vector.shape_cast %485 : vector<1x128xf32> to vector<128xf32>
    %c3_177 = arith.constant 3 : index
    %c5_178 = arith.constant 5 : index
    %c0_179 = arith.constant 0 : index
    %487 = vector.load %arg11[%c3_177, %c5_178, %c0_179] : memref<4x8x128xf32, #tpu.memory_space<vmem>>, vector<1x1x128xf32>
    %488 = vector.shape_cast %487 : vector<1x1x128xf32> to vector<128xf32>
    %489 = vector.shape_cast %486 : vector<128xf32> to vector<1x1x128xf32>
    tpu.vector_store %arg11[%c3_177, %c5_178, %c0_179], %489 {strides = array<i32>} : memref<4x8x128xf32, #tpu.memory_space<vmem>>, vector<1x1x128xf32>,
    %c6 = arith.constant 6 : index
    %c0_180 = arith.constant 0 : index
    %c0_181 = arith.constant 0 : index
    %490 = vector.load %arg1[%c6, %c0_180, %c0_181] : memref<8x64x120xbf16, #tpu.memory_space<vmem>>, vector<1x64x120xbf16>
    %491 = vector.shape_cast %490 : vector<1x64x120xbf16> to vector<64x120xbf16>
    %cst_182 = arith.constant dense<0.000000e+00> : vector<12x120xf32>
    %492 = tpu.matmul %0, %491, %cst_182 {dimension_numbers = #tpu.dot_dimension_numbers<[1], [0], [0], [1], [0, 0, 1, 1], [], []>} : vector<12x64xbf16>, vector<64x120xbf16>, vector<12x120xf32> -> vector<12x120xf32>
    %493 = vector.broadcast %3 : vector<12x1xf32> to vector<12x120xf32>
    %494 = arith.addf %492, %493 : vector<12x120xf32>
    %cst_183 = arith.constant 0.000000e+00 : f32
    %495 = vector.broadcast %cst_183 : f32 to vector<12x120xf32>
    %496 = arith.cmpf ogt, %494, %495 : vector<12x120xf32>
    %cst_184 = arith.constant 0.000000e+00 : f32
    %497 = vector.broadcast %cst_184 : f32 to vector<12x120xf32>
    %498 = arith.minimumf %494, %497 : vector<12x120xf32>
    %499 = math.exp %498 : vector<12x120xf32>
    %cst_185 = arith.constant 1.000000e+00 : f32
    %500 = vector.broadcast %cst_185 : f32 to vector<12x120xf32>
    %501 = arith.subf %499, %500 : vector<12x120xf32>
    %502 = arith.select %496, %494, %501 : vector<12x120xi1>, vector<12x120xf32>
    %503 = vector.broadcast %5 : vector<12x1xf32> to vector<12x120xf32>
    %504 = arith.mulf %502, %503 : vector<12x120xf32>
    %505 = vector.broadcast %7 : vector<12x1xf32> to vector<12x120xf32>
    %506 = arith.addf %504, %505 : vector<12x120xf32>
    %507 = arith.truncf %506 : vector<12x120xf32> to vector<12x120xbf16>
    %508 = vector.extract_strided_slice %507 {offsets = [0, 0], sizes = [4, 120], strides = [1, 1]} : vector<12x120xbf16> to vector<4x120xbf16>
    %509 = vector.extract_strided_slice %507 {offsets = [4, 0], sizes = [4, 120], strides = [1, 1]} : vector<12x120xbf16> to vector<4x120xbf16>
    %510 = vector.extract_strided_slice %507 {offsets = [8, 0], sizes = [4, 120], strides = [1, 1]} : vector<12x120xbf16> to vector<4x120xbf16>
    %cst_186 = arith.constant dense<0.000000e+00> : vector<4x256xf32>
    %511 = tpu.matmul %508, %9, %cst_186 {dimension_numbers = #tpu.dot_dimension_numbers<[1], [0], [0], [1], [0, 0, 1, 1], [], []>} : vector<4x120xbf16>, vector<120x256xbf16>, vector<4x256xf32> -> vector<4x256xf32>
    %cst_187 = arith.constant dense<0.000000e+00> : vector<4x256xf32>
    %512 = tpu.matmul %509, %11, %cst_187 {dimension_numbers = #tpu.dot_dimension_numbers<[1], [0], [0], [1], [0, 0, 1, 1], [], []>} : vector<4x120xbf16>, vector<120x256xbf16>, vector<4x256xf32> -> vector<4x256xf32>
    %513 = arith.addf %511, %512 : vector<4x256xf32>
    %cst_188 = arith.constant dense<0.000000e+00> : vector<4x256xf32>
    %514 = tpu.matmul %509, %9, %cst_188 {dimension_numbers = #tpu.dot_dimension_numbers<[1], [0], [0], [1], [0, 0, 1, 1], [], []>} : vector<4x120xbf16>, vector<120x256xbf16>, vector<4x256xf32> -> vector<4x256xf32>
    %cst_189 = arith.constant dense<0.000000e+00> : vector<4x256xf32>
    %515 = tpu.matmul %510, %11, %cst_189 {dimension_numbers = #tpu.dot_dimension_numbers<[1], [0], [0], [1], [0, 0, 1, 1], [], []>} : vector<4x120xbf16>, vector<120x256xbf16>, vector<4x256xf32> -> vector<4x256xf32>
    %516 = arith.addf %514, %515 : vector<4x256xf32>
    %517 = vector.broadcast %13 : vector<1x256xf32> to vector<4x256xf32>
    %518 = arith.addf %513, %517 : vector<4x256xf32>
    %cst_190 = arith.constant 0.000000e+00 : f32
    %519 = vector.broadcast %cst_190 : f32 to vector<4x256xf32>
    %520 = arith.cmpf ogt, %518, %519 : vector<4x256xf32>
    %cst_191 = arith.constant 0.000000e+00 : f32
    %521 = vector.broadcast %cst_191 : f32 to vector<4x256xf32>
    %522 = arith.minimumf %518, %521 : vector<4x256xf32>
    %523 = math.exp %522 : vector<4x256xf32>
    %cst_192 = arith.constant 1.000000e+00 : f32
    %524 = vector.broadcast %cst_192 : f32 to vector<4x256xf32>
    %525 = arith.subf %523, %524 : vector<4x256xf32>
    %526 = arith.select %520, %518, %525 : vector<4x256xi1>, vector<4x256xf32>
    %527 = vector.broadcast %14 : vector<1x256xf32> to vector<4x256xf32>
    %528 = arith.mulf %526, %527 : vector<4x256xf32>
    %529 = vector.broadcast %15 : vector<1x256xf32> to vector<4x256xf32>
    %530 = arith.addf %528, %529 : vector<4x256xf32>
    %531 = vector.broadcast %13 : vector<1x256xf32> to vector<4x256xf32>
    %532 = arith.addf %516, %531 : vector<4x256xf32>
    %cst_193 = arith.constant 0.000000e+00 : f32
    %533 = vector.broadcast %cst_193 : f32 to vector<4x256xf32>
    %534 = arith.cmpf ogt, %532, %533 : vector<4x256xf32>
    %cst_194 = arith.constant 0.000000e+00 : f32
    %535 = vector.broadcast %cst_194 : f32 to vector<4x256xf32>
    %536 = arith.minimumf %532, %535 : vector<4x256xf32>
    %537 = math.exp %536 : vector<4x256xf32>
    %cst_195 = arith.constant 1.000000e+00 : f32
    %538 = vector.broadcast %cst_195 : f32 to vector<4x256xf32>
    %539 = arith.subf %537, %538 : vector<4x256xf32>
    %540 = arith.select %534, %532, %539 : vector<4x256xi1>, vector<4x256xf32>
    %541 = vector.broadcast %14 : vector<1x256xf32> to vector<4x256xf32>
    %542 = arith.mulf %540, %541 : vector<4x256xf32>
    %543 = vector.broadcast %15 : vector<1x256xf32> to vector<4x256xf32>
    %544 = arith.addf %542, %543 : vector<4x256xf32>
    %545 = arith.maximumf %530, %544 : vector<4x256xf32>
    %546 = vector.extract_strided_slice %545 {offsets = [0, 0], sizes = [4, 128], strides = [1, 1]} : vector<4x256xf32> to vector<4x128xf32>
    %547 = vector.extract_strided_slice %545 {offsets = [0, 128], sizes = [4, 128], strides = [1, 1]} : vector<4x256xf32> to vector<4x128xf32>
    %548 = arith.maximumf %546, %547 : vector<4x128xf32>
    %549 = vector.extract_strided_slice %548 {offsets = [0, 0], sizes = [1, 128], strides = [1, 1]} : vector<4x128xf32> to vector<1x128xf32>
    %550 = vector.shape_cast %549 : vector<1x128xf32> to vector<128xf32>
    %c0_196 = arith.constant 0 : index
    %c6_197 = arith.constant 6 : index
    %c0_198 = arith.constant 0 : index
    %551 = vector.load %arg11[%c0_196, %c6_197, %c0_198] : memref<4x8x128xf32, #tpu.memory_space<vmem>>, vector<1x1x128xf32>
    %552 = vector.shape_cast %551 : vector<1x1x128xf32> to vector<128xf32>
    %553 = vector.shape_cast %550 : vector<128xf32> to vector<1x1x128xf32>
    tpu.vector_store %arg11[%c0_196, %c6_197, %c0_198], %553 {strides = array<i32>} : memref<4x8x128xf32, #tpu.memory_space<vmem>>, vector<1x1x128xf32>,
    %554 = vector.extract_strided_slice %548 {offsets = [1, 0], sizes = [1, 128], strides = [1, 1]} : vector<4x128xf32> to vector<1x128xf32>
    %555 = vector.shape_cast %554 : vector<1x128xf32> to vector<128xf32>
    %c1_199 = arith.constant 1 : index
    %c6_200 = arith.constant 6 : index
    %c0_201 = arith.constant 0 : index
    %556 = vector.load %arg11[%c1_199, %c6_200, %c0_201] : memref<4x8x128xf32, #tpu.memory_space<vmem>>, vector<1x1x128xf32>
    %557 = vector.shape_cast %556 : vector<1x1x128xf32> to vector<128xf32>
    %558 = vector.shape_cast %555 : vector<128xf32> to vector<1x1x128xf32>
    tpu.vector_store %arg11[%c1_199, %c6_200, %c0_201], %558 {strides = array<i32>} : memref<4x8x128xf32, #tpu.memory_space<vmem>>, vector<1x1x128xf32>,
    %559 = vector.extract_strided_slice %548 {offsets = [2, 0], sizes = [1, 128], strides = [1, 1]} : vector<4x128xf32> to vector<1x128xf32>
    %560 = vector.shape_cast %559 : vector<1x128xf32> to vector<128xf32>
    %c2_202 = arith.constant 2 : index
    %c6_203 = arith.constant 6 : index
    %c0_204 = arith.constant 0 : index
    %561 = vector.load %arg11[%c2_202, %c6_203, %c0_204] : memref<4x8x128xf32, #tpu.memory_space<vmem>>, vector<1x1x128xf32>
    %562 = vector.shape_cast %561 : vector<1x1x128xf32> to vector<128xf32>
    %563 = vector.shape_cast %560 : vector<128xf32> to vector<1x1x128xf32>
    tpu.vector_store %arg11[%c2_202, %c6_203, %c0_204], %563 {strides = array<i32>} : memref<4x8x128xf32, #tpu.memory_space<vmem>>, vector<1x1x128xf32>,
    %564 = vector.extract_strided_slice %548 {offsets = [3, 0], sizes = [1, 128], strides = [1, 1]} : vector<4x128xf32> to vector<1x128xf32>
    %565 = vector.shape_cast %564 : vector<1x128xf32> to vector<128xf32>
    %c3_205 = arith.constant 3 : index
    %c6_206 = arith.constant 6 : index
    %c0_207 = arith.constant 0 : index
    %566 = vector.load %arg11[%c3_205, %c6_206, %c0_207] : memref<4x8x128xf32, #tpu.memory_space<vmem>>, vector<1x1x128xf32>
    %567 = vector.shape_cast %566 : vector<1x1x128xf32> to vector<128xf32>
    %568 = vector.shape_cast %565 : vector<128xf32> to vector<1x1x128xf32>
    tpu.vector_store %arg11[%c3_205, %c6_206, %c0_207], %568 {strides = array<i32>} : memref<4x8x128xf32, #tpu.memory_space<vmem>>, vector<1x1x128xf32>,
    %c7 = arith.constant 7 : index
    %c0_208 = arith.constant 0 : index
    %c0_209 = arith.constant 0 : index
    %569 = vector.load %arg1[%c7, %c0_208, %c0_209] : memref<8x64x120xbf16, #tpu.memory_space<vmem>>, vector<1x64x120xbf16>
    %570 = vector.shape_cast %569 : vector<1x64x120xbf16> to vector<64x120xbf16>
    %cst_210 = arith.constant dense<0.000000e+00> : vector<12x120xf32>
    %571 = tpu.matmul %0, %570, %cst_210 {dimension_numbers = #tpu.dot_dimension_numbers<[1], [0], [0], [1], [0, 0, 1, 1], [], []>} : vector<12x64xbf16>, vector<64x120xbf16>, vector<12x120xf32> -> vector<12x120xf32>
    %572 = vector.broadcast %3 : vector<12x1xf32> to vector<12x120xf32>
    %573 = arith.addf %571, %572 : vector<12x120xf32>
    %cst_211 = arith.constant 0.000000e+00 : f32
    %574 = vector.broadcast %cst_211 : f32 to vector<12x120xf32>
    %575 = arith.cmpf ogt, %573, %574 : vector<12x120xf32>
    %cst_212 = arith.constant 0.000000e+00 : f32
    %576 = vector.broadcast %cst_212 : f32 to vector<12x120xf32>
    %577 = arith.minimumf %573, %576 : vector<12x120xf32>
    %578 = math.exp %577 : vector<12x120xf32>
    %cst_213 = arith.constant 1.000000e+00 : f32
    %579 = vector.broadcast %cst_213 : f32 to vector<12x120xf32>
    %580 = arith.subf %578, %579 : vector<12x120xf32>
    %581 = arith.select %575, %573, %580 : vector<12x120xi1>, vector<12x120xf32>
    %582 = vector.broadcast %5 : vector<12x1xf32> to vector<12x120xf32>
    %583 = arith.mulf %581, %582 : vector<12x120xf32>
    %584 = vector.broadcast %7 : vector<12x1xf32> to vector<12x120xf32>
    %585 = arith.addf %583, %584 : vector<12x120xf32>
    %586 = arith.truncf %585 : vector<12x120xf32> to vector<12x120xbf16>
    %587 = vector.extract_strided_slice %586 {offsets = [0, 0], sizes = [4, 120], strides = [1, 1]} : vector<12x120xbf16> to vector<4x120xbf16>
    %588 = vector.extract_strided_slice %586 {offsets = [4, 0], sizes = [4, 120], strides = [1, 1]} : vector<12x120xbf16> to vector<4x120xbf16>
    %589 = vector.extract_strided_slice %586 {offsets = [8, 0], sizes = [4, 120], strides = [1, 1]} : vector<12x120xbf16> to vector<4x120xbf16>
    %cst_214 = arith.constant dense<0.000000e+00> : vector<4x256xf32>
    %590 = tpu.matmul %587, %9, %cst_214 {dimension_numbers = #tpu.dot_dimension_numbers<[1], [0], [0], [1], [0, 0, 1, 1], [], []>} : vector<4x120xbf16>, vector<120x256xbf16>, vector<4x256xf32> -> vector<4x256xf32>
    %cst_215 = arith.constant dense<0.000000e+00> : vector<4x256xf32>
    %591 = tpu.matmul %588, %11, %cst_215 {dimension_numbers = #tpu.dot_dimension_numbers<[1], [0], [0], [1], [0, 0, 1, 1], [], []>} : vector<4x120xbf16>, vector<120x256xbf16>, vector<4x256xf32> -> vector<4x256xf32>
    %592 = arith.addf %590, %591 : vector<4x256xf32>
    %cst_216 = arith.constant dense<0.000000e+00> : vector<4x256xf32>
    %593 = tpu.matmul %588, %9, %cst_216 {dimension_numbers = #tpu.dot_dimension_numbers<[1], [0], [0], [1], [0, 0, 1, 1], [], []>} : vector<4x120xbf16>, vector<120x256xbf16>, vector<4x256xf32> -> vector<4x256xf32>
    %cst_217 = arith.constant dense<0.000000e+00> : vector<4x256xf32>
    %594 = tpu.matmul %589, %11, %cst_217 {dimension_numbers = #tpu.dot_dimension_numbers<[1], [0], [0], [1], [0, 0, 1, 1], [], []>} : vector<4x120xbf16>, vector<120x256xbf16>, vector<4x256xf32> -> vector<4x256xf32>
    %595 = arith.addf %593, %594 : vector<4x256xf32>
    %596 = vector.broadcast %13 : vector<1x256xf32> to vector<4x256xf32>
    %597 = arith.addf %592, %596 : vector<4x256xf32>
    %cst_218 = arith.constant 0.000000e+00 : f32
    %598 = vector.broadcast %cst_218 : f32 to vector<4x256xf32>
    %599 = arith.cmpf ogt, %597, %598 : vector<4x256xf32>
    %cst_219 = arith.constant 0.000000e+00 : f32
    %600 = vector.broadcast %cst_219 : f32 to vector<4x256xf32>
    %601 = arith.minimumf %597, %600 : vector<4x256xf32>
    %602 = math.exp %601 : vector<4x256xf32>
    %cst_220 = arith.constant 1.000000e+00 : f32
    %603 = vector.broadcast %cst_220 : f32 to vector<4x256xf32>
    %604 = arith.subf %602, %603 : vector<4x256xf32>
    %605 = arith.select %599, %597, %604 : vector<4x256xi1>, vector<4x256xf32>
    %606 = vector.broadcast %14 : vector<1x256xf32> to vector<4x256xf32>
    %607 = arith.mulf %605, %606 : vector<4x256xf32>
    %608 = vector.broadcast %15 : vector<1x256xf32> to vector<4x256xf32>
    %609 = arith.addf %607, %608 : vector<4x256xf32>
    %610 = vector.broadcast %13 : vector<1x256xf32> to vector<4x256xf32>
    %611 = arith.addf %595, %610 : vector<4x256xf32>
    %cst_221 = arith.constant 0.000000e+00 : f32
    %612 = vector.broadcast %cst_221 : f32 to vector<4x256xf32>
    %613 = arith.cmpf ogt, %611, %612 : vector<4x256xf32>
    %cst_222 = arith.constant 0.000000e+00 : f32
    %614 = vector.broadcast %cst_222 : f32 to vector<4x256xf32>
    %615 = arith.minimumf %611, %614 : vector<4x256xf32>
    %616 = math.exp %615 : vector<4x256xf32>
    %cst_223 = arith.constant 1.000000e+00 : f32
    %617 = vector.broadcast %cst_223 : f32 to vector<4x256xf32>
    %618 = arith.subf %616, %617 : vector<4x256xf32>
    %619 = arith.select %613, %611, %618 : vector<4x256xi1>, vector<4x256xf32>
    %620 = vector.broadcast %14 : vector<1x256xf32> to vector<4x256xf32>
    %621 = arith.mulf %619, %620 : vector<4x256xf32>
    %622 = vector.broadcast %15 : vector<1x256xf32> to vector<4x256xf32>
    %623 = arith.addf %621, %622 : vector<4x256xf32>
    %624 = arith.maximumf %609, %623 : vector<4x256xf32>
    %625 = vector.extract_strided_slice %624 {offsets = [0, 0], sizes = [4, 128], strides = [1, 1]} : vector<4x256xf32> to vector<4x128xf32>
    %626 = vector.extract_strided_slice %624 {offsets = [0, 128], sizes = [4, 128], strides = [1, 1]} : vector<4x256xf32> to vector<4x128xf32>
    %627 = arith.maximumf %625, %626 : vector<4x128xf32>
    %628 = vector.extract_strided_slice %627 {offsets = [0, 0], sizes = [1, 128], strides = [1, 1]} : vector<4x128xf32> to vector<1x128xf32>
    %629 = vector.shape_cast %628 : vector<1x128xf32> to vector<128xf32>
    %c0_224 = arith.constant 0 : index
    %c7_225 = arith.constant 7 : index
    %c0_226 = arith.constant 0 : index
    %630 = vector.load %arg11[%c0_224, %c7_225, %c0_226] : memref<4x8x128xf32, #tpu.memory_space<vmem>>, vector<1x1x128xf32>
    %631 = vector.shape_cast %630 : vector<1x1x128xf32> to vector<128xf32>
    %632 = vector.shape_cast %629 : vector<128xf32> to vector<1x1x128xf32>
    tpu.vector_store %arg11[%c0_224, %c7_225, %c0_226], %632 {strides = array<i32>} : memref<4x8x128xf32, #tpu.memory_space<vmem>>, vector<1x1x128xf32>,
    %633 = vector.extract_strided_slice %627 {offsets = [1, 0], sizes = [1, 128], strides = [1, 1]} : vector<4x128xf32> to vector<1x128xf32>
    %634 = vector.shape_cast %633 : vector<1x128xf32> to vector<128xf32>
    %c1_227 = arith.constant 1 : index
    %c7_228 = arith.constant 7 : index
    %c0_229 = arith.constant 0 : index
    %635 = vector.load %arg11[%c1_227, %c7_228, %c0_229] : memref<4x8x128xf32, #tpu.memory_space<vmem>>, vector<1x1x128xf32>
    %636 = vector.shape_cast %635 : vector<1x1x128xf32> to vector<128xf32>
    %637 = vector.shape_cast %634 : vector<128xf32> to vector<1x1x128xf32>
    tpu.vector_store %arg11[%c1_227, %c7_228, %c0_229], %637 {strides = array<i32>} : memref<4x8x128xf32, #tpu.memory_space<vmem>>, vector<1x1x128xf32>,
    %638 = vector.extract_strided_slice %627 {offsets = [2, 0], sizes = [1, 128], strides = [1, 1]} : vector<4x128xf32> to vector<1x128xf32>
    %639 = vector.shape_cast %638 : vector<1x128xf32> to vector<128xf32>
    %c2_230 = arith.constant 2 : index
    %c7_231 = arith.constant 7 : index
    %c0_232 = arith.constant 0 : index
    %640 = vector.load %arg11[%c2_230, %c7_231, %c0_232] : memref<4x8x128xf32, #tpu.memory_space<vmem>>, vector<1x1x128xf32>
    %641 = vector.shape_cast %640 : vector<1x1x128xf32> to vector<128xf32>
    %642 = vector.shape_cast %639 : vector<128xf32> to vector<1x1x128xf32>
    tpu.vector_store %arg11[%c2_230, %c7_231, %c0_232], %642 {strides = array<i32>} : memref<4x8x128xf32, #tpu.memory_space<vmem>>, vector<1x1x128xf32>,
    %643 = vector.extract_strided_slice %627 {offsets = [3, 0], sizes = [1, 128], strides = [1, 1]} : vector<4x128xf32> to vector<1x128xf32>
    %644 = vector.shape_cast %643 : vector<1x128xf32> to vector<128xf32>
    %c3_233 = arith.constant 3 : index
    %c7_234 = arith.constant 7 : index
    %c0_235 = arith.constant 0 : index
    %645 = vector.load %arg11[%c3_233, %c7_234, %c0_235] : memref<4x8x128xf32, #tpu.memory_space<vmem>>, vector<1x1x128xf32>
    %646 = vector.shape_cast %645 : vector<1x1x128xf32> to vector<128xf32>
    %647 = vector.shape_cast %644 : vector<128xf32> to vector<1x1x128xf32>
    tpu.vector_store %arg11[%c3_233, %c7_234, %c0_235], %647 {strides = array<i32>} : memref<4x8x128xf32, #tpu.memory_space<vmem>>, vector<1x1x128xf32>,
    %c0_236 = arith.constant 0 : index
    %c0_237 = arith.constant 0 : index
    %648 = vector.load %arg7[%c0_236, %c0_237] : memref<3x512xf32, #tpu.memory_space<vmem>>, vector<3x512xf32>
    %649 = vector.extract_strided_slice %648 {offsets = [0, 0], sizes = [1, 512], strides = [1, 1]} : vector<3x512xf32> to vector<1x512xf32>
    %650 = vector.extract_strided_slice %648 {offsets = [1, 0], sizes = [1, 512], strides = [1, 1]} : vector<3x512xf32> to vector<1x512xf32>
    %651 = vector.extract_strided_slice %648 {offsets = [2, 0], sizes = [1, 512], strides = [1, 1]} : vector<3x512xf32> to vector<1x512xf32>
    %cst_238 = arith.constant 0.000000e+00 : f32
    %652 = vector.broadcast %cst_238 : f32 to vector<8x512xf32>
    %c0_239 = arith.constant 0 : index
    %c0_240 = arith.constant 0 : index
    %c0_241 = arith.constant 0 : index
    %653 = vector.load %arg11[%c0_239, %c0_240, %c0_241] : memref<4x8x128xf32, #tpu.memory_space<vmem>>, vector<1x8x128xf32>
    %654 = vector.shape_cast %653 : vector<1x8x128xf32> to vector<8x128xf32>
    %655 = arith.truncf %654 : vector<8x128xf32> to vector<8x128xbf16>
    %c0_242 = arith.constant 0 : index
    %c0_243 = arith.constant 0 : index
    %c0_244 = arith.constant 0 : index
    %656 = vector.load %arg6[%c0_242, %c0_243, %c0_244] : memref<4x128x512xbf16, #tpu.memory_space<vmem>>, vector<1x128x512xbf16>
    %657 = vector.shape_cast %656 : vector<1x128x512xbf16> to vector<128x512xbf16>
    %cst_245 = arith.constant dense<0.000000e+00> : vector<8x512xf32>
    %658 = tpu.matmul %655, %657, %cst_245 {dimension_numbers = #tpu.dot_dimension_numbers<[1], [0], [0], [1], [0, 0, 1, 1], [], []>} : vector<8x128xbf16>, vector<128x512xbf16>, vector<8x512xf32> -> vector<8x512xf32>
    %659 = arith.addf %652, %658 : vector<8x512xf32>
    %c1_246 = arith.constant 1 : index
    %c0_247 = arith.constant 0 : index
    %c0_248 = arith.constant 0 : index
    %660 = vector.load %arg11[%c1_246, %c0_247, %c0_248] : memref<4x8x128xf32, #tpu.memory_space<vmem>>, vector<1x8x128xf32>
    %661 = vector.shape_cast %660 : vector<1x8x128xf32> to vector<8x128xf32>
    %662 = arith.truncf %661 : vector<8x128xf32> to vector<8x128xbf16>
    %c1_249 = arith.constant 1 : index
    %c0_250 = arith.constant 0 : index
    %c0_251 = arith.constant 0 : index
    %663 = vector.load %arg6[%c1_249, %c0_250, %c0_251] : memref<4x128x512xbf16, #tpu.memory_space<vmem>>, vector<1x128x512xbf16>
    %664 = vector.shape_cast %663 : vector<1x128x512xbf16> to vector<128x512xbf16>
    %cst_252 = arith.constant dense<0.000000e+00> : vector<8x512xf32>
    %665 = tpu.matmul %662, %664, %cst_252 {dimension_numbers = #tpu.dot_dimension_numbers<[1], [0], [0], [1], [0, 0, 1, 1], [], []>} : vector<8x128xbf16>, vector<128x512xbf16>, vector<8x512xf32> -> vector<8x512xf32>
    %666 = arith.addf %659, %665 : vector<8x512xf32>
    %c2_253 = arith.constant 2 : index
    %c0_254 = arith.constant 0 : index
    %c0_255 = arith.constant 0 : index
    %667 = vector.load %arg11[%c2_253, %c0_254, %c0_255] : memref<4x8x128xf32, #tpu.memory_space<vmem>>, vector<1x8x128xf32>
    %668 = vector.shape_cast %667 : vector<1x8x128xf32> to vector<8x128xf32>
    %669 = arith.truncf %668 : vector<8x128xf32> to vector<8x128xbf16>
    %c2_256 = arith.constant 2 : index
    %c0_257 = arith.constant 0 : index
    %c0_258 = arith.constant 0 : index
    %670 = vector.load %arg6[%c2_256, %c0_257, %c0_258] : memref<4x128x512xbf16, #tpu.memory_space<vmem>>, vector<1x128x512xbf16>
    %671 = vector.shape_cast %670 : vector<1x128x512xbf16> to vector<128x512xbf16>
    %cst_259 = arith.constant dense<0.000000e+00> : vector<8x512xf32>
    %672 = tpu.matmul %669, %671, %cst_259 {dimension_numbers = #tpu.dot_dimension_numbers<[1], [0], [0], [1], [0, 0, 1, 1], [], []>} : vector<8x128xbf16>, vector<128x512xbf16>, vector<8x512xf32> -> vector<8x512xf32>
    %673 = arith.addf %666, %672 : vector<8x512xf32>
    %c3_260 = arith.constant 3 : index
    %c0_261 = arith.constant 0 : index
    %c0_262 = arith.constant 0 : index
    %674 = vector.load %arg11[%c3_260, %c0_261, %c0_262] : memref<4x8x128xf32, #tpu.memory_space<vmem>>, vector<1x8x128xf32>
    %675 = vector.shape_cast %674 : vector<1x8x128xf32> to vector<8x128xf32>
    %676 = arith.truncf %675 : vector<8x128xf32> to vector<8x128xbf16>
    %c3_263 = arith.constant 3 : index
    %c0_264 = arith.constant 0 : index
    %c0_265 = arith.constant 0 : index
    %677 = vector.load %arg6[%c3_263, %c0_264, %c0_265] : memref<4x128x512xbf16, #tpu.memory_space<vmem>>, vector<1x128x512xbf16>
    %678 = vector.shape_cast %677 : vector<1x128x512xbf16> to vector<128x512xbf16>
    %cst_266 = arith.constant dense<0.000000e+00> : vector<8x512xf32>
    %679 = tpu.matmul %676, %678, %cst_266 {dimension_numbers = #tpu.dot_dimension_numbers<[1], [0], [0], [1], [0, 0, 1, 1], [], []>} : vector<8x128xbf16>, vector<128x512xbf16>, vector<8x512xf32> -> vector<8x512xf32>
    %680 = arith.addf %673, %679 : vector<8x512xf32>
    %681 = vector.broadcast %649 : vector<1x512xf32> to vector<8x512xf32>
    %682 = arith.addf %680, %681 : vector<8x512xf32>
    %cst_267 = arith.constant 0.000000e+00 : f32
    %683 = vector.broadcast %cst_267 : f32 to vector<8x512xf32>
    %684 = arith.cmpf ogt, %682, %683 : vector<8x512xf32>
    %cst_268 = arith.constant 0.000000e+00 : f32
    %685 = vector.broadcast %cst_268 : f32 to vector<8x512xf32>
    %686 = arith.minimumf %682, %685 : vector<8x512xf32>
    %687 = math.exp %686 : vector<8x512xf32>
    %cst_269 = arith.constant 1.000000e+00 : f32
    %688 = vector.broadcast %cst_269 : f32 to vector<8x512xf32>
    %689 = arith.subf %687, %688 : vector<8x512xf32>
    %690 = arith.select %684, %682, %689 : vector<8x512xi1>, vector<8x512xf32>
    %691 = vector.broadcast %650 : vector<1x512xf32> to vector<8x512xf32>
    %692 = arith.mulf %690, %691 : vector<8x512xf32>
    %693 = vector.broadcast %651 : vector<1x512xf32> to vector<8x512xf32>
    %694 = arith.addf %692, %693 : vector<8x512xf32>
    %695 = vector.extract_strided_slice %694 {offsets = [0, 0], sizes = [8, 64], strides = [1, 1]} : vector<8x512xf32> to vector<8x64xf32>
    %696 = vector.extract_strided_slice %694 {offsets = [0, 64], sizes = [8, 64], strides = [1, 1]} : vector<8x512xf32> to vector<8x64xf32>
    %697 = arith.maximumf %695, %696 : vector<8x64xf32>
    %698 = vector.extract_strided_slice %694 {offsets = [0, 128], sizes = [8, 64], strides = [1, 1]} : vector<8x512xf32> to vector<8x64xf32>
    %699 = arith.maximumf %697, %698 : vector<8x64xf32>
    %700 = vector.extract_strided_slice %694 {offsets = [0, 192], sizes = [8, 64], strides = [1, 1]} : vector<8x512xf32> to vector<8x64xf32>
    %701 = arith.maximumf %699, %700 : vector<8x64xf32>
    %702 = vector.extract_strided_slice %694 {offsets = [0, 256], sizes = [8, 64], strides = [1, 1]} : vector<8x512xf32> to vector<8x64xf32>
    %703 = arith.maximumf %701, %702 : vector<8x64xf32>
    %704 = vector.extract_strided_slice %694 {offsets = [0, 320], sizes = [8, 64], strides = [1, 1]} : vector<8x512xf32> to vector<8x64xf32>
    %705 = arith.maximumf %703, %704 : vector<8x64xf32>
    %706 = vector.extract_strided_slice %694 {offsets = [0, 384], sizes = [8, 64], strides = [1, 1]} : vector<8x512xf32> to vector<8x64xf32>
    %707 = arith.maximumf %705, %706 : vector<8x64xf32>
    %708 = vector.extract_strided_slice %694 {offsets = [0, 448], sizes = [8, 64], strides = [1, 1]} : vector<8x512xf32> to vector<8x64xf32>
    %709 = arith.maximumf %707, %708 : vector<8x64xf32>
    %c0_270 = arith.constant 0 : index
    %c0_271 = arith.constant 0 : index
    %710 = vector.load %arg8[%c0_270, %c0_271] : memref<1x64xf32, #tpu.memory_space<vmem>>, vector<1x64xf32>
    %711 = vector.broadcast %710 : vector<1x64xf32> to vector<8x64xf32>
    %712 = arith.mulf %709, %711 : vector<8x64xf32>
    %cst_272 = arith.constant dense<0.000000e+00> : vector<8xf32>
    %713 = vector.multi_reduction <add>, %712, %cst_272 [1] : vector<8x64xf32> to vector<8xf32>
    %714 = vector.shape_cast %713 : vector<8xf32> to vector<8x1xf32>
    %c0_273 = arith.constant 0 : index
    %c0_274 = arith.constant 0 : index
    %715 = vector.load %arg9[%c0_273, %c0_274] : memref<1x1xf32, #tpu.memory_space<vmem>>, vector<1x1xf32>
    %716 = vector.broadcast %715 : vector<1x1xf32> to vector<8x1xf32>
    %717 = arith.addf %714, %716 : vector<8x1xf32>
    %cst_275 = arith.constant 0.000000e+00 : f32
    %718 = vector.broadcast %cst_275 : f32 to vector<8x1xf32>
    %719 = arith.subf %718, %717 : vector<8x1xf32>
    %720 = math.exp %719 : vector<8x1xf32>
    %cst_276 = arith.constant 1.000000e+00 : f32
    %721 = vector.broadcast %cst_276 : f32 to vector<8x1xf32>
    %722 = arith.addf %721, %720 : vector<8x1xf32>
    %cst_277 = arith.constant 1.000000e+00 : f32
    %723 = vector.broadcast %cst_277 : f32 to vector<8x1xf32>
    %724 = arith.divf %723, %722 : vector<8x1xf32>
    %c0_278 = arith.constant 0 : index
    %c0_279 = arith.constant 0 : index
    %725 = vector.load %arg10[%c0_278, %c0_279] : memref<8x1xf32, #tpu.memory_space<vmem>>, vector<8x1xf32>
    tpu.vector_store %arg10[%c0_278, %c0_279], %724 {strides = array<i32>} : memref<8x1xf32, #tpu.memory_space<vmem>>, vector<8x1xf32>,
    return
  }
  func.func @transform_0(%arg0: i32) -> (i32, i32, i32) {
    %c0_i32 = arith.constant 0 : i32
    %c0_i32_0 = arith.constant 0 : i32
    %c0_i32_1 = arith.constant 0 : i32
    return %arg0, %c0_i32, %c0_i32_0 : i32, i32, i32
  }
  func.func @transform_1(%arg0: i32) -> (i32, i32) {
    %c0_i32 = arith.constant 0 : i32
    %c0_i32_0 = arith.constant 0 : i32
    %c0_i32_1 = arith.constant 0 : i32
    return %c0_i32, %c0_i32_0 : i32, i32
  }
  func.func @transform_2(%arg0: i32) -> (i32, i32, i32) {
    %c0_i32 = arith.constant 0 : i32
    %c0_i32_0 = arith.constant 0 : i32
    %c0_i32_1 = arith.constant 0 : i32
    %c0_i32_2 = arith.constant 0 : i32
    return %c0_i32, %c0_i32_0, %c0_i32_1 : i32, i32, i32
  }
  func.func @transform_3(%arg0: i32) -> (i32, i32, i32) {
    %c0_i32 = arith.constant 0 : i32
    %c0_i32_0 = arith.constant 0 : i32
    %c0_i32_1 = arith.constant 0 : i32
    %c0_i32_2 = arith.constant 0 : i32
    return %c0_i32, %c0_i32_0, %c0_i32_1 : i32, i32, i32
  }
  func.func @transform_4(%arg0: i32) -> (i32, i32) {
    %c0_i32 = arith.constant 0 : i32
    %c0_i32_0 = arith.constant 0 : i32
    %c0_i32_1 = arith.constant 0 : i32
    return %c0_i32, %c0_i32_0 : i32, i32
  }
  func.func @transform_5(%arg0: i32) -> (i32, i32, i32) {
    %c0_i32 = arith.constant 0 : i32
    %c0_i32_0 = arith.constant 0 : i32
    %c0_i32_1 = arith.constant 0 : i32
    %c0_i32_2 = arith.constant 0 : i32
    return %c0_i32, %c0_i32_0, %c0_i32_1 : i32, i32, i32
  }
  func.func @transform_6(%arg0: i32) -> (i32, i32) {
    %c0_i32 = arith.constant 0 : i32
    %c0_i32_0 = arith.constant 0 : i32
    %c0_i32_1 = arith.constant 0 : i32
    return %c0_i32, %c0_i32_0 : i32, i32
  }
  func.func @transform_7(%arg0: i32) -> (i32, i32) {
    %c0_i32 = arith.constant 0 : i32
    %c0_i32_0 = arith.constant 0 : i32
    %c0_i32_1 = arith.constant 0 : i32
    return %c0_i32, %c0_i32_0 : i32, i32
  }
  func.func @transform_8(%arg0: i32) -> (i32, i32) {
    %c0_i32 = arith.constant 0 : i32
    %c0_i32_0 = arith.constant 0 : i32
    %c0_i32_1 = arith.constant 0 : i32
    return %c0_i32, %c0_i32_0 : i32, i32
  }
  func.func @transform_9(%arg0: i32) -> (i32, i32) {
    %c0_i32 = arith.constant 0 : i32
    %c0_i32_0 = arith.constant 0 : i32
    return %arg0, %c0_i32 : i32, i32
  }
}

</mosaic_0001>

<bundles_post_ra>
// kernel: eegnet_forward.1
= control target key start
LH: loop header
LB: loop body
LE: loop exit
PB: predicated region body
PF: predicated region fallthrough
CT: control target
= control target key end

     0   :  { %s6707_s0 = inlined_call_operand.vmem [shape: bf16[8,64,120], index: 0, kind: input, shape index: {}]   ;;  %s6708_s1 = inlined_call_operand.vmem [shape: bf16[12,64], index: 1, kind: input, shape index: {}]   ;;  %s6709_s2 = inlined_call_operand.vmem [shape: f32[3,12,1], index: 2, kind: input, shape index: {}]   ;;  %s6710_s3 = inlined_call_operand.vmem [shape: bf16[2,120,256], index: 3, kind: input, shape index: {}]   ;;  %s6711_s4 = inlined_call_operand.vmem [shape: f32[3,256], index: 4, kind: input, shape index: {}]   ;;  %s6712_s5 = inlined_call_operand.hbm [shape: bf16[4,128,512], index: 5, kind: input, shape index: {}]   ;;  %s6713_s6 = inlined_call_operand.vmem [shape: f32[3,512], index: 6, kind: input, shape index: {}]   ;;  %s6714_s7 = inlined_call_operand.vmem [shape: f32[1,64], index: 7, kind: input, shape index: {}]   ;;  %s6715_s8 = inlined_call_operand.<no memory space> [shape: f32[1,1], index: 8, kind: input, shape index: {}]   ;;  %s6716_s9 = inlined_call_operand.vmem [shape: f32[8,1], index: 9, kind: output, shape index: {}]  }
   0x1   :  { %v14_v0 = vstv %s6715_s8 }
   0x2   :  { %15 = vst [vmem:[#allocation3] sm:$0x1] %v14_v0 }
   0x3   :  { %16 = vsyncpa [#allocation5], 0  ;;  %s5141_s11 = smov [#allocation4]  }
   0x4   :  { %s32_s12 = sshll.u32 %s5141_s11, 4  ;;  %s33_s12 = int_to_ptr.vmem [resolvable:$true] %s32_s12 }
   0x5   :  { %s5127_s13 = scalar_lea.vmem %s33_s12, 16384  ;;  %p5132_p1 = scmp.lt.s32.totalorder %s33_s12, %s33_s12 }
   0x6   :  { %p5128_p0 = scmp.ne.s32.totalorder %s33_s12, %s5127_s13  ;;  %p5133_p2 = scmp.lt.s32.totalorder %s5127_s13, %s5127_s13 }
   0x8   :  { %p5134_p3 = por %p5133_p2, %p5132_p1 }
   0xa   :  { %p5135_p4 = pnand %p5134_p3, %p5128_p0 }
   0xc   :  { %5138 = shalt.err (!%p5135_p4)
}
   0xd   :  { %s5142_s14 = smov 256   ;;  %s5143_s15 = smov 16  }
   0xe   :  { %38 = dma.hbm_to_vmem [thread:$0]  %s6712_s5, 16384, %s33_s12, [#allocation5], %s5142_s14, %s5142_s14, %s5143_s15  }
   0xf   :  { %5139 = dma.done.wait [#allocation5], 16384  }
  0x10   :  { %5140 = vsyncadd [#allocation5], 4294950912  ;;  %v6717_v1 = vmov 0.0   ;;  %vm5145_vm0 = vmmov 0   ;;  %v6719_v2 = vmov 0   ;;  %v4682_v3 = vld [vmem:[%s6707_s0 + $0x18] sm:$0xff]  }
  0x11   :  { %4577 = vmatprep.subr.bf16.mxu0 %v6717_v1  ;;  %4585 = vmatprep.mubr.msk.bf16.mxu0 %vm5145_vm0, %v6717_v1  ;;  %v4683_v4 = vld [vmem:[%s6707_s0 + $0x10] sm:$0xff]   ;;  %v4684_v5 = vld [vmem:[%s6707_s0 + $0x8] sm:$0xff]   ;;  %v51_v6 = vld [vmem:[%s6709_s2] sm:$0xff]  ;;  %vm136_vm1 = vcmask 523264   ;;  %vm299_vm2 = vcmask 1043456   ;;  %vm295_vm5 = vcmask 982016  }
  0x12   :  { %4680 = vset.pattern.permute.xlu0 %v6719_v2  ;;  %4681 = vset.pattern.permute.xlu1 %v6719_v2  ;;  %v52_v7 = vld [vmem:[%s6709_s2 + $0x8] sm:$0xf]  ;;  %v53_v8 = vld [vmem:[%s6709_s2 + $0x10] sm:$0xff]  ;;  %v54_v9 = vld [vmem:[%s6709_s2 + $0x18] sm:$0xf] }
  0x13   :  { %338 = vmatprep.mubr.bf16.mxu1 %v6719_v2  ;;  %4578 = vmatpush3.bf16.msra.mxu0 %v4682_v3  ;;  %v4685_v10 = vld [vmem:[%s6707_s0] sm:$0xff]   ;;  %v56_v12 = vld [vmem:[%s6709_s2 + $0x28] sm:$0xf]  ;;  %v71_v14 = vld [vmem:[%s6710_s3 + $0x70] sm:$0xff] }
  0x14   :  { %4579 = vmatprep.subr.bf16.mxu0 %v6717_v1  ;;  %99 = vperm.xlu0 %4680, %v51_v6   ;;  %v55_v11 = vld [vmem:[%s6709_s2 + $0x20] sm:$0xff]  ;;  %v5254_v15 = vcombine.high %v71_v14, %v71_v14  ;;  %v4202_v16 = vcombine.low %v71_v14, %v71_v14  ;;  %v4161_v17 = vld [vmem:[%s6710_s3 + $0xe8] sm:$0xff]  ;;  %v5299_v26 = vld [vmem:[%s6710_s3 + $0x54] ss:$8 sps:$4 sm:$0xff]  }
  0x15   :  { %195 = vperm.xlu1 %4681, %v53_v8   ;;  %v5246_v13 = vld [vmem:[%s6708_s1] sm:$0x3f]   ;;  %v5264_v19 = vcombine.high %v4161_v17, %v4161_v17  ;;  %v4184_v20 = vcombine.low %v4161_v17, %v4161_v17  ;;  %v5305_v27 = vld [vmem:[%s6710_s3 + $0x50] ss:$8 sps:$4 sm:$0xff]   ;;  %v5311_v28 = vld [vmem:[%s6710_s3 + $0xcc] ss:$8 sps:$4 sm:$0xff]  }
  0x16   :  { %6761 = vst [vmem:[#allocation7_spill] sm:$0xff] %v5254_v15  ;;  %v5262_v18 = vsel %vm299_vm2, %v4202_v16, 0  ;;  %v5275_v22 = vld [vmem:[%s6710_s3 + $0x64] ss:$8 sps:$4 sm:$0xff]   ;;  %v5281_v23 = vld [vmem:[%s6710_s3 + $0x60] ss:$8 sps:$4 sm:$0xff]  }
  0x17   :  { %4580 = vmatpush3.bf16.msra.mxu0 %v4683_v4  ;;  %4186 = vmatprep.subr.msk.bf16.mxu1 %vm299_vm2, %v5264_v19  ;;  %v5270_v21 = vsel %vm299_vm2, %v4184_v20, 0  ;;  %v5287_v24 = vld [vmem:[%s6710_s3 + $0xdc] ss:$8 sps:$4 sm:$0xff]   ;;  %v5293_v25 = vld [vmem:[%s6710_s3 + $0xd8] ss:$8 sps:$4 sm:$0xff]  }
  0x18   :  { %4581 = vmatprep.subr.bf16.mxu0 %v6717_v1  ;;  %104 = vperm.xlu0 %4680, %v52_v7   ;;  %v5317_v29 = vld [vmem:[%s6710_s3 + $0xc8] ss:$8 sps:$4 sm:$0xff]   ;;  %v5323_v30 = vld [vmem:[%s6710_s3 + $0x44] ss:$8 sps:$4 sm:$0xff]   ;;  %v5341_v33 = vld [vmem:[%s6710_s3 + $0xb8] ss:$8 sps:$4 sm:$0xff]  }
  0x19   :  { %200 = vperm.xlu1 %4681, %v54_v9   ;;  %307 = vmatpush1.bf16.msra.mxu1 %v5270_v21  ;;  %v5329_v31 = vld [vmem:[%s6710_s3 + $0x40] ss:$8 sps:$4 sm:$0xff]   ;;  %v5335_v32 = vld [vmem:[%s6710_s3 + $0xbc] ss:$8 sps:$4 sm:$0xff]   ;;  %v5353_v35 = vld [vmem:[%s6710_s3 + $0x30] ss:$8 sps:$4 sm:$0xff]  }
  0x1a   :  { %308 = vmatprep.subr.bf16.mxu1 %v5287_v24  ;;  %v5347_v34 = vld [vmem:[%s6710_s3 + $0x34] ss:$8 sps:$4 sm:$0xff]   ;;  %v5365_v37 = vld [vmem:[%s6710_s3 + $0xa8] ss:$8 sps:$4 sm:$0xff]   ;;  %v5371_v38 = vld [vmem:[%s6710_s3 + $0x24] ss:$8 sps:$4 sm:$0xff]  }
  0x1b   :  { %4582 = vmatpush3.bf16.msra.mxu0 %v4684_v5  ;;  %v5359_v36 = vld [vmem:[%s6710_s3 + $0xac] ss:$8 sps:$4 sm:$0xff]   ;;  %v5377_v39 = vld [vmem:[%s6710_s3 + $0x20] ss:$8 sps:$4 sm:$0xff]   ;;  %v5383_v40 = vld [vmem:[%s6710_s3 + $0x9c] ss:$8 sps:$4 sm:$0xff]  }
  0x1c   :  { %4583 = vmatprep.subr.bf16.mxu0 %v6717_v1  ;;  %207 = vperm.xlu0 %4680, %v55_v11   ;;  %v5389_v41 = vld [vmem:[%s6710_s3 + $0x98] ss:$8 sps:$4 sm:$0xff]   ;;  %v5395_v42 = vld [vmem:[%s6710_s3 + $0x14] ss:$8 sps:$4 sm:$0xff]   ;;  %v5413_v45 = vld [vmem:[%s6710_s3 + $0x88] ss:$8 sps:$4 sm:$0xff]  }
  0x1d   :  { %212 = vperm.xlu1 %4681, %v56_v12   ;;  %309 = vmatpush1.bf16.msra.mxu1 %v5293_v25  ;;  %v5401_v43 = vld [vmem:[%s6710_s3 + $0x10] ss:$8 sps:$4 sm:$0xff]   ;;  %v5407_v44 = vld [vmem:[%s6710_s3 + $0x8c] ss:$8 sps:$4 sm:$0xff]   ;;  %v5424_v47 = vld [vmem:[%s6710_s3] ss:$8 sps:$4 sm:$0xff]  }
  0x1e   :  { %310 = vmatprep.subr.bf16.mxu1 %v5311_v28  ;;  %v5419_v46 = vld [vmem:[%s6710_s3 + $0x4] ss:$8 sps:$4 sm:$0xff]   ;;  %v5435_v49 = vld [vmem:[%s6710_s3 + $0x78] ss:$8 sps:$4 sm:$0xff]  }
  0x1f   :  { %4584 = vmatpush3.bf16.msra.mxu0 %v4685_v10  ;;  %v5429_v48 = vld [vmem:[%s6710_s3 + $0x7c] ss:$8 sps:$4 sm:$0xff]   ;;  %6762 = vst [vmem:[#allocation8_spill] sm:$0xff] %v5435_v49 }
  0x20   :  { %4204 = vmatprep.subr.msk.bf16.mxu0 %vm299_vm2, %v5254_v15  ;;  %v4733_v20 = vld [vmem:[%s6707_s0 + $0x38] sm:$0xff]  }
  0x21   :  { %311 = vmatpush1.bf16.msra.mxu1 %v5317_v29 }
  0x22   :  { %4586 = vmatmul.mubr.msk.bf16.vlgmr.msra.gmra.mxu0 %vm136_vm1, %v5246_v13  ;;  %312 = vmatprep.subr.bf16.mxu1 %v5335_v32 }
  0x23   :  { %463 = vmatprep.mubr.bf16.mxu0 %v6719_v2  ;;  %432 = vmatpush1.bf16.msra.mxu0 %v5262_v18 }
  0x24   :  { %433 = vmatprep.subr.bf16.mxu0 %v5275_v22 }
  0x25   :  { %313 = vmatpush1.bf16.msra.mxu1 %v5341_v33 }
  0x26   :  { %314 = vmatprep.subr.bf16.mxu1 %v5359_v36 }
  0x27   :  { %434 = vmatpush1.bf16.msra.mxu0 %v5281_v23 }
  0x28   :  { %435 = vmatprep.subr.bf16.mxu0 %v5299_v26 }
  0x29   :  { %315 = vmatpush1.bf16.msra.mxu1 %v5365_v37 }
  0x2a   :  { %316 = vmatprep.subr.bf16.mxu1 %v5383_v40 }
  0x2b   :  { %436 = vmatpush1.bf16.msra.mxu0 %v5305_v27 }
  0x2c   :  { %437 = vmatprep.subr.bf16.mxu0 %v5323_v30 }
  0x2d   :  { %317 = vmatpush1.bf16.msra.mxu1 %v5389_v41 }
  0x2e   :  { %318 = vmatprep.subr.bf16.mxu1 %v5407_v44 }
  0x2f   :  { %438 = vmatpush1.bf16.msra.mxu0 %v5329_v31 }
  0x30   :  { %439 = vmatprep.subr.bf16.mxu0 %v5347_v34 }
  0x31   :  { %319 = vmatpush1.bf16.msra.mxu1 %v5413_v45 }
  0x32   :  { %320 = vmatprep.subr.bf16.mxu1 %v5429_v48 }
  0x33   :  { %440 = vmatpush1.bf16.msra.mxu0 %v5353_v35 }
  0x34   :  { %441 = vmatprep.subr.bf16.mxu0 %v5371_v38 }
  0x35   :  { %321 = vmatpush1.bf16.msra.mxu1 %v5435_v49 }
  0x36   :  { %4206 = vmatprep.subr.msk.bf16.mxu1 %vm299_vm2, %v5264_v19 }
  0x37   :  { %442 = vmatpush1.bf16.msra.mxu0 %v5377_v39 }
  0x38   :  { %443 = vmatprep.subr.bf16.mxu0 %v5395_v42 }
  0x3b   :  { %444 = vmatpush1.bf16.msra.mxu0 %v5401_v43 }
  0x3c   :  { %445 = vmatprep.subr.bf16.mxu0 %v5419_v46 }
  0x3f   :  { %446 = vmatpush1.bf16.msra.mxu0 %v5424_v47 }
  0x40   :  { %4208 = vmatprep.subr.msk.bf16.mxu0 %vm299_vm2, %v5254_v15 }
  0x8f   :  { %v5445_v50 = vpop.permute.xlu0 %99 }
  0x90   :  { %6763 = vst [vmem:[#allocation9_spill] sm:$0xff] %v5445_v50  ;;  %v5451_v62 = vpop.permute.xlu1 %195 }
  0x93   :  { %v5448_v55 = vpop.permute.xlu0 %104 }
  0x94   :  { %v5453_v4 = vpop.permute.xlu1 %200 }
  0x97   :  { %v5457_v10 = vpop.permute.xlu0 %207 }
  0x98   :  { %v5459_v11 = vpop.permute.xlu1 %212 }
  0xe2   :  { %v174_v51 = vpop.f32.mrf.mxu0 }
  0xe3   :  { %v175_v52 = vadd.f32 %v174_v51, %v5445_v50 }
  0xe4   :  { %v4587_v53 = vpop.f32.mrf.mxu0 }
  0xe5   :  { %v183_v54 = vmin.f32 %v175_v52, 0.0  ;;  %vm181_vm3 = vcmp.gt.f32.partialorder %v175_v52, 0.0  ;;  %v4735_v53 = vld [vmem:[%s6707_s0 + $0x28] sm:$0xff]  }
  0xe6   :  { %v177_v56 = vpop.f32.mrf.mxu0 }
  0xe7   :  { %v185_v57 = vmul.f32 1.442695, %v183_v54  ;;  %v178_v58 = vadd.f32 %v177_v56, %v5448_v55  ;;  %v4736_v54 = vld [vmem:[%s6707_s0 + $0x20] sm:$0xff]  }
  0xe8   :  { %v4588_v59 = vpop.f32.mrf.mxu0 }
  0xe9   :  { %4953 = vpow2.f32 %v185_v57  ;;  %v184_v60 = vmin.f32 %v178_v58, 0.0  ;;  %vm182_vm4 = vcmp.gt.f32.partialorder %v178_v58, 0.0 }
  0xeb   :  { %v187_v61 = vmul.f32 1.442695, %v184_v60 }
  0xed   :  { %4955 = vpow2.f32 %v187_v61 }
  0xf6   :  { %v4954_v63 = vpop.eup %4953 }
  0xf7   :  { %v4168_v0 = vadd.f32 -1.0, %v4954_v63 }
  0xf9   :  { %v191_v3 = vsel %vm181_vm3, %v175_v52, %v4168_v0  ;;  %v4734_v52 = vld [vmem:[%s6707_s0 + $0x30] sm:$0xff]  }
  0xfa   :  { %v4956_v5 = vpop.eup %4955  ;;  %v203_v7 = vmul.f32 %v5451_v62, %v191_v3 }
  0xfb   :  { %v4169_v6 = vadd.f32 -1.0, %v4956_v5 }
  0xfc   :  { %v215_v12 = vadd.f32 %v5457_v10, %v203_v7 }
  0xfd   :  { %v192_v8 = vsel %vm182_vm4, %v178_v58, %v4169_v6  ;;  %v559_v58 = vlaneseq  ;;  %v5564_v6 = vld [vmem:[%s6711_s4] sm:$0x77] }
  0xfe   :  { %v204_v9 = vmul.f32 %v5453_v4, %v192_v8 }
  0xff   :  { %v560_v0 = vshrl.u32 %v559_v58, 7 }
 0x100   :  { %v216_v14 = vadd.f32 %v5459_v11, %v204_v9 }
 0x101   :  { %v5559_v5 = vsub.s32 0, %v560_v0  ;;  %v5566_v7 = vsub.s32 4, %v560_v0 }
 0x102   :  { %v217_v16 = vpack.c.bf16 %v216_v14, %v215_v12 }
 0x103   :  { %6764 = vst [vmem:[#allocation10_spill] sm:$0xff] %v5559_v5  ;;  %6765 = vst [vmem:[#allocation11_spill] sm:$0xff] %v5566_v7  ;;  %v562_v8 = vrot.slane %v5564_v6, %v5559_v5  ;;  %v566_v9 = vrot.slane %v5564_v6, %v5566_v7  ;;  %v5582_v7 = vsub.s32 1, %v560_v0 }
 0x104   :  { %4205 = vmatmul.mubr.msk.bf16.vlgmr.msra.gmra.mxu0 %vm295_vm5, %v217_v16  ;;  %v219_v17 = vrot.slane %v217_v16, 2  ;;  %v472_v51 = vrot.slane %v217_v16, 4 }
 0x105   :  { %518 = vmatpush1.bf16.msra.mxu0 %v5262_v18  ;;  %549 = vmatprep.mubr.bf16.mxu0 %v6719_v2  ;;  %v5573_v14 = vrot.slane %v562_v8, %v5559_v5  ;;  %6768 = vst [vmem:[#allocation14_spill] sm:$0xff] %v5582_v7 }
 0x106   :  { %4187 = vmatmul.mubr.msk.bf16.vlgmr.msra.gmra.mxu1 %vm295_vm5, %v219_v17  ;;  %519 = vmatprep.subr.bf16.mxu0 %v5275_v22 }
 0x107   :  { %477 = vmatpush1.bf16.msra.mxu1 %v5270_v21  ;;  %508 = vmatprep.mubr.bf16.mxu1 %v6719_v2  ;;  %6766 = vst [vmem:[#allocation12_spill] sm:$0xff] %v5573_v14 }
 0x108   :  { %478 = vmatprep.subr.bf16.mxu1 %v5287_v24 }
 0x109   :  { %520 = vmatpush1.bf16.msra.mxu0 %v5281_v23 }
 0x10a   :  { %521 = vmatprep.subr.bf16.mxu0 %v5299_v26 }
 0x10b   :  { %479 = vmatpush1.bf16.msra.mxu1 %v5293_v25 }
 0x10c   :  { %480 = vmatprep.subr.bf16.mxu1 %v5311_v28 }
 0x10d   :  { %522 = vmatpush1.bf16.msra.mxu0 %v5305_v27 }
 0x10e   :  { %523 = vmatprep.subr.bf16.mxu0 %v5323_v30 }
 0x10f   :  { %481 = vmatpush1.bf16.msra.mxu1 %v5317_v29 }
 0x110   :  { %482 = vmatprep.subr.bf16.mxu1 %v5335_v32 }
 0x111   :  { %524 = vmatpush1.bf16.msra.mxu0 %v5329_v31 }
 0x112   :  { %525 = vmatprep.subr.bf16.mxu0 %v5347_v34 }
 0x113   :  { %483 = vmatpush1.bf16.msra.mxu1 %v5341_v33 }
 0x114   :  { %484 = vmatprep.subr.bf16.mxu1 %v5359_v36 }
 0x115   :  { %526 = vmatpush1.bf16.msra.mxu0 %v5353_v35 }
 0x116   :  { %527 = vmatprep.subr.bf16.mxu0 %v5371_v38 }
 0x117   :  { %485 = vmatpush1.bf16.msra.mxu1 %v5365_v37 }
 0x118   :  { %486 = vmatprep.subr.bf16.mxu1 %v5383_v40 }
 0x119   :  { %528 = vmatpush1.bf16.msra.mxu0 %v5377_v39 }
 0x11a   :  { %529 = vmatprep.subr.bf16.mxu0 %v5395_v42 }
 0x11b   :  { %487 = vmatpush1.bf16.msra.mxu1 %v5389_v41 }
 0x11c   :  { %488 = vmatprep.subr.bf16.mxu1 %v5407_v44 }
 0x11d   :  { %530 = vmatpush1.bf16.msra.mxu0 %v5401_v43 }
 0x11e   :  { %531 = vmatprep.subr.bf16.mxu0 %v5419_v46 }
 0x11f   :  { %489 = vmatpush1.bf16.msra.mxu1 %v5413_v45 }
 0x120   :  { %490 = vmatprep.subr.bf16.mxu1 %v5429_v48 }
 0x121   :  { %532 = vmatpush1.bf16.msra.mxu0 %v5424_v47 }
 0x122   :  { %4229 = vmatprep.subr.msk.bf16.mxu0 %vm299_vm2, %v5264_v19 }
 0x123   :  { %491 = vmatpush1.bf16.msra.mxu1 %v5435_v49 }
 0x124   :  { %4209 = vmatmul.mubr.msk.bf16.vlgmr.msra.gmra.mxu0 %vm295_vm5, %v219_v17  ;;  %4589 = vmatprep.subr.bf16.mxu1 %v6717_v1  ;;  %v5576_v17 = vrot.slane %v566_v9, %v5559_v5 }
 0x125   :  { %756 = vmatpush1.bf16.msra.mxu0 %v5270_v21  ;;  %787 = vmatprep.mubr.bf16.mxu0 %v6719_v2 }
 0x126   :  { %4207 = vmatmul.mubr.msk.bf16.vlgmr.msra.gmra.mxu1 %vm295_vm5, %v472_v51  ;;  %757 = vmatprep.subr.bf16.mxu0 %v5287_v24  ;;  %6767 = vst [vmem:[#allocation13_spill] sm:$0xff] %v5576_v17 }
 0x127   :  { %4590 = vmatpush3.bf16.msra.mxu1 %v4733_v20  ;;  %4597 = vmatprep.mubr.msk.bf16.mxu1 %vm5145_vm0, %v6717_v1 }
 0x128   :  { %4591 = vmatprep.subr.bf16.mxu1 %v6717_v1 }
 0x129   :  { %758 = vmatpush1.bf16.msra.mxu0 %v5293_v25 }
 0x12a   :  { %759 = vmatprep.subr.bf16.mxu0 %v5311_v28 }
 0x12b   :  { %4592 = vmatpush3.bf16.msra.mxu1 %v4734_v52 }
 0x12c   :  { %4593 = vmatprep.subr.bf16.mxu1 %v6717_v1 }
 0x12d   :  { %760 = vmatpush1.bf16.msra.mxu0 %v5317_v29 }
 0x12e   :  { %761 = vmatprep.subr.bf16.mxu0 %v5335_v32 }
 0x12f   :  { %4594 = vmatpush3.bf16.msra.mxu1 %v4735_v53 }
 0x130   :  { %4595 = vmatprep.subr.bf16.mxu1 %v6717_v1 }
 0x131   :  { %762 = vmatpush1.bf16.msra.mxu0 %v5341_v33 }
 0x132   :  { %763 = vmatprep.subr.bf16.mxu0 %v5359_v36 }
 0x133   :  { %4596 = vmatpush3.bf16.msra.mxu1 %v4736_v54 }
 0x134   :  { %4231 = vmatprep.subr.msk.bf16.mxu1 %vm299_vm2, %v5254_v15 }
 0x135   :  { %764 = vmatpush1.bf16.msra.mxu0 %v5365_v37 }
 0x136   :  { %4598 = vmatmul.mubr.msk.bf16.vlgmr.msra.gmra.mxu1 %vm136_vm1, %v5246_v13  ;;  %765 = vmatprep.subr.bf16.mxu0 %v5383_v40 }
 0x137   :  { %800 = vmatpush1.bf16.msra.mxu1 %v5262_v18  ;;  %831 = vmatprep.mubr.bf16.mxu1 %v6719_v2 }
 0x138   :  { %801 = vmatprep.subr.bf16.mxu1 %v5275_v22 }
 0x139   :  { %766 = vmatpush1.bf16.msra.mxu0 %v5389_v41 }
 0x13a   :  { %767 = vmatprep.subr.bf16.mxu0 %v5407_v44 }
 0x13b   :  { %802 = vmatpush1.bf16.msra.mxu1 %v5281_v23 }
 0x13c   :  { %803 = vmatprep.subr.bf16.mxu1 %v5299_v26 }
 0x13d   :  { %768 = vmatpush1.bf16.msra.mxu0 %v5413_v45 }
 0x13e   :  { %769 = vmatprep.subr.bf16.mxu0 %v5429_v48 }
 0x13f   :  { %804 = vmatpush1.bf16.msra.mxu1 %v5305_v27 }
 0x140   :  { %805 = vmatprep.subr.bf16.mxu1 %v5323_v30 }
 0x141   :  { %770 = vmatpush1.bf16.msra.mxu0 %v5435_v49 }
 0x142   :  { %4233 = vmatprep.subr.msk.bf16.mxu0 %vm299_vm2, %v5264_v19 }
 0x143   :  { %806 = vmatpush1.bf16.msra.mxu1 %v5329_v31 }
 0x144   :  { %807 = vmatprep.subr.bf16.mxu1 %v5347_v34 }
 0x147   :  { %808 = vmatpush1.bf16.msra.mxu1 %v5353_v35 }
 0x148   :  { %809 = vmatprep.subr.bf16.mxu1 %v5371_v38 }
 0x14b   :  { %810 = vmatpush1.bf16.msra.mxu1 %v5377_v39 }
 0x14c   :  { %811 = vmatprep.subr.bf16.mxu1 %v5395_v42 }
 0x14f   :  { %812 = vmatpush1.bf16.msra.mxu1 %v5401_v43 }
 0x150   :  { %813 = vmatprep.subr.bf16.mxu1 %v5419_v46 }
 0x153   :  { %814 = vmatpush1.bf16.msra.mxu1 %v5424_v47 }
 0x154   :  { %4235 = vmatprep.subr.msk.bf16.mxu1 %vm299_vm2, %v5254_v15 }
 0x1c4   :  { %v465_v13 = vpop.f32.mrf.mxu0 }
 0x1c6   :  { %v340_v56 = vpop.f32.mrf.mxu1  ;;  %v467_v57 = vpop.f32.mrf.mxu0 }
 0x1c7   :  { %v466_v12 = vadd.f32 %v465_v13, %v340_v56 }
 0x1c8   :  { %v342_v59 = vpop.f32.mrf.mxu1  ;;  %v469_v60 = vpop.f32.mrf.mxu0 }
 0x1c9   :  { %v468_v16 = vadd.f32 %v467_v57, %v342_v59  ;;  %v577_v20 = vadd.f32 %v5573_v14, %v466_v12 }
 0x1ca   :  { %v344_v61 = vpop.f32.mrf.mxu1  ;;  %v470_v63 = vpop.f32.mrf.mxu0 }
 0x1cb   :  { %v578_v51 = vadd.f32 %v5576_v17, %v468_v16  ;;  %v581_v52 = vmin.f32 %v577_v20, 0.0  ;;  %vm579_vm6 = vcmp.gt.f32.partialorder %v577_v20, 0.0 }
 0x1cc   :  { %v345_v3 = vpop.f32.mrf.mxu1 }
 0x1cd   :  { %v582_v53 = vmin.f32 %v578_v51, 0.0  ;;  %v583_v54 = vmul.f32 1.442695, %v581_v52  ;;  %vm580_vm7 = vcmp.gt.f32.partialorder %v578_v51, 0.0 }
 0x1cf   :  { %v585_v60 = vmul.f32 1.442695, %v582_v53  ;;  %4957 = vpow2.f32 %v583_v54  ;;  %v5584_v54 = vsub.s32 5, %v560_v0 }
 0x1d1   :  { %4959 = vpow2.f32 %v585_v60  ;;  %6769 = vst [vmem:[#allocation15_spill] sm:$0xff] %v5584_v54 }
 0x1e4   :  { %v551_v58 = vpop.f32.mrf.mxu0 }
 0x1e6   :  { %v510_v61 = vpop.f32.mrf.mxu1  ;;  %v553_v63 = vpop.f32.mrf.mxu0 }
 0x1e7   :  { %v552_v3 = vadd.f32 %v551_v58, %v510_v61  ;;  %v4958_v58 = vpop.eup %4957  ;;  %v5586_v61 = vsub.s32 2, %v560_v0 }
 0x1e8   :  { %v512_v13 = vpop.f32.mrf.mxu1  ;;  %v555_v56 = vpop.f32.mrf.mxu0 }
 0x1e9   :  { %v631_v57 = vadd.f32 %v5573_v14, %v552_v3  ;;  %v554_v59 = vadd.f32 %v553_v63, %v512_v13  ;;  %v4960_v60 = vpop.eup %4959  ;;  %6770 = vst [vmem:[#allocation16_spill] sm:$0xff] %v5586_v61  ;;  %v5588_v3 = vsub.s32 6, %v560_v0  ;;  %v4210_v56 = vadd.f32 -1.0, %v4958_v58 }
 0x1ea   :  { %v514_v8 = vpop.f32.mrf.mxu1  ;;  %v556_v9 = vpop.f32.mrf.mxu0 }
 0x1eb   :  { %v635_v12 = vmin.f32 %v631_v57, 0.0  ;;  %v632_v16 = vadd.f32 %v5576_v17, %v554_v59  ;;  %6771 = vst [vmem:[#allocation17_spill] sm:$0xff] %v5588_v3  ;;  %v4211_v8 = vadd.f32 -1.0, %v4960_v60  ;;  %v618_v0 = vrot.slane %v5564_v6, %v5588_v3 }
 0x1ec   :  { %v515_v1 = vpop.f32.mrf.mxu1  ;;  %v589_v5 = vsel %vm579_vm6, %v577_v20, %v4210_v56  ;;  %vm633_vm8 = vcmp.gt.f32.partialorder %v631_v57, 0.0 }
 0x1ed   :  { %v637_v2 = vmul.f32 1.442695, %v635_v12  ;;  %v636_v52 = vmin.f32 %v632_v16, 0.0  ;;  %v594_v1 = vrot.slane %v5564_v6, %v5582_v7  ;;  %v614_v12 = vrot.slane %v5564_v6, %v5586_v61 }
 0x1ee   :  { %vm634_vm9 = vcmp.gt.f32.partialorder %v632_v16, 0.0 }
 0x1ef   :  { %4961 = vpow2.f32 %v637_v2  ;;  %v639_v53 = vmul.f32 1.442695, %v636_v52  ;;  %v598_v2 = vrot.slane %v5564_v6, %v5584_v54  ;;  %v590_v54 = vsel %vm580_vm7, %v578_v51, %v4211_v8 }
 0x1f0   :  { %v5607_v6 = vrot.slane %v614_v12, %v5586_v61 }
 0x1f1   :  { %4963 = vpow2.f32 %v639_v53  ;;  %v5604_v60 = vrot.slane %v598_v2, %v5582_v7 }
 0x1f3   :  { %v610_v2 = vmul.f32 %v5604_v60, %v590_v54 }
 0x1f6   :  { %v726_v63 = vpop.f32.mrf.mxu1 }
 0x1f7   :  { %v727_v13 = vadd.f32 %v726_v63, %v5445_v50  ;;  %v5601_v50 = vrot.slane %v594_v1, %v5582_v7 }
 0x1f8   :  { %v4599_v59 = vpop.f32.mrf.mxu1 }
 0x1f9   :  { %v735_v9 = vmin.f32 %v727_v13, 0.0  ;;  %vm733_vm10 = vcmp.gt.f32.partialorder %v727_v13, 0.0 }
 0x1fa   :  { %v729_v52 = vpop.f32.mrf.mxu1 }
 0x1fb   :  { %v737_v53 = vmul.f32 1.442695, %v735_v9  ;;  %v730_v58 = vadd.f32 %v729_v52, %v5448_v55  ;;  %v5610_v9 = vrot.slane %v618_v0, %v5586_v61  ;;  %v609_v52 = vmul.f32 %v5601_v50, %v589_v5 }
 0x1fc   :  { %v4962_v63 = vpop.eup %4961  ;;  %v4600_v59 = vpop.f32.mrf.mxu1 }
 0x1fd   :  { %v4212_v17 = vadd.f32 -1.0, %v4962_v63  ;;  %4965 = vpow2.f32 %v737_v53  ;;  %v736_v14 = vmin.f32 %v730_v58, 0.0  ;;  %v629_v63 = vadd.f32 %v5607_v6, %v609_v52 }
 0x1fe   :  { %v4964_v15 = vpop.eup %4963  ;;  %v630_v0 = vadd.f32 %v5610_v9, %v610_v2  ;;  %vm734_vm11 = vcmp.gt.f32.partialorder %v730_v58, 0.0 }
 0x1ff   :  { %v643_v20 = vsel %vm633_vm8, %v631_v57, %v4212_v17  ;;  %v4213_v56 = vadd.f32 -1.0, %v4964_v15  ;;  %v739_v1 = vmul.f32 1.442695, %v736_v14 }
 0x200   :  { %v645_v51 = vmul.f32 %v643_v20, %v5601_v50 }
 0x201   :  { %v644_v8 = vsel %vm634_vm9, %v632_v16, %v4213_v56  ;;  %4967 = vpow2.f32 %v739_v1 }
 0x202   :  { %v647_v53 = vadd.f32 %v645_v51, %v5607_v6  ;;  %v646_v12 = vmul.f32 %v644_v8, %v5604_v60 }
 0x204   :  { %v648_v15 = vadd.f32 %v646_v12, %v5610_v9  ;;  %v649_v14 = vmax.f32 %v629_v63, %v647_v53  ;;  %v6772_v12 = vmov 0   ;;  %v6773_v63 = vmov 0.0  }
 0x206   :  { %v650_v17 = vmax.f32 %v630_v0, %v648_v15  ;;  %v4738_v0 = vld [vmem:[%s6707_s0 + $0x50] sm:$0xff]   ;;  %v4739_v15 = vld [vmem:[%s6707_s0 + $0x48] sm:$0xff]  }
 0x208   :  { %v651_v5 = vmax.f32 %v649_v14, %v650_v17  ;;  %v4740_v14 = vld [vmem:[%s6707_s0 + $0x40] sm:$0xff]  }
 0x209   :  { %v6774_v17 = vld [vmem:[#allocation7_spill] sm:$0xff] }
 0x20a   :  { %v4966_v57 = vpop.eup %4965  ;;  %652 = vst [vmem:[#allocation2] sm:$0x1] %v651_v5  ;;  %654 = vst [vmem:[#allocation2 + $0x7] sm:$0x2] %v651_v5 }
 0x20b   :  { %656 = vst [vmem:[#allocation2 + $0xe] sm:$0x4] %v651_v5  ;;  %658 = vst [vmem:[#allocation2 + $0x15] sm:$0x8] %v651_v5  ;;  %v4227_v16 = vadd.f32 -1.0, %v4966_v57 }
 0x20c   :  { %v5695_v5 = vld [vmem:[%s6708_s1] sm:$0x3f]  }
 0x20d   :  { %v743_v54 = vsel %vm733_vm10, %v727_v13, %v4227_v16  ;;  %v4737_v13 = vld [vmem:[%s6707_s0 + $0x58] sm:$0xff]   ;;  %6775 = vst [vmem:[#allocation18_spill] sm:$0xff] %v5695_v5 }
 0x20e   :  { %v4968_v59 = vpop.eup %4967  ;;  %v745_v56 = vmul.f32 %v743_v54, %v5451_v62 }
 0x20f   :  { %v4228_v20 = vadd.f32 -1.0, %v4968_v59 }
 0x210   :  { %v747_v2 = vadd.f32 %v745_v56, %v5457_v10 }
 0x211   :  { %v744_v1 = vsel %vm734_vm11, %v730_v58, %v4228_v20 }
 0x212   :  { %v746_v52 = vmul.f32 %v744_v1, %v5453_v4 }
 0x214   :  { %v748_v51 = vadd.f32 %v746_v52, %v5459_v11 }
 0x216   :  { %v749_v8 = vpack.c.bf16 %v748_v51, %v747_v2 }
 0x218   :  { %4232 = vmatmul.mubr.msk.bf16.vlgmr.msra.gmra.mxu1 %vm295_vm5, %v749_v8  ;;  %v751_v53 = vrot.slane %v749_v8, 2  ;;  %v840_v58 = vrot.slane %v749_v8, 4  ;;  %v6776_v8 = vld [vmem:[#allocation12_spill] sm:$0xff] }
 0x219   :  { %886 = vmatpush1.bf16.msra.mxu1 %v5262_v18  ;;  %917 = vmatprep.mubr.bf16.mxu1 %v6772_v12 }
 0x21a   :  { %4230 = vmatmul.mubr.msk.bf16.vlgmr.msra.gmra.mxu0 %vm295_vm5, %v751_v53  ;;  %887 = vmatprep.subr.bf16.mxu1 %v5275_v22 }
 0x21b   :  { %845 = vmatpush1.bf16.msra.mxu0 %v5270_v21  ;;  %876 = vmatprep.mubr.bf16.mxu0 %v6772_v12 }
 0x21c   :  { %846 = vmatprep.subr.bf16.mxu0 %v5287_v24 }
 0x21d   :  { %888 = vmatpush1.bf16.msra.mxu1 %v5281_v23 }
 0x21e   :  { %889 = vmatprep.subr.bf16.mxu1 %v5299_v26 }
 0x21f   :  { %847 = vmatpush1.bf16.msra.mxu0 %v5293_v25 }
 0x220   :  { %848 = vmatprep.subr.bf16.mxu0 %v5311_v28 }
 0x221   :  { %890 = vmatpush1.bf16.msra.mxu1 %v5305_v27 }
 0x222   :  { %891 = vmatprep.subr.bf16.mxu1 %v5323_v30 }
 0x223   :  { %849 = vmatpush1.bf16.msra.mxu0 %v5317_v29 }
 0x224   :  { %850 = vmatprep.subr.bf16.mxu0 %v5335_v32 }
 0x225   :  { %892 = vmatpush1.bf16.msra.mxu1 %v5329_v31 }
 0x226   :  { %893 = vmatprep.subr.bf16.mxu1 %v5347_v34 }
 0x227   :  { %851 = vmatpush1.bf16.msra.mxu0 %v5341_v33 }
 0x228   :  { %852 = vmatprep.subr.bf16.mxu0 %v5359_v36 }
 0x229   :  { %894 = vmatpush1.bf16.msra.mxu1 %v5353_v35 }
 0x22a   :  { %895 = vmatprep.subr.bf16.mxu1 %v5371_v38 }
 0x22b   :  { %853 = vmatpush1.bf16.msra.mxu0 %v5365_v37 }
 0x22c   :  { %854 = vmatprep.subr.bf16.mxu0 %v5383_v40 }
 0x22d   :  { %896 = vmatpush1.bf16.msra.mxu1 %v5377_v39 }
 0x22e   :  { %897 = vmatprep.subr.bf16.mxu1 %v5395_v42 }
 0x22f   :  { %855 = vmatpush1.bf16.msra.mxu0 %v5389_v41 }
 0x230   :  { %856 = vmatprep.subr.bf16.mxu0 %v5407_v44 }
 0x231   :  { %898 = vmatpush1.bf16.msra.mxu1 %v5401_v43 }
 0x232   :  { %899 = vmatprep.subr.bf16.mxu1 %v5419_v46 }
 0x233   :  { %857 = vmatpush1.bf16.msra.mxu0 %v5413_v45 }
 0x234   :  { %858 = vmatprep.subr.bf16.mxu0 %v5429_v48 }
 0x235   :  { %900 = vmatpush1.bf16.msra.mxu1 %v5424_v47 }
 0x236   :  { %4256 = vmatprep.subr.msk.bf16.mxu1 %vm299_vm2, %v5264_v19 }
 0x237   :  { %859 = vmatpush1.bf16.msra.mxu0 %v5435_v49 }
 0x238   :  { %4236 = vmatmul.mubr.msk.bf16.vlgmr.msra.gmra.mxu1 %vm295_vm5, %v751_v53  ;;  %4601 = vmatprep.subr.bf16.mxu0 %v6773_v63 }
 0x239   :  { %1066 = vmatpush1.bf16.msra.mxu1 %v5270_v21  ;;  %1097 = vmatprep.mubr.bf16.mxu1 %v6772_v12 }
 0x23a   :  { %4234 = vmatmul.mubr.msk.bf16.vlgmr.msra.gmra.mxu0 %vm295_vm5, %v840_v58  ;;  %1067 = vmatprep.subr.bf16.mxu1 %v5287_v24 }
 0x23b   :  { %4602 = vmatpush3.bf16.msra.mxu0 %v4737_v13  ;;  %4609 = vmatprep.mubr.msk.bf16.mxu0 %vm5145_vm0, %v6773_v63  ;;  %v6777_v13 = vld [vmem:[#allocation13_spill] sm:$0xff] }
 0x23c   :  { %4603 = vmatprep.subr.bf16.mxu0 %v6773_v63 }
 0x23d   :  { %1068 = vmatpush1.bf16.msra.mxu1 %v5293_v25 }
 0x23e   :  { %1069 = vmatprep.subr.bf16.mxu1 %v5311_v28 }
 0x23f   :  { %4604 = vmatpush3.bf16.msra.mxu0 %v4738_v0 }
 0x240   :  { %4605 = vmatprep.subr.bf16.mxu0 %v6773_v63 }
 0x241   :  { %1070 = vmatpush1.bf16.msra.mxu1 %v5317_v29 }
 0x242   :  { %1071 = vmatprep.subr.bf16.mxu1 %v5335_v32 }
 0x243   :  { %4606 = vmatpush3.bf16.msra.mxu0 %v4739_v15 }
 0x244   :  { %4607 = vmatprep.subr.bf16.mxu0 %v6773_v63 }
 0x245   :  { %1072 = vmatpush1.bf16.msra.mxu1 %v5341_v33 }
 0x246   :  { %1073 = vmatprep.subr.bf16.mxu1 %v5359_v36 }
 0x247   :  { %4608 = vmatpush3.bf16.msra.mxu0 %v4740_v14 }
 0x248   :  { %4258 = vmatprep.subr.msk.bf16.mxu0 %vm299_vm2, %v6774_v17 }
 0x249   :  { %1074 = vmatpush1.bf16.msra.mxu1 %v5365_v37 }
 0x24a   :  { %4610 = vmatmul.mubr.msk.bf16.vlgmr.msra.gmra.mxu0 %vm136_vm1, %v5695_v5  ;;  %1075 = vmatprep.subr.bf16.mxu1 %v5383_v40 }
 0x24b   :  { %1110 = vmatpush1.bf16.msra.mxu0 %v5262_v18  ;;  %1141 = vmatprep.mubr.bf16.mxu0 %v6772_v12 }
 0x24c   :  { %1111 = vmatprep.subr.bf16.mxu0 %v5275_v22 }
 0x24d   :  { %1076 = vmatpush1.bf16.msra.mxu1 %v5389_v41 }
 0x24e   :  { %1077 = vmatprep.subr.bf16.mxu1 %v5407_v44 }
 0x24f   :  { %1112 = vmatpush1.bf16.msra.mxu0 %v5281_v23 }
 0x250   :  { %1113 = vmatprep.subr.bf16.mxu0 %v5299_v26 }
 0x251   :  { %1078 = vmatpush1.bf16.msra.mxu1 %v5413_v45 }
 0x252   :  { %1079 = vmatprep.subr.bf16.mxu1 %v5429_v48 }
 0x253   :  { %1114 = vmatpush1.bf16.msra.mxu0 %v5305_v27 }
 0x254   :  { %1115 = vmatprep.subr.bf16.mxu0 %v5323_v30 }
 0x255   :  { %1080 = vmatpush1.bf16.msra.mxu1 %v5435_v49 }
 0x256   :  { %4260 = vmatprep.subr.msk.bf16.mxu1 %vm299_vm2, %v5264_v19 }
 0x257   :  { %1116 = vmatpush1.bf16.msra.mxu0 %v5329_v31 }
 0x258   :  { %1117 = vmatprep.subr.bf16.mxu0 %v5347_v34 }
 0x25b   :  { %1118 = vmatpush1.bf16.msra.mxu0 %v5353_v35 }
 0x25c   :  { %1119 = vmatprep.subr.bf16.mxu0 %v5371_v38 }
 0x25f   :  { %1120 = vmatpush1.bf16.msra.mxu0 %v5377_v39 }
 0x260   :  { %1121 = vmatprep.subr.bf16.mxu0 %v5395_v42 }
 0x263   :  { %1122 = vmatpush1.bf16.msra.mxu0 %v5401_v43 }
 0x264   :  { %1123 = vmatprep.subr.bf16.mxu0 %v5419_v46 }
 0x267   :  { %1124 = vmatpush1.bf16.msra.mxu0 %v5424_v47 }
 0x268   :  { %4262 = vmatprep.subr.msk.bf16.mxu0 %vm299_vm2, %v6774_v17 }
 0x2d8   :  { %v833_v57 = vpop.f32.mrf.mxu1 }
 0x2da   :  { %v789_v16 = vpop.f32.mrf.mxu0  ;;  %v835_v54 = vpop.f32.mrf.mxu1 }
 0x2db   :  { %v834_v2 = vadd.f32 %v833_v57, %v789_v16 }
 0x2dc   :  { %v791_v59 = vpop.f32.mrf.mxu0  ;;  %v837_v20 = vpop.f32.mrf.mxu1 }
 0x2dd   :  { %v836_v51 = vadd.f32 %v835_v54, %v791_v59  ;;  %v926_v53 = vadd.f32 %v834_v2, %v6776_v8 }
 0x2de   :  { %v793_v56 = vpop.f32.mrf.mxu0  ;;  %v838_v1 = vpop.f32.mrf.mxu1 }
 0x2df   :  { %v927_v58 = vadd.f32 %v836_v51, %v6777_v13  ;;  %v930_v0 = vmin.f32 %v926_v53, 0.0  ;;  %vm928_vm12 = vcmp.gt.f32.partialorder %v926_v53, 0.0 }
 0x2e0   :  { %v794_v52 = vpop.f32.mrf.mxu0 }
 0x2e1   :  { %v931_v15 = vmin.f32 %v927_v58, 0.0  ;;  %v932_v14 = vmul.f32 1.442695, %v930_v0  ;;  %vm929_vm13 = vcmp.gt.f32.partialorder %v927_v58, 0.0 }
 0x2e3   :  { %v934_v61 = vmul.f32 1.442695, %v931_v15  ;;  %4969 = vpow2.f32 %v932_v14  ;;  %v6778_v14 = vld [vmem:[#allocation9_spill] sm:$0xff] }
 0x2e5   :  { %4971 = vpow2.f32 %v934_v61 }
 0x2f0   :  { %v4970_v15 = vpop.eup %4969 }
 0x2f1   :  { %v4237_v61 = vadd.f32 -1.0, %v4970_v15 }
 0x2f8   :  { %v919_v3 = vpop.f32.mrf.mxu1 }
 0x2fa   :  { %v878_v7 = vpop.f32.mrf.mxu0  ;;  %v921_v5 = vpop.f32.mrf.mxu1 }
 0x2fb   :  { %v920_v17 = vadd.f32 %v919_v3, %v878_v7  ;;  %v4972_v7 = vpop.eup %4971 }
 0x2fc   :  { %v880_v63 = vpop.f32.mrf.mxu0  ;;  %v923_v20 = vpop.f32.mrf.mxu1 }
 0x2fd   :  { %v944_v56 = vadd.f32 %v920_v17, %v6776_v8  ;;  %v922_v57 = vadd.f32 %v921_v5, %v880_v63  ;;  %v4238_v17 = vadd.f32 -1.0, %v4972_v7 }
 0x2fe   :  { %v882_v16 = vpop.f32.mrf.mxu0  ;;  %v924_v54 = vpop.f32.mrf.mxu1 }
 0x2ff   :  { %v948_v59 = vmin.f32 %v944_v56, 0.0  ;;  %v945_v1 = vadd.f32 %v922_v57, %v6777_v13  ;;  %vm946_vm14 = vcmp.gt.f32.partialorder %v944_v56, 0.0 }
 0x300   :  { %v883_v52 = vpop.f32.mrf.mxu0 }
 0x301   :  { %v950_v2 = vmul.f32 1.442695, %v948_v59  ;;  %v949_v51 = vmin.f32 %v945_v1, 0.0  ;;  %v938_v59 = vsel %vm928_vm12, %v926_v53, %v4237_v61  ;;  %vm947_vm15 = vcmp.gt.f32.partialorder %v945_v1, 0.0 }
 0x302   :  { %v940_v7 = vmul.f32 %v938_v59, %v5601_v50 }
 0x303   :  { %4973 = vpow2.f32 %v950_v2  ;;  %v952_v0 = vmul.f32 1.442695, %v949_v51  ;;  %v939_v2 = vsel %vm929_vm13, %v927_v58, %v4238_v17 }
 0x304   :  { %v942_v61 = vadd.f32 %v940_v7, %v5607_v6 }
 0x305   :  { %4975 = vpow2.f32 %v952_v0 }
 0x30a   :  { %v1036_v3 = vpop.f32.mrf.mxu0 }
 0x30b   :  { %v1037_v20 = vadd.f32 %v1036_v3, %v6778_v14  ;;  %v941_v14 = vmul.f32 %v939_v2, %v5604_v60 }
 0x30c   :  { %v4611_v49 = vpop.f32.mrf.mxu0 }
 0x30d   :  { %v1045_v63 = vmin.f32 %v1037_v20, 0.0  ;;  %v943_v17 = vadd.f32 %v941_v14, %v5610_v9  ;;  %vm1043_vm3 = vcmp.gt.f32.partialorder %v1037_v20, 0.0 }
 0x30e   :  { %v1039_v5 = vpop.f32.mrf.mxu0 }
 0x30f   :  { %v1047_v16 = vmul.f32 1.442695, %v1045_v63  ;;  %v1040_v57 = vadd.f32 %v1039_v5, %v5448_v55 }
 0x310   :  { %v4974_v54 = vpop.eup %4973  ;;  %v4612_v52 = vpop.f32.mrf.mxu0 }
 0x311   :  { %v4239_v51 = vadd.f32 -1.0, %v4974_v54  ;;  %4977 = vpow2.f32 %v1047_v16  ;;  %v1046_v0 = vmin.f32 %v1040_v57, 0.0  ;;  %vm1044_vm4 = vcmp.gt.f32.partialorder %v1040_v57, 0.0 }
 0x312   :  { %v4976_v13 = vpop.eup %4975 }
 0x313   :  { %v956_v3 = vsel %vm946_vm14, %v944_v56, %v4239_v51  ;;  %v4240_v15 = vadd.f32 -1.0, %v4976_v13  ;;  %v1049_v49 = vmul.f32 1.442695, %v1046_v0 }
 0x314   :  { %v958_v63 = vmul.f32 %v956_v3, %v5601_v50 }
 0x315   :  { %v957_v5 = vsel %vm947_vm15, %v945_v1, %v4240_v15  ;;  %4979 = vpow2.f32 %v1049_v49 }
 0x316   :  { %v960_v53 = vadd.f32 %v958_v63, %v5607_v6  ;;  %v959_v58 = vmul.f32 %v957_v5, %v5604_v60 }
 0x318   :  { %v961_v13 = vadd.f32 %v959_v58, %v5610_v9  ;;  %v962_v56 = vmax.f32 %v942_v61, %v960_v53 }
 0x31a   :  { %v963_v16 = vmax.f32 %v943_v17, %v961_v13 }
 0x31c   :  { %v964_v54 = vmax.f32 %v962_v56, %v963_v16  ;;  %v6783_v56 = vld [vmem:[#allocation13_spill] sm:$0xff] }
 0x31e   :  { %v4978_v59 = vpop.eup %4977  ;;  %965 = vst [vmem:[#allocation2 + $0x1] sm:$0x1] %v964_v54  ;;  %966 = vst [vmem:[#allocation2 + $0x8] sm:$0x2] %v964_v54 }
 0x31f   :  { %967 = vst [vmem:[#allocation2 + $0xf] sm:$0x4] %v964_v54  ;;  %968 = vst [vmem:[#allocation2 + $0x16] sm:$0x8] %v964_v54  ;;  %v4254_v1 = vadd.f32 -1.0, %v4978_v59 }
 0x321   :  { %v1053_v52 = vsel %vm1043_vm3, %v1037_v20, %v4254_v1 }
 0x322   :  { %v4980_v2 = vpop.eup %4979  ;;  %v1055_v0 = vmul.f32 %v1053_v52, %v5451_v62 }
 0x323   :  { %v4255_v51 = vadd.f32 -1.0, %v4980_v2 }
 0x324   :  { %v1057_v15 = vadd.f32 %v1055_v0, %v5457_v10 }
 0x325   :  { %v1054_v3 = vsel %vm1044_vm4, %v1040_v57, %v4255_v51 }
 0x326   :  { %v1056_v14 = vmul.f32 %v1054_v3, %v5453_v4 }
 0x328   :  { %v1058_v49 = vadd.f32 %v1056_v14, %v5459_v11 }
 0x32a   :  { %v1059_v7 = vpack.c.bf16 %v1058_v49, %v1057_v15 }
 0x32c   :  { %4259 = vmatmul.mubr.msk.bf16.vlgmr.msra.gmra.mxu0 %vm295_vm5, %v1059_v7  ;;  %v1061_v63 = vrot.slane %v1059_v7, 2 }
 0x32d   :  { %1196 = vmatpush1.bf16.msra.mxu0 %v5262_v18  ;;  %1227 = vmatprep.mubr.bf16.mxu0 %v6772_v12 }
 0x32e   :  { %4257 = vmatmul.mubr.msk.bf16.vlgmr.msra.gmra.mxu1 %vm295_vm5, %v1061_v63  ;;  %1197 = vmatprep.subr.bf16.mxu0 %v5275_v22  ;;  %v6779_v22 = vld [vmem:[#allocation8_spill] sm:$0xff] }
 0x32f   :  { %1155 = vmatpush1.bf16.msra.mxu1 %v5270_v21  ;;  %1186 = vmatprep.mubr.bf16.mxu1 %v6772_v12 }
 0x330   :  { %1156 = vmatprep.subr.bf16.mxu1 %v5287_v24 }
 0x331   :  { %1198 = vmatpush1.bf16.msra.mxu0 %v5281_v23  ;;  %v4741_v23 = vld [vmem:[%s6707_s0 + $0x78] sm:$0xff]  }
 0x332   :  { %1199 = vmatprep.subr.bf16.mxu0 %v5299_v26  ;;  %v6780_v26 = vmov 0.0  }
 0x333   :  { %1157 = vmatpush1.bf16.msra.mxu1 %v5293_v25  ;;  %v1150_v25 = vrot.slane %v1059_v7, 4 }
 0x334   :  { %1158 = vmatprep.subr.bf16.mxu1 %v5311_v28 }
 0x335   :  { %1200 = vmatpush1.bf16.msra.mxu0 %v5305_v27  ;;  %v4742_v27 = vld [vmem:[%s6707_s0 + $0x70] sm:$0xff]  }
 0x336   :  { %1201 = vmatprep.subr.bf16.mxu0 %v5323_v30  ;;  %v5797_v30 = vld [vmem:[%s6710_s3 + $0xd8] ss:$8 sps:$4 sm:$0xff]  }
 0x337   :  { %1159 = vmatpush1.bf16.msra.mxu1 %v5317_v29 }
 0x338   :  { %1160 = vmatprep.subr.bf16.mxu1 %v5335_v32 }
 0x339   :  { %1202 = vmatpush1.bf16.msra.mxu0 %v5329_v31  ;;  %v4744_v31 = vld [vmem:[%s6707_s0 + $0x60] sm:$0xff]  }
 0x33a   :  { %1203 = vmatprep.subr.bf16.mxu0 %v5347_v34  ;;  %v5838_v34 = vld [vmem:[%s6710_s3 + $0x54] ss:$8 sps:$4 sm:$0xff]  }
 0x33b   :  { %1161 = vmatpush1.bf16.msra.mxu1 %v5341_v33 }
 0x33c   :  { %1162 = vmatprep.subr.bf16.mxu1 %v5359_v36 }
 0x33d   :  { %1204 = vmatpush1.bf16.msra.mxu0 %v5353_v35  ;;  %v5846_v35 = vld [vmem:[%s6710_s3 + $0x50] ss:$8 sps:$4 sm:$0xff]  }
 0x33e   :  { %1205 = vmatprep.subr.bf16.mxu0 %v5371_v38  ;;  %v5867_v38 = vld [vmem:[%s6710_s3 + $0x34] ss:$8 sps:$4 sm:$0xff]  }
 0x33f   :  { %1163 = vmatpush1.bf16.msra.mxu1 %v5365_v37 }
 0x340   :  { %1164 = vmatprep.subr.bf16.mxu1 %v5383_v40 }
 0x341   :  { %1206 = vmatpush1.bf16.msra.mxu0 %v5377_v39  ;;  %v5873_v39 = vld [vmem:[%s6710_s3 + $0x30] ss:$8 sps:$4 sm:$0xff]  }
 0x342   :  { %1207 = vmatprep.subr.bf16.mxu0 %v5395_v42  ;;  %v5891_v42 = vld [vmem:[%s6710_s3 + $0x14] ss:$8 sps:$4 sm:$0xff]  }
 0x343   :  { %1165 = vmatpush1.bf16.msra.mxu1 %v5389_v41 }
 0x344   :  { %1166 = vmatprep.subr.bf16.mxu1 %v5407_v44 }
 0x345   :  { %1208 = vmatpush1.bf16.msra.mxu0 %v5401_v43  ;;  %v5897_v43 = vld [vmem:[%s6710_s3 + $0x10] ss:$8 sps:$4 sm:$0xff]  }
 0x346   :  { %1209 = vmatprep.subr.bf16.mxu0 %v5419_v46 }
 0x347   :  { %1167 = vmatpush1.bf16.msra.mxu1 %v5413_v45 }
 0x348   :  { %1168 = vmatprep.subr.bf16.mxu1 %v5429_v48 }
 0x349   :  { %1210 = vmatpush1.bf16.msra.mxu0 %v5424_v47 }
 0x34a   :  { %4283 = vmatprep.subr.msk.bf16.mxu0 %vm299_vm2, %v5264_v19 }
 0x34b   :  { %1169 = vmatpush1.bf16.msra.mxu1 %v6779_v22 }
 0x34c   :  { %4263 = vmatmul.mubr.msk.bf16.vlgmr.msra.gmra.mxu0 %vm295_vm5, %v1061_v63  ;;  %4613 = vmatprep.subr.bf16.mxu1 %v6780_v26 }
 0x34d   :  { %1376 = vmatpush1.bf16.msra.mxu0 %v5270_v21  ;;  %1407 = vmatprep.mubr.bf16.mxu0 %v6772_v12 }
 0x34e   :  { %4261 = vmatmul.mubr.msk.bf16.vlgmr.msra.gmra.mxu1 %vm295_vm5, %v1150_v25  ;;  %1377 = vmatprep.subr.bf16.mxu0 %v5287_v24  ;;  %v4743_v24 = vld [vmem:[%s6707_s0 + $0x68] sm:$0xff]  }
 0x34f   :  { %4614 = vmatpush3.bf16.msra.mxu1 %v4741_v23  ;;  %4621 = vmatprep.mubr.msk.bf16.mxu1 %vm5145_vm0, %v6780_v26 }
 0x350   :  { %4615 = vmatprep.subr.bf16.mxu1 %v6780_v26 }
 0x351   :  { %1378 = vmatpush1.bf16.msra.mxu0 %v5797_v30 }
 0x352   :  { %1379 = vmatprep.subr.bf16.mxu0 %v5311_v28  ;;  %v6781_v28 = vld [vmem:[#allocation7_spill] sm:$0xff] }
 0x353   :  { %4616 = vmatpush3.bf16.msra.mxu1 %v4742_v27 }
 0x354   :  { %4617 = vmatprep.subr.bf16.mxu1 %v6780_v26 }
 0x355   :  { %1380 = vmatpush1.bf16.msra.mxu0 %v5317_v29  ;;  %v6782_v29 = vld [vmem:[#allocation18_spill] sm:$0xff] }
 0x356   :  { %1381 = vmatprep.subr.bf16.mxu0 %v5335_v32  ;;  %v5824_v32 = vld [vmem:[%s6710_s3 + $0x64] ss:$8 sps:$4 sm:$0xff]  }
 0x357   :  { %4618 = vmatpush3.bf16.msra.mxu1 %v4743_v24 }
 0x358   :  { %4619 = vmatprep.subr.bf16.mxu1 %v6780_v26 }
 0x359   :  { %1382 = vmatpush1.bf16.msra.mxu0 %v5341_v33  ;;  %v5832_v33 = vld [vmem:[%s6710_s3 + $0x60] ss:$8 sps:$4 sm:$0xff]  }
 0x35a   :  { %1383 = vmatprep.subr.bf16.mxu0 %v5359_v36  ;;  %v5852_v36 = vld [vmem:[%s6710_s3 + $0x44] ss:$8 sps:$4 sm:$0xff]  }
 0x35b   :  { %4620 = vmatpush3.bf16.msra.mxu1 %v4744_v31 }
 0x35c   :  { %4285 = vmatprep.subr.msk.bf16.mxu1 %vm299_vm2, %v6781_v28 }
 0x35d   :  { %1384 = vmatpush1.bf16.msra.mxu0 %v5365_v37  ;;  %v5861_v37 = vld [vmem:[%s6710_s3 + $0x40] ss:$8 sps:$4 sm:$0xff]  }
 0x35e   :  { %4622 = vmatmul.mubr.msk.bf16.vlgmr.msra.gmra.mxu1 %vm136_vm1, %v6782_v29  ;;  %1385 = vmatprep.subr.bf16.mxu0 %v5383_v40  ;;  %v5879_v40 = vld [vmem:[%s6710_s3 + $0x24] ss:$8 sps:$4 sm:$0xff]  }
 0x35f   :  { %1420 = vmatpush1.bf16.msra.mxu1 %v5262_v18  ;;  %1451 = vmatprep.mubr.bf16.mxu1 %v6772_v12 }
 0x360   :  { %1421 = vmatprep.subr.bf16.mxu1 %v5824_v32 }
 0x361   :  { %1386 = vmatpush1.bf16.msra.mxu0 %v5389_v41  ;;  %v5885_v41 = vld [vmem:[%s6710_s3 + $0x20] ss:$8 sps:$4 sm:$0xff]  }
 0x362   :  { %1387 = vmatprep.subr.bf16.mxu0 %v5407_v44 }
 0x363   :  { %1422 = vmatpush1.bf16.msra.mxu1 %v5832_v33 }
 0x364   :  { %1423 = vmatprep.subr.bf16.mxu1 %v5838_v34 }
 0x365   :  { %1388 = vmatpush1.bf16.msra.mxu0 %v5413_v45 }
 0x366   :  { %1389 = vmatprep.subr.bf16.mxu0 %v5429_v48 }
 0x367   :  { %1424 = vmatpush1.bf16.msra.mxu1 %v5846_v35 }
 0x368   :  { %1425 = vmatprep.subr.bf16.mxu1 %v5852_v36 }
 0x369   :  { %1390 = vmatpush1.bf16.msra.mxu0 %v6779_v22 }
 0x36a   :  { %4287 = vmatprep.subr.msk.bf16.mxu0 %vm299_vm2, %v5264_v19 }
 0x36b   :  { %1426 = vmatpush1.bf16.msra.mxu1 %v5861_v37 }
 0x36c   :  { %1427 = vmatprep.subr.bf16.mxu1 %v5867_v38 }
 0x36f   :  { %1428 = vmatpush1.bf16.msra.mxu1 %v5873_v39 }
 0x370   :  { %1429 = vmatprep.subr.bf16.mxu1 %v5879_v40 }
 0x373   :  { %1430 = vmatpush1.bf16.msra.mxu1 %v5885_v41 }
 0x374   :  { %1431 = vmatprep.subr.bf16.mxu1 %v5891_v42 }
 0x377   :  { %1432 = vmatpush1.bf16.msra.mxu1 %v5897_v43 }
 0x378   :  { %1433 = vmatprep.subr.bf16.mxu1 %v5419_v46 }
 0x37b   :  { %1434 = vmatpush1.bf16.msra.mxu1 %v5424_v47 }
 0x37c   :  { %4289 = vmatprep.subr.msk.bf16.mxu1 %vm299_vm2, %v6781_v28 }
 0x3ec   :  { %v1143_v44 = vpop.f32.mrf.mxu0 }
 0x3ee   :  { %v1099_v45 = vpop.f32.mrf.mxu1  ;;  %v1145_v48 = vpop.f32.mrf.mxu0 }
 0x3ef   :  { %v1144_v61 = vadd.f32 %v1143_v44, %v1099_v45 }
 0x3f0   :  { %v1101_v20 = vpop.f32.mrf.mxu1  ;;  %v1147_v57 = vpop.f32.mrf.mxu0 }
 0x3f1   :  { %v1146_v17 = vadd.f32 %v1145_v48, %v1101_v20  ;;  %v1236_v13 = vadd.f32 %v1144_v61, %v6776_v8  ;;  %v6784_v48 = vld [vmem:[#allocation9_spill] sm:$0xff] }
 0x3f2   :  { %v1103_v5 = vpop.f32.mrf.mxu1  ;;  %v1148_v53 = vpop.f32.mrf.mxu0 }
 0x3f3   :  { %v1237_v16 = vadd.f32 %v1146_v17, %v6783_v56  ;;  %v1240_v46 = vmin.f32 %v1236_v13, 0.0  ;;  %vm1238_vm6 = vcmp.gt.f32.partialorder %v1236_v13, 0.0 }
 0x3f4   :  { %v1104_v58 = vpop.f32.mrf.mxu1 }
 0x3f5   :  { %v1241_v54 = vmin.f32 %v1237_v16, 0.0  ;;  %v1242_v47 = vmul.f32 1.442695, %v1240_v46  ;;  %vm1239_vm7 = vcmp.gt.f32.partialorder %v1237_v16, 0.0 }
 0x3f7   :  { %v1244_v1 = vmul.f32 1.442695, %v1241_v54  ;;  %4981 = vpow2.f32 %v1242_v47 }
 0x3f9   :  { %4983 = vpow2.f32 %v1244_v1 }
 0x404   :  { %v4982_v31 = vpop.eup %4981 }
 0x405   :  { %v4264_v57 = vadd.f32 -1.0, %v4982_v31 }
 0x406   :  { %v4984_v44 = vpop.eup %4983 }
 0x407   :  { %v4265_v53 = vadd.f32 -1.0, %v4984_v44  ;;  %v1248_v47 = vsel %vm1238_vm6, %v1236_v13, %v4264_v57 }
 0x409   :  { %v1249_v1 = vsel %vm1239_vm7, %v1237_v16, %v4265_v53 }
 0x40c   :  { %v1229_v59 = vpop.f32.mrf.mxu0 }
 0x40e   :  { %v1188_v52 = vpop.f32.mrf.mxu1  ;;  %v1231_v2 = vpop.f32.mrf.mxu0 }
 0x40f   :  { %v1230_v51 = vadd.f32 %v1229_v59, %v1188_v52 }
 0x410   :  { %v1190_v0 = vpop.f32.mrf.mxu1  ;;  %v1233_v3 = vpop.f32.mrf.mxu0 }
 0x411   :  { %v1254_v14 = vadd.f32 %v1230_v51, %v6776_v8  ;;  %v1232_v15 = vadd.f32 %v1231_v2, %v1190_v0 }
 0x412   :  { %v1192_v49 = vpop.f32.mrf.mxu1  ;;  %v1234_v7 = vpop.f32.mrf.mxu0 }
 0x413   :  { %v1258_v63 = vmin.f32 %v1254_v14, 0.0  ;;  %v1255_v22 = vadd.f32 %v1232_v15, %v6783_v56  ;;  %vm1256_vm8 = vcmp.gt.f32.partialorder %v1254_v14, 0.0  ;;  %v1250_v49 = vmul.f32 %v1248_v47, %v5601_v50 }
 0x414   :  { %v1193_v23 = vpop.f32.mrf.mxu1  ;;  %v1251_v7 = vmul.f32 %v1249_v1, %v5604_v60 }
 0x415   :  { %v1260_v25 = vmul.f32 1.442695, %v1258_v63  ;;  %v1259_v27 = vmin.f32 %v1255_v22, 0.0  ;;  %vm1257_vm9 = vcmp.gt.f32.partialorder %v1255_v22, 0.0 }
 0x417   :  { %4985 = vpow2.f32 %v1260_v25  ;;  %v1262_v24 = vmul.f32 1.442695, %v1259_v27  ;;  %v1252_v25 = vadd.f32 %v1250_v49, %v5607_v6  ;;  %v1253_v27 = vadd.f32 %v1251_v7, %v5610_v9  ;;  %v5991_v49 = vld [vmem:[%s6710_s3 + $0x98] ss:$8 sps:$4 sm:$0xff]   ;;  %v5997_v7 = vld [vmem:[%s6710_s3 + $0x8c] ss:$8 sps:$4 sm:$0xff]  }
 0x419   :  { %4987 = vpow2.f32 %v1262_v24 }
 0x41e   :  { %v1346_v45 = vpop.f32.mrf.mxu1 }
 0x41f   :  { %v1347_v20 = vadd.f32 %v1346_v45, %v6784_v48 }
 0x420   :  { %v4623_v5 = vpop.f32.mrf.mxu1 }
 0x421   :  { %v1355_v58 = vmin.f32 %v1347_v20, 0.0  ;;  %vm1353_vm10 = vcmp.gt.f32.partialorder %v1347_v20, 0.0 }
 0x422   :  { %v1349_v61 = vpop.f32.mrf.mxu1 }
 0x423   :  { %v1357_v17 = vmul.f32 1.442695, %v1355_v58  ;;  %v1350_v46 = vadd.f32 %v1349_v61, %v5448_v55 }
 0x424   :  { %v4986_v54 = vpop.eup %4985  ;;  %v4624_v59 = vpop.f32.mrf.mxu1 }
 0x425   :  { %v4266_v52 = vadd.f32 -1.0, %v4986_v54  ;;  %4989 = vpow2.f32 %v1357_v17  ;;  %v1356_v2 = vmin.f32 %v1350_v46, 0.0  ;;  %vm1354_vm11 = vcmp.gt.f32.partialorder %v1350_v46, 0.0 }
 0x426   :  { %v4988_v51 = vpop.eup %4987 }
 0x427   :  { %v1266_v0 = vsel %vm1256_vm8, %v1254_v14, %v4266_v52  ;;  %v4267_v3 = vadd.f32 -1.0, %v4988_v51  ;;  %v1359_v15 = vmul.f32 1.442695, %v1356_v2  ;;  %v5949_v52 = vld [vmem:[%s6710_s3 + $0xc8] ss:$8 sps:$4 sm:$0xff]  }
 0x428   :  { %v1268_v63 = vmul.f32 %v1266_v0, %v5601_v50  ;;  %v5955_v2 = vld [vmem:[%s6710_s3 + $0xbc] ss:$8 sps:$4 sm:$0xff]   ;;  %v5963_v51 = vld [vmem:[%s6710_s3 + $0xb8] ss:$8 sps:$4 sm:$0xff]   ;;  %v5969_v0 = vld [vmem:[%s6710_s3 + $0xac] ss:$8 sps:$4 sm:$0xff]  }
 0x429   :  { %v1267_v23 = vsel %vm1257_vm9, %v1255_v22, %v4267_v3  ;;  %4991 = vpow2.f32 %v1359_v15  ;;  %v5977_v3 = vld [vmem:[%s6710_s3 + $0xa8] ss:$8 sps:$4 sm:$0xff]   ;;  %v5983_v15 = vld [vmem:[%s6710_s3 + $0x9c] ss:$8 sps:$4 sm:$0xff]  }
 0x42a   :  { %v1270_v13 = vadd.f32 %v1268_v63, %v5607_v6  ;;  %v1269_v16 = vmul.f32 %v1267_v23, %v5604_v60  ;;  %v6004_v63 = vld [vmem:[%s6710_s3 + $0x4] ss:$8 sps:$4 sm:$0xff]   ;;  %v6010_v23 = vld [vmem:[%s6710_s3 + $0x88] ss:$8 sps:$4 sm:$0xff]  }
 0x42c   :  { %v1271_v14 = vadd.f32 %v1269_v16, %v5610_v9  ;;  %v1272_v24 = vmax.f32 %v1252_v25, %v1270_v13  ;;  %v6016_v13 = vld [vmem:[%s6710_s3 + $0x7c] ss:$8 sps:$4 sm:$0xff]   ;;  %v6022_v16 = vld [vmem:[%s6710_s3] ss:$8 sps:$4 sm:$0xff]  }
 0x42d   :  { %v6030_v25 = vld [vmem:[%s6710_s3 + $0x78] ss:$8 sps:$4 sm:$0xff]  }
 0x42e   :  { %v1273_v31 = vmax.f32 %v1253_v27, %v1271_v14  ;;  %6785 = vst [vmem:[#allocation12_spill] sm:$0xff] %v6030_v25  ;;  %v4745_v27 = vld [vmem:[%s6707_s0 + $0x98] sm:$0xff]  }
 0x430   :  { %v1274_v44 = vmax.f32 %v1272_v24, %v1273_v31  ;;  %v4746_v24 = vld [vmem:[%s6707_s0 + $0x90] sm:$0xff]   ;;  %v4747_v31 = vld [vmem:[%s6707_s0 + $0x88] sm:$0xff]  }
 0x432   :  { %v4990_v45 = vpop.eup %4989  ;;  %1275 = vst [vmem:[#allocation2 + $0x2] sm:$0x1] %v1274_v44  ;;  %1276 = vst [vmem:[#allocation2 + $0x9] sm:$0x2] %v1274_v44 }
 0x433   :  { %1277 = vst [vmem:[#allocation2 + $0x10] sm:$0x4] %v1274_v44  ;;  %1278 = vst [vmem:[#allocation2 + $0x17] sm:$0x8] %v1274_v44  ;;  %v4281_v22 = vadd.f32 -1.0, %v4990_v45  ;;  %v4748_v44 = vld [vmem:[%s6707_s0 + $0x80] sm:$0xff]  }
 0x435   :  { %v1363_v57 = vsel %vm1353_vm10, %v1347_v20, %v4281_v22  ;;  %v5932_v20 = vld [vmem:[%s6710_s3 + $0xdc] ss:$8 sps:$4 sm:$0xff]  }
 0x436   :  { %v4992_v5 = vpop.eup %4991  ;;  %v1365_v58 = vmul.f32 %v1363_v57, %v5451_v62 }
 0x437   :  { %v4282_v53 = vadd.f32 -1.0, %v4992_v5 }
 0x438   :  { %v1367_v54 = vadd.f32 %v1365_v58, %v5457_v10 }
 0x439   :  { %v1364_v61 = vsel %vm1354_vm11, %v1350_v46, %v4282_v53  ;;  %v5941_v46 = vld [vmem:[%s6710_s3 + $0xcc] ss:$8 sps:$4 sm:$0xff]  }
 0x43a   :  { %v1366_v17 = vmul.f32 %v1364_v61, %v5453_v4 }
 0x43c   :  { %v1368_v47 = vadd.f32 %v1366_v17, %v5459_v11 }
 0x43e   :  { %v1369_v59 = vpack.c.bf16 %v1368_v47, %v1367_v54 }
 0x440   :  { %4286 = vmatmul.mubr.msk.bf16.vlgmr.msra.gmra.mxu1 %vm295_vm5, %v1369_v59  ;;  %v1371_v1 = vrot.slane %v1369_v59, 2  ;;  %v1460_v14 = vrot.slane %v1369_v59, 4 }
 0x441   :  { %1506 = vmatpush1.bf16.msra.mxu1 %v5262_v18  ;;  %1537 = vmatprep.mubr.bf16.mxu1 %v6772_v12 }
 0x442   :  { %4284 = vmatmul.mubr.msk.bf16.vlgmr.msra.gmra.mxu0 %vm295_vm5, %v1371_v1  ;;  %1507 = vmatprep.subr.bf16.mxu1 %v5824_v32 }
 0x443   :  { %1465 = vmatpush1.bf16.msra.mxu0 %v5270_v21  ;;  %1496 = vmatprep.mubr.bf16.mxu0 %v6772_v12 }
 0x444   :  { %1466 = vmatprep.subr.bf16.mxu0 %v5932_v20 }
 0x445   :  { %1508 = vmatpush1.bf16.msra.mxu1 %v5832_v33 }
 0x446   :  { %1509 = vmatprep.subr.bf16.mxu1 %v5838_v34 }
 0x447   :  { %1467 = vmatpush1.bf16.msra.mxu0 %v5797_v30 }
 0x448   :  { %1468 = vmatprep.subr.bf16.mxu0 %v5941_v46 }
 0x449   :  { %1510 = vmatpush1.bf16.msra.mxu1 %v5846_v35 }
 0x44a   :  { %1511 = vmatprep.subr.bf16.mxu1 %v5852_v36 }
 0x44b   :  { %1469 = vmatpush1.bf16.msra.mxu0 %v5949_v52 }
 0x44c   :  { %1470 = vmatprep.subr.bf16.mxu0 %v5955_v2 }
 0x44d   :  { %1512 = vmatpush1.bf16.msra.mxu1 %v5861_v37 }
 0x44e   :  { %1513 = vmatprep.subr.bf16.mxu1 %v5867_v38 }
 0x44f   :  { %1471 = vmatpush1.bf16.msra.mxu0 %v5963_v51 }
 0x450   :  { %1472 = vmatprep.subr.bf16.mxu0 %v5969_v0 }
 0x451   :  { %1514 = vmatpush1.bf16.msra.mxu1 %v5873_v39 }
 0x452   :  { %1515 = vmatprep.subr.bf16.mxu1 %v5879_v40 }
 0x453   :  { %1473 = vmatpush1.bf16.msra.mxu0 %v5977_v3 }
 0x454   :  { %1474 = vmatprep.subr.bf16.mxu0 %v5983_v15 }
 0x455   :  { %1516 = vmatpush1.bf16.msra.mxu1 %v5885_v41 }
 0x456   :  { %1517 = vmatprep.subr.bf16.mxu1 %v5891_v42 }
 0x457   :  { %1475 = vmatpush1.bf16.msra.mxu0 %v5991_v49 }
 0x458   :  { %1476 = vmatprep.subr.bf16.mxu0 %v5997_v7 }
 0x459   :  { %1518 = vmatpush1.bf16.msra.mxu1 %v5897_v43 }
 0x45a   :  { %1519 = vmatprep.subr.bf16.mxu1 %v6004_v63 }
 0x45b   :  { %1477 = vmatpush1.bf16.msra.mxu0 %v6010_v23 }
 0x45c   :  { %1478 = vmatprep.subr.bf16.mxu0 %v6016_v13 }
 0x45d   :  { %1520 = vmatpush1.bf16.msra.mxu1 %v6022_v16 }
 0x45e   :  { %4310 = vmatprep.subr.msk.bf16.mxu1 %vm299_vm2, %v5264_v19 }
 0x45f   :  { %1479 = vmatpush1.bf16.msra.mxu0 %v6030_v25 }
 0x460   :  { %4290 = vmatmul.mubr.msk.bf16.vlgmr.msra.gmra.mxu1 %vm295_vm5, %v1371_v1  ;;  %4625 = vmatprep.subr.bf16.mxu0 %v6780_v26 }
 0x461   :  { %1686 = vmatpush1.bf16.msra.mxu1 %v5270_v21  ;;  %1717 = vmatprep.mubr.bf16.mxu1 %v6772_v12 }
 0x462   :  { %4288 = vmatmul.mubr.msk.bf16.vlgmr.msra.gmra.mxu0 %vm295_vm5, %v1460_v14  ;;  %1687 = vmatprep.subr.bf16.mxu1 %v5932_v20 }
 0x463   :  { %4626 = vmatpush3.bf16.msra.mxu0 %v4745_v27  ;;  %4633 = vmatprep.mubr.msk.bf16.mxu0 %vm5145_vm0, %v6780_v26 }
 0x464   :  { %4627 = vmatprep.subr.bf16.mxu0 %v6780_v26 }
 0x465   :  { %1688 = vmatpush1.bf16.msra.mxu1 %v5797_v30 }
 0x466   :  { %1689 = vmatprep.subr.bf16.mxu1 %v5941_v46 }
 0x467   :  { %4628 = vmatpush3.bf16.msra.mxu0 %v4746_v24 }
 0x468   :  { %4629 = vmatprep.subr.bf16.mxu0 %v6780_v26 }
 0x469   :  { %1690 = vmatpush1.bf16.msra.mxu1 %v5949_v52 }
 0x46a   :  { %1691 = vmatprep.subr.bf16.mxu1 %v5955_v2 }
 0x46b   :  { %4630 = vmatpush3.bf16.msra.mxu0 %v4747_v31 }
 0x46c   :  { %4631 = vmatprep.subr.bf16.mxu0 %v6780_v26 }
 0x46d   :  { %1692 = vmatpush1.bf16.msra.mxu1 %v5963_v51 }
 0x46e   :  { %1693 = vmatprep.subr.bf16.mxu1 %v5969_v0 }
 0x46f   :  { %4632 = vmatpush3.bf16.msra.mxu0 %v4748_v44 }
 0x470   :  { %4312 = vmatprep.subr.msk.bf16.mxu0 %vm299_vm2, %v6781_v28 }
 0x471   :  { %1694 = vmatpush1.bf16.msra.mxu1 %v5977_v3 }
 0x472   :  { %4634 = vmatmul.mubr.msk.bf16.vlgmr.msra.gmra.mxu0 %vm136_vm1, %v6782_v29  ;;  %1695 = vmatprep.subr.bf16.mxu1 %v5983_v15 }
 0x473   :  { %1730 = vmatpush1.bf16.msra.mxu0 %v5262_v18  ;;  %1761 = vmatprep.mubr.bf16.mxu0 %v6772_v12 }
 0x474   :  { %1731 = vmatprep.subr.bf16.mxu0 %v5824_v32 }
 0x475   :  { %1696 = vmatpush1.bf16.msra.mxu1 %v5991_v49 }
 0x476   :  { %1697 = vmatprep.subr.bf16.mxu1 %v5997_v7 }
 0x477   :  { %1732 = vmatpush1.bf16.msra.mxu0 %v5832_v33 }
 0x478   :  { %1733 = vmatprep.subr.bf16.mxu0 %v5838_v34 }
 0x479   :  { %1698 = vmatpush1.bf16.msra.mxu1 %v6010_v23 }
 0x47a   :  { %1699 = vmatprep.subr.bf16.mxu1 %v6016_v13 }
 0x47b   :  { %1734 = vmatpush1.bf16.msra.mxu0 %v5846_v35 }
 0x47c   :  { %1735 = vmatprep.subr.bf16.mxu0 %v5852_v36 }
 0x47d   :  { %1700 = vmatpush1.bf16.msra.mxu1 %v6030_v25 }
 0x47e   :  { %4314 = vmatprep.subr.msk.bf16.mxu1 %vm299_vm2, %v5264_v19 }
 0x47f   :  { %1736 = vmatpush1.bf16.msra.mxu0 %v5861_v37 }
 0x480   :  { %1737 = vmatprep.subr.bf16.mxu0 %v5867_v38 }
 0x483   :  { %1738 = vmatpush1.bf16.msra.mxu0 %v5873_v39 }
 0x484   :  { %1739 = vmatprep.subr.bf16.mxu0 %v5879_v40 }
 0x487   :  { %1740 = vmatpush1.bf16.msra.mxu0 %v5885_v41 }
 0x488   :  { %1741 = vmatprep.subr.bf16.mxu0 %v5891_v42 }
 0x48b   :  { %1742 = vmatpush1.bf16.msra.mxu0 %v5897_v43 }
 0x48c   :  { %1743 = vmatprep.subr.bf16.mxu0 %v6004_v63 }
 0x48f   :  { %1744 = vmatpush1.bf16.msra.mxu0 %v6022_v16 }
 0x490   :  { %4316 = vmatprep.subr.msk.bf16.mxu0 %vm299_vm2, %v6781_v28 }
 0x500   :  { %v1453_v29 = vpop.f32.mrf.mxu1 }
 0x502   :  { %v1409_v45 = vpop.f32.mrf.mxu0  ;;  %v1455_v22 = vpop.f32.mrf.mxu1 }
 0x503   :  { %v1454_v17 = vadd.f32 %v1453_v29, %v1409_v45 }
 0x504   :  { %v1411_v57 = vpop.f32.mrf.mxu0  ;;  %v1457_v5 = vpop.f32.mrf.mxu1 }
 0x505   :  { %v1456_v54 = vadd.f32 %v1455_v22, %v1411_v57  ;;  %v1546_v47 = vadd.f32 %v1454_v17, %v6776_v8 }
 0x506   :  { %v1413_v53 = vpop.f32.mrf.mxu0  ;;  %v1458_v58 = vpop.f32.mrf.mxu1 }
 0x507   :  { %v1547_v59 = vadd.f32 %v1456_v54, %v6783_v56  ;;  %v1550_v1 = vmin.f32 %v1546_v47, 0.0  ;;  %vm1548_vm12 = vcmp.gt.f32.partialorder %v1546_v47, 0.0 }
 0x508   :  { %v1414_v61 = vpop.f32.mrf.mxu0 }
 0x509   :  { %v1551_v27 = vmin.f32 %v1547_v59, 0.0  ;;  %v1552_v14 = vmul.f32 1.442695, %v1550_v1  ;;  %vm1549_vm13 = vcmp.gt.f32.partialorder %v1547_v59, 0.0 }
 0x50b   :  { %v1554_v31 = vmul.f32 1.442695, %v1551_v27  ;;  %4993 = vpow2.f32 %v1552_v14 }
 0x50d   :  { %4995 = vpow2.f32 %v1554_v31 }
 0x518   :  { %v4994_v27 = vpop.eup %4993 }
 0x519   :  { %v4291_v31 = vadd.f32 -1.0, %v4994_v27 }
 0x520   :  { %v1539_v24 = vpop.f32.mrf.mxu1 }
 0x522   :  { %v1498_v44 = vpop.f32.mrf.mxu0  ;;  %v1541_v28 = vpop.f32.mrf.mxu1 }
 0x523   :  { %v1540_v26 = vadd.f32 %v1539_v24, %v1498_v44  ;;  %v4996_v24 = vpop.eup %4995 }
 0x524   :  { %v1500_v25 = vpop.f32.mrf.mxu0  ;;  %v1543_v5 = vpop.f32.mrf.mxu1 }
 0x525   :  { %v1564_v53 = vadd.f32 %v1540_v26, %v6776_v8  ;;  %v1542_v29 = vadd.f32 %v1541_v28, %v1500_v25  ;;  %v4292_v26 = vadd.f32 -1.0, %v4996_v24 }
 0x526   :  { %v1502_v45 = vpop.f32.mrf.mxu0  ;;  %v1544_v22 = vpop.f32.mrf.mxu1 }
 0x527   :  { %v1568_v57 = vmin.f32 %v1564_v53, 0.0  ;;  %v1565_v58 = vadd.f32 %v1542_v29, %v6783_v56  ;;  %vm1566_vm14 = vcmp.gt.f32.partialorder %v1564_v53, 0.0 }
 0x528   :  { %v1503_v61 = vpop.f32.mrf.mxu0 }
 0x529   :  { %v1570_v17 = vmul.f32 1.442695, %v1568_v57  ;;  %v1569_v54 = vmin.f32 %v1565_v58, 0.0  ;;  %v1558_v57 = vsel %vm1548_vm12, %v1546_v47, %v4291_v31  ;;  %vm1567_vm15 = vcmp.gt.f32.partialorder %v1565_v58, 0.0 }
 0x52a   :  { %v1560_v24 = vmul.f32 %v1558_v57, %v5601_v50 }
 0x52b   :  { %4997 = vpow2.f32 %v1570_v17  ;;  %v1572_v1 = vmul.f32 1.442695, %v1569_v54  ;;  %v1559_v17 = vsel %vm1549_vm13, %v1547_v59, %v4292_v26 }
 0x52c   :  { %v1562_v31 = vadd.f32 %v1560_v24, %v5607_v6 }
 0x52d   :  { %4999 = vpow2.f32 %v1572_v1 }
 0x532   :  { %v1656_v14 = vpop.f32.mrf.mxu0 }
 0x533   :  { %v1657_v44 = vadd.f32 %v1656_v14, %v6784_v48  ;;  %v1561_v48 = vmul.f32 %v1559_v17, %v5604_v60 }
 0x534   :  { %v4635_v5 = vpop.f32.mrf.mxu0 }
 0x535   :  { %v1665_v28 = vmin.f32 %v1657_v44, 0.0  ;;  %v1563_v26 = vadd.f32 %v1561_v48, %v5610_v9  ;;  %vm1663_vm3 = vcmp.gt.f32.partialorder %v1657_v44, 0.0 }
 0x536   :  { %v1659_v25 = vpop.f32.mrf.mxu0 }
 0x537   :  { %v1667_v45 = vmul.f32 1.442695, %v1665_v28  ;;  %v1660_v29 = vadd.f32 %v1659_v25, %v5448_v55 }
 0x538   :  { %v4998_v22 = vpop.eup %4997  ;;  %v4636_v61 = vpop.f32.mrf.mxu0 }
 0x539   :  { %v4293_v54 = vadd.f32 -1.0, %v4998_v22  ;;  %5001 = vpow2.f32 %v1667_v45  ;;  %v1666_v1 = vmin.f32 %v1660_v29, 0.0  ;;  %vm1664_vm4 = vcmp.gt.f32.partialorder %v1660_v29, 0.0 }
 0x53a   :  { %v5000_v56 = vpop.eup %4999 }
 0x53b   :  { %v1576_v14 = vsel %vm1566_vm14, %v1564_v53, %v4293_v54  ;;  %v4294_v27 = vadd.f32 -1.0, %v5000_v56  ;;  %v1669_v5 = vmul.f32 1.442695, %v1666_v1 }
 0x53c   :  { %v1578_v28 = vmul.f32 %v1576_v14, %v5601_v50 }
 0x53d   :  { %v1577_v25 = vsel %vm1567_vm15, %v1565_v58, %v4294_v27  ;;  %5003 = vpow2.f32 %v1669_v5 }
 0x53e   :  { %v1580_v47 = vadd.f32 %v1578_v28, %v5607_v6  ;;  %v1579_v59 = vmul.f32 %v1577_v25, %v5604_v60 }
 0x540   :  { %v1581_v56 = vadd.f32 %v1579_v59, %v5610_v9  ;;  %v1582_v53 = vmax.f32 %v1562_v31, %v1580_v47  ;;  %v6787_v47 = vmov 0.0   ;;  %v4750_v59 = vld [vmem:[%s6707_s0 + $0xb0] sm:$0xff]   ;;  %v4751_v31 = vld [vmem:[%s6707_s0 + $0xa8] sm:$0xff]  }
 0x542   :  { %v1583_v45 = vmax.f32 %v1563_v26, %v1581_v56  ;;  %v4752_v26 = vld [vmem:[%s6707_s0 + $0xa0] sm:$0xff]  }
 0x543   :  { %v6788_v56 = vld [vmem:[#allocation7_spill] sm:$0xff] }
 0x544   :  { %v1584_v22 = vmax.f32 %v1582_v53, %v1583_v45  ;;  %v6182_v53 = vld [vmem:[%s6708_s1] sm:$0x3f]  }
 0x545   :  { %6789 = vst [vmem:[#allocation8_spill] sm:$0xff] %v6182_v53 }
 0x546   :  { %v5002_v57 = vpop.eup %5001  ;;  %1585 = vst [vmem:[#allocation2 + $0x3] sm:$0x1] %v1584_v22  ;;  %1586 = vst [vmem:[#allocation2 + $0xa] sm:$0x2] %v1584_v22 }
 0x547   :  { %1587 = vst [vmem:[#allocation2 + $0x11] sm:$0x4] %v1584_v22  ;;  %1588 = vst [vmem:[#allocation2 + $0x18] sm:$0x8] %v1584_v22  ;;  %v4308_v58 = vadd.f32 -1.0, %v5002_v57 }
 0x549   :  { %v1673_v61 = vsel %vm1663_vm3, %v1657_v44, %v4308_v58  ;;  %v6786_v44 = vld [vmem:[#allocation12_spill] sm:$0xff] }
 0x54a   :  { %v5004_v17 = vpop.eup %5003  ;;  %v1675_v1 = vmul.f32 %v1673_v61, %v5451_v62 }
 0x54b   :  { %v4309_v54 = vadd.f32 -1.0, %v5004_v17 }
 0x54c   :  { %v1677_v27 = vadd.f32 %v1675_v1, %v5457_v10 }
 0x54d   :  { %v1674_v14 = vsel %vm1664_vm4, %v1660_v29, %v4309_v54  ;;  %v4749_v29 = vld [vmem:[%s6707_s0 + $0xb8] sm:$0xff]  }
 0x54e   :  { %v1676_v48 = vmul.f32 %v1674_v14, %v5453_v4 }
 0x550   :  { %v1678_v5 = vadd.f32 %v1676_v48, %v5459_v11 }
 0x552   :  { %v1679_v24 = vpack.c.bf16 %v1678_v5, %v1677_v27  ;;  %v6790_v5 = vld [vmem:[#allocation13_spill] sm:$0xff] }
 0x554   :  { %4313 = vmatmul.mubr.msk.bf16.vlgmr.msra.gmra.mxu0 %vm295_vm5, %v1679_v24  ;;  %v1681_v28 = vrot.slane %v1679_v24, 2  ;;  %v1770_v25 = vrot.slane %v1679_v24, 4 }
 0x555   :  { %1816 = vmatpush1.bf16.msra.mxu0 %v5262_v18  ;;  %1847 = vmatprep.mubr.bf16.mxu0 %v6772_v12 }
 0x556   :  { %4311 = vmatmul.mubr.msk.bf16.vlgmr.msra.gmra.mxu1 %vm295_vm5, %v1681_v28  ;;  %1817 = vmatprep.subr.bf16.mxu0 %v5824_v32 }
 0x557   :  { %1775 = vmatpush1.bf16.msra.mxu1 %v5270_v21  ;;  %1806 = vmatprep.mubr.bf16.mxu1 %v6772_v12 }
 0x558   :  { %1776 = vmatprep.subr.bf16.mxu1 %v5932_v20 }
 0x559   :  { %1818 = vmatpush1.bf16.msra.mxu0 %v5832_v33 }
 0x55a   :  { %1819 = vmatprep.subr.bf16.mxu0 %v5838_v34 }
 0x55b   :  { %1777 = vmatpush1.bf16.msra.mxu1 %v5797_v30 }
 0x55c   :  { %1778 = vmatprep.subr.bf16.mxu1 %v5941_v46 }
 0x55d   :  { %1820 = vmatpush1.bf16.msra.mxu0 %v5846_v35 }
 0x55e   :  { %1821 = vmatprep.subr.bf16.mxu0 %v5852_v36 }
 0x55f   :  { %1779 = vmatpush1.bf16.msra.mxu1 %v5949_v52 }
 0x560   :  { %1780 = vmatprep.subr.bf16.mxu1 %v5955_v2 }
 0x561   :  { %1822 = vmatpush1.bf16.msra.mxu0 %v5861_v37 }
 0x562   :  { %1823 = vmatprep.subr.bf16.mxu0 %v5867_v38 }
 0x563   :  { %1781 = vmatpush1.bf16.msra.mxu1 %v5963_v51 }
 0x564   :  { %1782 = vmatprep.subr.bf16.mxu1 %v5969_v0 }
 0x565   :  { %1824 = vmatpush1.bf16.msra.mxu0 %v5873_v39 }
 0x566   :  { %1825 = vmatprep.subr.bf16.mxu0 %v5879_v40 }
 0x567   :  { %1783 = vmatpush1.bf16.msra.mxu1 %v5977_v3 }
 0x568   :  { %1784 = vmatprep.subr.bf16.mxu1 %v5983_v15 }
 0x569   :  { %1826 = vmatpush1.bf16.msra.mxu0 %v5885_v41 }
 0x56a   :  { %1827 = vmatprep.subr.bf16.mxu0 %v5891_v42 }
 0x56b   :  { %1785 = vmatpush1.bf16.msra.mxu1 %v5991_v49 }
 0x56c   :  { %1786 = vmatprep.subr.bf16.mxu1 %v5997_v7 }
 0x56d   :  { %1828 = vmatpush1.bf16.msra.mxu0 %v5897_v43 }
 0x56e   :  { %1829 = vmatprep.subr.bf16.mxu0 %v6004_v63 }
 0x56f   :  { %1787 = vmatpush1.bf16.msra.mxu1 %v6010_v23 }
 0x570   :  { %1788 = vmatprep.subr.bf16.mxu1 %v6016_v13 }
 0x571   :  { %1830 = vmatpush1.bf16.msra.mxu0 %v6022_v16 }
 0x572   :  { %4337 = vmatprep.subr.msk.bf16.mxu0 %vm299_vm2, %v5264_v19 }
 0x573   :  { %1789 = vmatpush1.bf16.msra.mxu1 %v6786_v44 }
 0x574   :  { %4317 = vmatmul.mubr.msk.bf16.vlgmr.msra.gmra.mxu0 %vm295_vm5, %v1681_v28  ;;  %4637 = vmatprep.subr.bf16.mxu1 %v6787_v47 }
 0x575   :  { %1996 = vmatpush1.bf16.msra.mxu0 %v5270_v21  ;;  %2027 = vmatprep.mubr.bf16.mxu0 %v6772_v12 }
 0x576   :  { %4315 = vmatmul.mubr.msk.bf16.vlgmr.msra.gmra.mxu1 %vm295_vm5, %v1770_v25  ;;  %1997 = vmatprep.subr.bf16.mxu0 %v5932_v20 }
 0x577   :  { %4638 = vmatpush3.bf16.msra.mxu1 %v4749_v29  ;;  %4645 = vmatprep.mubr.msk.bf16.mxu1 %vm5145_vm0, %v6787_v47 }
 0x578   :  { %4639 = vmatprep.subr.bf16.mxu1 %v6787_v47 }
 0x579   :  { %1998 = vmatpush1.bf16.msra.mxu0 %v5797_v30 }
 0x57a   :  { %1999 = vmatprep.subr.bf16.mxu0 %v5941_v46 }
 0x57b   :  { %4640 = vmatpush3.bf16.msra.mxu1 %v4750_v59 }
 0x57c   :  { %4641 = vmatprep.subr.bf16.mxu1 %v6787_v47 }
 0x57d   :  { %2000 = vmatpush1.bf16.msra.mxu0 %v5949_v52 }
 0x57e   :  { %2001 = vmatprep.subr.bf16.mxu0 %v5955_v2 }
 0x57f   :  { %4642 = vmatpush3.bf16.msra.mxu1 %v4751_v31 }
 0x580   :  { %4643 = vmatprep.subr.bf16.mxu1 %v6787_v47 }
 0x581   :  { %2002 = vmatpush1.bf16.msra.mxu0 %v5963_v51 }
 0x582   :  { %2003 = vmatprep.subr.bf16.mxu0 %v5969_v0 }
 0x583   :  { %4644 = vmatpush3.bf16.msra.mxu1 %v4752_v26 }
 0x584   :  { %4339 = vmatprep.subr.msk.bf16.mxu1 %vm299_vm2, %v6788_v56 }
 0x585   :  { %2004 = vmatpush1.bf16.msra.mxu0 %v5977_v3 }
 0x586   :  { %4646 = vmatmul.mubr.msk.bf16.vlgmr.msra.gmra.mxu1 %vm136_vm1, %v6182_v53  ;;  %2005 = vmatprep.subr.bf16.mxu0 %v5983_v15 }
 0x587   :  { %2040 = vmatpush1.bf16.msra.mxu1 %v5262_v18  ;;  %2071 = vmatprep.mubr.bf16.mxu1 %v6772_v12 }
 0x588   :  { %2041 = vmatprep.subr.bf16.mxu1 %v5824_v32 }
 0x589   :  { %2006 = vmatpush1.bf16.msra.mxu0 %v5991_v49 }
 0x58a   :  { %2007 = vmatprep.subr.bf16.mxu0 %v5997_v7 }
 0x58b   :  { %2042 = vmatpush1.bf16.msra.mxu1 %v5832_v33 }
 0x58c   :  { %2043 = vmatprep.subr.bf16.mxu1 %v5838_v34 }
 0x58d   :  { %2008 = vmatpush1.bf16.msra.mxu0 %v6010_v23 }
 0x58e   :  { %2009 = vmatprep.subr.bf16.mxu0 %v6016_v13 }
 0x58f   :  { %2044 = vmatpush1.bf16.msra.mxu1 %v5846_v35 }
 0x590   :  { %2045 = vmatprep.subr.bf16.mxu1 %v5852_v36 }
 0x591   :  { %2010 = vmatpush1.bf16.msra.mxu0 %v6786_v44 }
 0x592   :  { %4341 = vmatprep.subr.msk.bf16.mxu0 %vm299_vm2, %v5264_v19 }
 0x593   :  { %2046 = vmatpush1.bf16.msra.mxu1 %v5861_v37 }
 0x594   :  { %2047 = vmatprep.subr.bf16.mxu1 %v5867_v38 }
 0x597   :  { %2048 = vmatpush1.bf16.msra.mxu1 %v5873_v39 }
 0x598   :  { %2049 = vmatprep.subr.bf16.mxu1 %v5879_v40 }
 0x59b   :  { %2050 = vmatpush1.bf16.msra.mxu1 %v5885_v41 }
 0x59c   :  { %2051 = vmatprep.subr.bf16.mxu1 %v5891_v42 }
 0x59f   :  { %2052 = vmatpush1.bf16.msra.mxu1 %v5897_v43 }
 0x5a0   :  { %2053 = vmatprep.subr.bf16.mxu1 %v6004_v63 }
 0x5a3   :  { %2054 = vmatpush1.bf16.msra.mxu1 %v6022_v16 }
 0x5a4   :  { %4343 = vmatprep.subr.msk.bf16.mxu1 %vm299_vm2, %v6788_v56 }
 0x614   :  { %v1763_v45 = vpop.f32.mrf.mxu0 }
 0x616   :  { %v1719_v22 = vpop.f32.mrf.mxu1  ;;  %v1765_v57 = vpop.f32.mrf.mxu0 }
 0x617   :  { %v1764_v14 = vadd.f32 %v1763_v45, %v1719_v22 }
 0x618   :  { %v1721_v58 = vpop.f32.mrf.mxu1  ;;  %v1767_v61 = vpop.f32.mrf.mxu0 }
 0x619   :  { %v1766_v48 = vadd.f32 %v1765_v57, %v1721_v58  ;;  %v1856_v27 = vadd.f32 %v1764_v14, %v6776_v8 }
 0x61a   :  { %v1723_v17 = vpop.f32.mrf.mxu1  ;;  %v1768_v54 = vpop.f32.mrf.mxu0 }
 0x61b   :  { %v1857_v24 = vadd.f32 %v1766_v48, %v6790_v5  ;;  %v1860_v28 = vmin.f32 %v1856_v27, 0.0  ;;  %vm1858_vm6 = vcmp.gt.f32.partialorder %v1856_v27, 0.0 }
 0x61c   :  { %v1724_v1 = vpop.f32.mrf.mxu1 }
 0x61d   :  { %v1861_v29 = vmin.f32 %v1857_v24, 0.0  ;;  %v1862_v25 = vmul.f32 1.442695, %v1860_v28  ;;  %vm1859_vm7 = vcmp.gt.f32.partialorder %v1857_v24, 0.0 }
 0x61f   :  { %v1864_v31 = vmul.f32 1.442695, %v1861_v29  ;;  %5005 = vpow2.f32 %v1862_v25 }
 0x621   :  { %5007 = vpow2.f32 %v1864_v31 }
 0x62c   :  { %v5006_v29 = vpop.eup %5005 }
 0x62d   :  { %v4318_v31 = vadd.f32 -1.0, %v5006_v29 }
 0x634   :  { %v1849_v59 = vpop.f32.mrf.mxu0 }
 0x636   :  { %v1808_v26 = vpop.f32.mrf.mxu1  ;;  %v1851_v53 = vpop.f32.mrf.mxu0 }
 0x637   :  { %v1850_v56 = vadd.f32 %v1849_v59, %v1808_v26  ;;  %v5008_v59 = vpop.eup %5007  ;;  %v6791_v26 = vld [vmem:[#allocation9_spill] sm:$0xff] }
 0x638   :  { %v1810_v47 = vpop.f32.mrf.mxu1  ;;  %v1853_v61 = vpop.f32.mrf.mxu0 }
 0x639   :  { %v1874_v17 = vadd.f32 %v1850_v56, %v6776_v8  ;;  %v1852_v45 = vadd.f32 %v1851_v53, %v1810_v47  ;;  %v4319_v56 = vadd.f32 -1.0, %v5008_v59 }
 0x63a   :  { %v1812_v22 = vpop.f32.mrf.mxu1  ;;  %v1854_v57 = vpop.f32.mrf.mxu0 }
 0x63b   :  { %v1878_v58 = vmin.f32 %v1874_v17, 0.0  ;;  %v1875_v54 = vadd.f32 %v1852_v45, %v6790_v5  ;;  %vm1876_vm8 = vcmp.gt.f32.partialorder %v1874_v17, 0.0 }
 0x63c   :  { %v1813_v1 = vpop.f32.mrf.mxu1 }
 0x63d   :  { %v1880_v14 = vmul.f32 1.442695, %v1878_v58  ;;  %v1879_v48 = vmin.f32 %v1875_v54, 0.0  ;;  %v1868_v58 = vsel %vm1858_vm6, %v1856_v27, %v4318_v31  ;;  %vm1877_vm9 = vcmp.gt.f32.partialorder %v1875_v54, 0.0 }
 0x63e   :  { %v1870_v59 = vmul.f32 %v1868_v58, %v5601_v50 }
 0x63f   :  { %5009 = vpow2.f32 %v1880_v14  ;;  %v1882_v28 = vmul.f32 1.442695, %v1879_v48  ;;  %v1869_v14 = vsel %vm1859_vm7, %v1857_v24, %v4319_v56 }
 0x640   :  { %v1872_v31 = vadd.f32 %v1870_v59, %v5607_v6 }
 0x641   :  { %5011 = vpow2.f32 %v1882_v28 }
 0x646   :  { %v1966_v25 = vpop.f32.mrf.mxu1 }
 0x647   :  { %v1967_v61 = vadd.f32 %v1966_v25, %v6791_v26  ;;  %v1871_v26 = vmul.f32 %v1869_v14, %v5604_v60 }
 0x648   :  { %v4647_v44 = vpop.f32.mrf.mxu1 }
 0x649   :  { %v1975_v47 = vmin.f32 %v1967_v61, 0.0  ;;  %v1873_v56 = vadd.f32 %v1871_v26, %v5610_v9  ;;  %vm1973_vm10 = vcmp.gt.f32.partialorder %v1967_v61, 0.0 }
 0x64a   :  { %v1969_v53 = vpop.f32.mrf.mxu1 }
 0x64b   :  { %v1977_v22 = vmul.f32 1.442695, %v1975_v47  ;;  %v1970_v45 = vadd.f32 %v1969_v53, %v5448_v55 }
 0x64c   :  { %v5010_v57 = vpop.eup %5009  ;;  %v4648_v1 = vpop.f32.mrf.mxu1 }
 0x64d   :  { %v4320_v48 = vadd.f32 -1.0, %v5010_v57  ;;  %5013 = vpow2.f32 %v1977_v22  ;;  %v1976_v28 = vmin.f32 %v1970_v45, 0.0  ;;  %vm1974_vm11 = vcmp.gt.f32.partialorder %v1970_v45, 0.0 }
 0x64e   :  { %v5012_v5 = vpop.eup %5011 }
 0x64f   :  { %v1886_v25 = vsel %vm1876_vm8, %v1874_v17, %v4320_v48  ;;  %v4321_v29 = vadd.f32 -1.0, %v5012_v5  ;;  %v1979_v44 = vmul.f32 1.442695, %v1976_v28 }
 0x650   :  { %v1888_v47 = vmul.f32 %v1886_v25, %v5601_v50 }
 0x651   :  { %v1887_v53 = vsel %vm1877_vm9, %v1875_v54, %v4321_v29  ;;  %5015 = vpow2.f32 %v1979_v44 }
 0x652   :  { %v1890_v27 = vadd.f32 %v1888_v47, %v5607_v6  ;;  %v1889_v24 = vmul.f32 %v1887_v53, %v5604_v60 }
 0x654   :  { %v1891_v5 = vadd.f32 %v1889_v24, %v5610_v9  ;;  %v1892_v17 = vmax.f32 %v1872_v31, %v1890_v27 }
 0x656   :  { %v1893_v22 = vmax.f32 %v1873_v56, %v1891_v5 }
 0x658   :  { %v1894_v57 = vmax.f32 %v1892_v17, %v1893_v22  ;;  %v6796_v17 = vld [vmem:[#allocation13_spill] sm:$0xff] }
 0x65a   :  { %v5014_v58 = vpop.eup %5013  ;;  %1895 = vst [vmem:[#allocation2 + $0x4] sm:$0x1] %v1894_v57  ;;  %1896 = vst [vmem:[#allocation2 + $0xb] sm:$0x2] %v1894_v57 }
 0x65b   :  { %1897 = vst [vmem:[#allocation2 + $0x12] sm:$0x4] %v1894_v57  ;;  %1898 = vst [vmem:[#allocation2 + $0x19] sm:$0x8] %v1894_v57  ;;  %v4335_v54 = vadd.f32 -1.0, %v5014_v58 }
 0x65d   :  { %v1983_v1 = vsel %vm1973_vm10, %v1967_v61, %v4335_v54 }
 0x65e   :  { %v5016_v14 = vpop.eup %5015  ;;  %v1985_v28 = vmul.f32 %v1983_v1, %v5451_v62 }
 0x65f   :  { %v4336_v48 = vadd.f32 -1.0, %v5016_v14 }
 0x660   :  { %v1987_v29 = vadd.f32 %v1985_v28, %v5457_v10 }
 0x661   :  { %v1984_v25 = vsel %vm1974_vm11, %v1970_v45, %v4336_v48 }
 0x662   :  { %v1986_v26 = vmul.f32 %v1984_v25, %v5453_v4 }
 0x664   :  { %v1988_v44 = vadd.f32 %v1986_v26, %v5459_v11 }
 0x666   :  { %v1989_v59 = vpack.c.bf16 %v1988_v44, %v1987_v29 }
 0x668   :  { %4340 = vmatmul.mubr.msk.bf16.vlgmr.msra.gmra.mxu1 %vm295_vm5, %v1989_v59  ;;  %v1991_v47 = vrot.slane %v1989_v59, 2 }
 0x669   :  { %2126 = vmatpush1.bf16.msra.mxu1 %v5262_v18  ;;  %2157 = vmatprep.mubr.bf16.mxu1 %v6772_v12 }
 0x66a   :  { %4338 = vmatmul.mubr.msk.bf16.vlgmr.msra.gmra.mxu0 %vm295_vm5, %v1991_v47  ;;  %2127 = vmatprep.subr.bf16.mxu1 %v5824_v32  ;;  %v4753_v32 = vld [vmem:[%s6707_s0 + $0xd8] sm:$0xff]  }
 0x66b   :  { %2085 = vmatpush1.bf16.msra.mxu0 %v5270_v21  ;;  %2116 = vmatprep.mubr.bf16.mxu0 %v6772_v12 }
 0x66c   :  { %2086 = vmatprep.subr.bf16.mxu0 %v5932_v20 }
 0x66d   :  { %2128 = vmatpush1.bf16.msra.mxu1 %v5832_v33  ;;  %v2080_v33 = vrot.slane %v1989_v59, 4 }
 0x66e   :  { %2129 = vmatprep.subr.bf16.mxu1 %v5838_v34  ;;  %v6793_v34 = vmov 0.0  }
 0x66f   :  { %2087 = vmatpush1.bf16.msra.mxu0 %v5797_v30  ;;  %v6792_v30 = vld [vmem:[#allocation12_spill] sm:$0xff] }
 0x670   :  { %2088 = vmatprep.subr.bf16.mxu0 %v5941_v46 }
 0x671   :  { %2130 = vmatpush1.bf16.msra.mxu1 %v5846_v35  ;;  %v4754_v35 = vld [vmem:[%s6707_s0 + $0xd0] sm:$0xff]  }
 0x672   :  { %2131 = vmatprep.subr.bf16.mxu1 %v5852_v36  ;;  %v6284_v36 = vld [vmem:[%s6710_s3 + $0xd8] ss:$8 sps:$4 sm:$0xff]  }
 0x673   :  { %2089 = vmatpush1.bf16.msra.mxu0 %v5949_v52 }
 0x674   :  { %2090 = vmatprep.subr.bf16.mxu0 %v5955_v2 }
 0x675   :  { %2132 = vmatpush1.bf16.msra.mxu1 %v5861_v37  ;;  %v4755_v37 = vld [vmem:[%s6707_s0 + $0xc8] sm:$0xff]  }
 0x676   :  { %2133 = vmatprep.subr.bf16.mxu1 %v5867_v38  ;;  %v4756_v38 = vld [vmem:[%s6707_s0 + $0xc0] sm:$0xff]  }
 0x677   :  { %2091 = vmatpush1.bf16.msra.mxu0 %v5963_v51 }
 0x678   :  { %2092 = vmatprep.subr.bf16.mxu0 %v5969_v0 }
 0x679   :  { %2134 = vmatpush1.bf16.msra.mxu1 %v5873_v39  ;;  %v6794_v39 = vld [vmem:[#allocation7_spill] sm:$0xff] }
 0x67a   :  { %2135 = vmatprep.subr.bf16.mxu1 %v5879_v40  ;;  %v6795_v40 = vld [vmem:[#allocation8_spill] sm:$0xff] }
 0x67b   :  { %2093 = vmatpush1.bf16.msra.mxu0 %v5977_v3 }
 0x67c   :  { %2094 = vmatprep.subr.bf16.mxu0 %v5983_v15 }
 0x67d   :  { %2136 = vmatpush1.bf16.msra.mxu1 %v5885_v41  ;;  %v6311_v41 = vld [vmem:[%s6710_s3 + $0x64] ss:$8 sps:$4 sm:$0xff]  }
 0x67e   :  { %2137 = vmatprep.subr.bf16.mxu1 %v5891_v42  ;;  %v6319_v42 = vld [vmem:[%s6710_s3 + $0x60] ss:$8 sps:$4 sm:$0xff]  }
 0x67f   :  { %2095 = vmatpush1.bf16.msra.mxu0 %v5991_v49 }
 0x680   :  { %2096 = vmatprep.subr.bf16.mxu0 %v5997_v7 }
 0x681   :  { %2138 = vmatpush1.bf16.msra.mxu1 %v5897_v43  ;;  %v6325_v43 = vld [vmem:[%s6710_s3 + $0x54] ss:$8 sps:$4 sm:$0xff]  }
 0x682   :  { %2139 = vmatprep.subr.bf16.mxu1 %v6004_v63 }
 0x683   :  { %2097 = vmatpush1.bf16.msra.mxu0 %v6010_v23 }
 0x684   :  { %2098 = vmatprep.subr.bf16.mxu0 %v6016_v13 }
 0x685   :  { %2140 = vmatpush1.bf16.msra.mxu1 %v6022_v16 }
 0x686   :  { %4364 = vmatprep.subr.msk.bf16.mxu1 %vm299_vm2, %v5264_v19 }
 0x687   :  { %2099 = vmatpush1.bf16.msra.mxu0 %v6792_v30 }
 0x688   :  { %4344 = vmatmul.mubr.msk.bf16.vlgmr.msra.gmra.mxu1 %vm295_vm5, %v1991_v47  ;;  %4649 = vmatprep.subr.bf16.mxu0 %v6793_v34 }
 0x689   :  { %2306 = vmatpush1.bf16.msra.mxu1 %v5270_v21  ;;  %2337 = vmatprep.mubr.bf16.mxu1 %v6772_v12 }
 0x68a   :  { %4342 = vmatmul.mubr.msk.bf16.vlgmr.msra.gmra.mxu0 %vm295_vm5, %v2080_v33  ;;  %2307 = vmatprep.subr.bf16.mxu1 %v5932_v20  ;;  %v6333_v20 = vld [vmem:[%s6710_s3 + $0x50] ss:$8 sps:$4 sm:$0xff]  }
 0x68b   :  { %4650 = vmatpush3.bf16.msra.mxu0 %v4753_v32  ;;  %4657 = vmatprep.mubr.msk.bf16.mxu0 %vm5145_vm0, %v6793_v34 }
 0x68c   :  { %4651 = vmatprep.subr.bf16.mxu0 %v6793_v34 }
 0x68d   :  { %2308 = vmatpush1.bf16.msra.mxu1 %v6284_v36 }
 0x68e   :  { %2309 = vmatprep.subr.bf16.mxu1 %v5941_v46  ;;  %v6339_v46 = vld [vmem:[%s6710_s3 + $0x44] ss:$8 sps:$4 sm:$0xff]  }
 0x68f   :  { %4652 = vmatpush3.bf16.msra.mxu0 %v4754_v35 }
 0x690   :  { %4653 = vmatprep.subr.bf16.mxu0 %v6793_v34 }
 0x691   :  { %2310 = vmatpush1.bf16.msra.mxu1 %v5949_v52  ;;  %v6348_v52 = vld [vmem:[%s6710_s3 + $0x40] ss:$8 sps:$4 sm:$0xff]  }
 0x692   :  { %2311 = vmatprep.subr.bf16.mxu1 %v5955_v2  ;;  %v6354_v2 = vld [vmem:[%s6710_s3 + $0x34] ss:$8 sps:$4 sm:$0xff]  }
 0x693   :  { %4654 = vmatpush3.bf16.msra.mxu0 %v4755_v37 }
 0x694   :  { %4655 = vmatprep.subr.bf16.mxu0 %v6793_v34 }
 0x695   :  { %2312 = vmatpush1.bf16.msra.mxu1 %v5963_v51  ;;  %v6360_v51 = vld [vmem:[%s6710_s3 + $0x30] ss:$8 sps:$4 sm:$0xff]  }
 0x696   :  { %2313 = vmatprep.subr.bf16.mxu1 %v5969_v0  ;;  %v6366_v0 = vld [vmem:[%s6710_s3 + $0x24] ss:$8 sps:$4 sm:$0xff]  }
 0x697   :  { %4656 = vmatpush3.bf16.msra.mxu0 %v4756_v38 }
 0x698   :  { %4366 = vmatprep.subr.msk.bf16.mxu0 %vm299_vm2, %v6794_v39 }
 0x699   :  { %2314 = vmatpush1.bf16.msra.mxu1 %v5977_v3  ;;  %v6372_v3 = vld [vmem:[%s6710_s3 + $0x20] ss:$8 sps:$4 sm:$0xff]  }
 0x69a   :  { %4658 = vmatmul.mubr.msk.bf16.vlgmr.msra.gmra.mxu0 %vm136_vm1, %v6795_v40  ;;  %2315 = vmatprep.subr.bf16.mxu1 %v5983_v15  ;;  %v6378_v15 = vld [vmem:[%s6710_s3 + $0x14] ss:$8 sps:$4 sm:$0xff]  }
 0x69b   :  { %2350 = vmatpush1.bf16.msra.mxu0 %v5262_v18  ;;  %2381 = vmatprep.mubr.bf16.mxu0 %v6772_v12 }
 0x69c   :  { %2351 = vmatprep.subr.bf16.mxu0 %v6311_v41 }
 0x69d   :  { %2316 = vmatpush1.bf16.msra.mxu1 %v5991_v49  ;;  %v6384_v49 = vld [vmem:[%s6710_s3 + $0x10] ss:$8 sps:$4 sm:$0xff]  }
 0x69e   :  { %2317 = vmatprep.subr.bf16.mxu1 %v5997_v7 }
 0x69f   :  { %2352 = vmatpush1.bf16.msra.mxu0 %v6319_v42 }
 0x6a0   :  { %2353 = vmatprep.subr.bf16.mxu0 %v6325_v43 }
 0x6a1   :  { %2318 = vmatpush1.bf16.msra.mxu1 %v6010_v23 }
 0x6a2   :  { %2319 = vmatprep.subr.bf16.mxu1 %v6016_v13 }
 0x6a3   :  { %2354 = vmatpush1.bf16.msra.mxu0 %v6333_v20 }
 0x6a4   :  { %2355 = vmatprep.subr.bf16.mxu0 %v6339_v46 }
 0x6a5   :  { %2320 = vmatpush1.bf16.msra.mxu1 %v6792_v30 }
 0x6a6   :  { %4368 = vmatprep.subr.msk.bf16.mxu1 %vm299_vm2, %v5264_v19 }
 0x6a7   :  { %2356 = vmatpush1.bf16.msra.mxu0 %v6348_v52 }
 0x6a8   :  { %2357 = vmatprep.subr.bf16.mxu0 %v6354_v2 }
 0x6ab   :  { %2358 = vmatpush1.bf16.msra.mxu0 %v6360_v51 }
 0x6ac   :  { %2359 = vmatprep.subr.bf16.mxu0 %v6366_v0 }
 0x6af   :  { %2360 = vmatpush1.bf16.msra.mxu0 %v6372_v3 }
 0x6b0   :  { %2361 = vmatprep.subr.bf16.mxu0 %v6378_v15 }
 0x6b3   :  { %2362 = vmatpush1.bf16.msra.mxu0 %v6384_v49 }
 0x6b4   :  { %2363 = vmatprep.subr.bf16.mxu0 %v6004_v63 }
 0x6b7   :  { %2364 = vmatpush1.bf16.msra.mxu0 %v6022_v16 }
 0x6b8   :  { %4370 = vmatprep.subr.msk.bf16.mxu0 %vm299_vm2, %v6794_v39 }
 0x728   :  { %v2073_v7 = vpop.f32.mrf.mxu1 }
 0x72a   :  { %v2029_v23 = vpop.f32.mrf.mxu0  ;;  %v2075_v13 = vpop.f32.mrf.mxu1 }
 0x72b   :  { %v2074_v31 = vadd.f32 %v2073_v7, %v2029_v23 }
 0x72c   :  { %v2031_v61 = vpop.f32.mrf.mxu0  ;;  %v2077_v45 = vpop.f32.mrf.mxu1 }
 0x72d   :  { %v2076_v56 = vadd.f32 %v2075_v13, %v2031_v61  ;;  %v2166_v5 = vadd.f32 %v2074_v31, %v6776_v8  ;;  %v6797_v13 = vld [vmem:[#allocation9_spill] sm:$0xff] }
 0x72e   :  { %v2033_v53 = vpop.f32.mrf.mxu0  ;;  %v2078_v27 = vpop.f32.mrf.mxu1 }
 0x72f   :  { %v2167_v22 = vadd.f32 %v2076_v56, %v6796_v17  ;;  %v2170_v63 = vmin.f32 %v2166_v5, 0.0  ;;  %vm2168_vm12 = vcmp.gt.f32.partialorder %v2166_v5, 0.0 }
 0x730   :  { %v2034_v24 = vpop.f32.mrf.mxu0 }
 0x731   :  { %v2171_v57 = vmin.f32 %v2167_v22, 0.0  ;;  %v2172_v16 = vmul.f32 1.442695, %v2170_v63  ;;  %vm2169_vm13 = vcmp.gt.f32.partialorder %v2167_v22, 0.0 }
 0x733   :  { %v2174_v54 = vmul.f32 1.442695, %v2171_v57  ;;  %5017 = vpow2.f32 %v2172_v16 }
 0x735   :  { %5019 = vpow2.f32 %v2174_v54 }
 0x740   :  { %v5018_v38 = vpop.eup %5017 }
 0x741   :  { %v4345_v45 = vadd.f32 -1.0, %v5018_v38 }
 0x742   :  { %v5020_v7 = vpop.eup %5019 }
 0x743   :  { %v4346_v27 = vadd.f32 -1.0, %v5020_v7  ;;  %v2178_v16 = vsel %vm2168_vm12, %v2166_v5, %v4345_v45 }
 0x745   :  { %v2179_v54 = vsel %vm2169_vm13, %v2167_v22, %v4346_v27 }
 0x748   :  { %v2159_v58 = vpop.f32.mrf.mxu1 }
 0x74a   :  { %v2118_v1 = vpop.f32.mrf.mxu0  ;;  %v2161_v14 = vpop.f32.mrf.mxu1 }
 0x74b   :  { %v2160_v48 = vadd.f32 %v2159_v58, %v2118_v1 }
 0x74c   :  { %v2120_v28 = vpop.f32.mrf.mxu0  ;;  %v2163_v25 = vpop.f32.mrf.mxu1 }
 0x74d   :  { %v2184_v26 = vadd.f32 %v2160_v48, %v6776_v8  ;;  %v2162_v29 = vadd.f32 %v2161_v14, %v2120_v28 }
 0x74e   :  { %v2122_v44 = vpop.f32.mrf.mxu0  ;;  %v2164_v59 = vpop.f32.mrf.mxu1 }
 0x74f   :  { %v2188_v47 = vmin.f32 %v2184_v26, 0.0  ;;  %v2185_v30 = vadd.f32 %v2162_v29, %v6796_v17  ;;  %vm2186_vm14 = vcmp.gt.f32.partialorder %v2184_v26, 0.0  ;;  %v2180_v44 = vmul.f32 %v2178_v16, %v5601_v50 }
 0x750   :  { %v2123_v32 = vpop.f32.mrf.mxu0  ;;  %v2181_v59 = vmul.f32 %v2179_v54, %v5604_v60 }
 0x751   :  { %v2190_v33 = vmul.f32 1.442695, %v2188_v47  ;;  %v2189_v35 = vmin.f32 %v2185_v30, 0.0  ;;  %vm2187_vm15 = vcmp.gt.f32.partialorder %v2185_v30, 0.0 }
 0x753   :  { %5021 = vpow2.f32 %v2190_v33  ;;  %v2192_v37 = vmul.f32 1.442695, %v2189_v35  ;;  %v2182_v33 = vadd.f32 %v2180_v44, %v5607_v6  ;;  %v2183_v35 = vadd.f32 %v2181_v59, %v5610_v9  ;;  %v6478_v44 = vld [vmem:[%s6710_s3 + $0x98] ss:$8 sps:$4 sm:$0xff]   ;;  %v6484_v59 = vld [vmem:[%s6710_s3 + $0x8c] ss:$8 sps:$4 sm:$0xff]  }
 0x755   :  { %5023 = vpow2.f32 %v2192_v37 }
 0x75a   :  { %v2276_v23 = vpop.f32.mrf.mxu0 }
 0x75b   :  { %v2277_v61 = vadd.f32 %v2276_v23, %v6797_v13 }
 0x75c   :  { %v4659_v53 = vpop.f32.mrf.mxu0 }
 0x75d   :  { %v2285_v24 = vmin.f32 %v2277_v61, 0.0  ;;  %vm2283_vm3 = vcmp.gt.f32.partialorder %v2277_v61, 0.0 }
 0x75e   :  { %v2279_v31 = vpop.f32.mrf.mxu0 }
 0x75f   :  { %v2287_v56 = vmul.f32 1.442695, %v2285_v24  ;;  %v2280_v63 = vadd.f32 %v2279_v31, %v5448_v55 }
 0x760   :  { %v5022_v57 = vpop.eup %5021  ;;  %v4660_v58 = vpop.f32.mrf.mxu0 }
 0x761   :  { %v4347_v1 = vadd.f32 -1.0, %v5022_v57  ;;  %5025 = vpow2.f32 %v2287_v56  ;;  %v2286_v14 = vmin.f32 %v2280_v63, 0.0  ;;  %vm2284_vm4 = vcmp.gt.f32.partialorder %v2280_v63, 0.0 }
 0x762   :  { %v5024_v48 = vpop.eup %5023 }
 0x763   :  { %v2196_v28 = vsel %vm2186_vm14, %v2184_v26, %v4347_v1  ;;  %v4348_v25 = vadd.f32 -1.0, %v5024_v48  ;;  %v2289_v29 = vmul.f32 1.442695, %v2286_v14  ;;  %v6436_v1 = vld [vmem:[%s6710_s3 + $0xc8] ss:$8 sps:$4 sm:$0xff]  }
 0x764   :  { %v2198_v47 = vmul.f32 %v2196_v28, %v5601_v50  ;;  %v6442_v14 = vld [vmem:[%s6710_s3 + $0xbc] ss:$8 sps:$4 sm:$0xff]   ;;  %v6450_v48 = vld [vmem:[%s6710_s3 + $0xb8] ss:$8 sps:$4 sm:$0xff]   ;;  %v6456_v28 = vld [vmem:[%s6710_s3 + $0xac] ss:$8 sps:$4 sm:$0xff]  }
 0x765   :  { %v2197_v32 = vsel %vm2187_vm15, %v2185_v30, %v4348_v25  ;;  %5027 = vpow2.f32 %v2289_v29  ;;  %v6464_v25 = vld [vmem:[%s6710_s3 + $0xa8] ss:$8 sps:$4 sm:$0xff]   ;;  %v6470_v29 = vld [vmem:[%s6710_s3 + $0x9c] ss:$8 sps:$4 sm:$0xff]  }
 0x766   :  { %v2200_v5 = vadd.f32 %v2198_v47, %v5607_v6  ;;  %v2199_v22 = vmul.f32 %v2197_v32, %v5604_v60  ;;  %v6491_v47 = vld [vmem:[%s6710_s3 + $0x4] ss:$8 sps:$4 sm:$0xff]   ;;  %v6497_v32 = vld [vmem:[%s6710_s3 + $0x88] ss:$8 sps:$4 sm:$0xff]  }
 0x768   :  { %v2201_v26 = vadd.f32 %v2199_v22, %v5610_v9  ;;  %v2202_v37 = vmax.f32 %v2182_v33, %v2200_v5  ;;  %v6503_v5 = vld [vmem:[%s6710_s3 + $0x7c] ss:$8 sps:$4 sm:$0xff]   ;;  %v6509_v22 = vld [vmem:[%s6710_s3] ss:$8 sps:$4 sm:$0xff]  }
 0x769   :  { %v6517_v33 = vld [vmem:[%s6710_s3 + $0x78] ss:$8 sps:$4 sm:$0xff]  }
 0x76a   :  { %v2203_v38 = vmax.f32 %v2183_v35, %v2201_v26  ;;  %v4757_v35 = vld [vmem:[%s6707_s0 + $0xf8] sm:$0xff]  }
 0x76c   :  { %v2204_v7 = vmax.f32 %v2202_v37, %v2203_v38  ;;  %v4758_v37 = vld [vmem:[%s6707_s0 + $0xf0] sm:$0xff]   ;;  %v4759_v38 = vld [vmem:[%s6707_s0 + $0xe8] sm:$0xff]  }
 0x76e   :  { %v5026_v23 = vpop.eup %5025  ;;  %2205 = vst [vmem:[#allocation2 + $0x5] sm:$0x1] %v2204_v7  ;;  %2206 = vst [vmem:[#allocation2 + $0xc] sm:$0x2] %v2204_v7 }
 0x76f   :  { %2207 = vst [vmem:[#allocation2 + $0x13] sm:$0x4] %v2204_v7  ;;  %2208 = vst [vmem:[#allocation2 + $0x1a] sm:$0x8] %v2204_v7  ;;  %v4362_v30 = vadd.f32 -1.0, %v5026_v23  ;;  %v4760_v7 = vld [vmem:[%s6707_s0 + $0xe0] sm:$0xff]  }
 0x771   :  { %v2293_v45 = vsel %vm2283_vm3, %v2277_v61, %v4362_v30  ;;  %v6419_v61 = vld [vmem:[%s6710_s3 + $0xdc] ss:$8 sps:$4 sm:$0xff]  }
 0x772   :  { %v5028_v53 = vpop.eup %5027  ;;  %v2295_v24 = vmul.f32 %v2293_v45, %v5451_v62 }
 0x773   :  { %v4363_v27 = vadd.f32 -1.0, %v5028_v53 }
 0x774   :  { %v2297_v57 = vadd.f32 %v2295_v24, %v5457_v10 }
 0x775   :  { %v2294_v31 = vsel %vm2284_vm4, %v2280_v63, %v4363_v27  ;;  %v6428_v63 = vld [vmem:[%s6710_s3 + $0xcc] ss:$8 sps:$4 sm:$0xff]   ;;  %vm4140_vm4 = vcmask 7168  }
 0x776   :  { %v2296_v56 = vmul.f32 %v2294_v31, %v5453_v4 }
 0x778   :  { %v2298_v16 = vadd.f32 %v2296_v56, %v5459_v11 }
 0x77a   :  { %v2299_v58 = vpack.c.bf16 %v2298_v16, %v2297_v57 }
 0x77c   :  { %4367 = vmatmul.mubr.msk.bf16.vlgmr.msra.gmra.mxu0 %vm295_vm5, %v2299_v58  ;;  %v2301_v54 = vrot.slane %v2299_v58, 2  ;;  %v2390_v26 = vrot.slane %v2299_v58, 4 }
 0x77d   :  { %2436 = vmatpush1.bf16.msra.mxu0 %v5262_v18  ;;  %2467 = vmatprep.mubr.bf16.mxu0 %v6772_v12 }
 0x77e   :  { %4365 = vmatmul.mubr.msk.bf16.vlgmr.msra.gmra.mxu1 %vm295_vm5, %v2301_v54  ;;  %2437 = vmatprep.subr.bf16.mxu0 %v6311_v41 }
 0x77f   :  { %2395 = vmatpush1.bf16.msra.mxu1 %v5270_v21  ;;  %2426 = vmatprep.mubr.bf16.mxu1 %v6772_v12 }
 0x780   :  { %2396 = vmatprep.subr.bf16.mxu1 %v6419_v61 }
 0x781   :  { %2438 = vmatpush1.bf16.msra.mxu0 %v6319_v42 }
 0x782   :  { %2439 = vmatprep.subr.bf16.mxu0 %v6325_v43 }
 0x783   :  { %2397 = vmatpush1.bf16.msra.mxu1 %v6284_v36 }
 0x784   :  { %2398 = vmatprep.subr.bf16.mxu1 %v6428_v63 }
 0x785   :  { %2440 = vmatpush1.bf16.msra.mxu0 %v6333_v20 }
 0x786   :  { %2441 = vmatprep.subr.bf16.mxu0 %v6339_v46 }
 0x787   :  { %2399 = vmatpush1.bf16.msra.mxu1 %v6436_v1 }
 0x788   :  { %2400 = vmatprep.subr.bf16.mxu1 %v6442_v14 }
 0x789   :  { %2442 = vmatpush1.bf16.msra.mxu0 %v6348_v52 }
 0x78a   :  { %2443 = vmatprep.subr.bf16.mxu0 %v6354_v2 }
 0x78b   :  { %2401 = vmatpush1.bf16.msra.mxu1 %v6450_v48 }
 0x78c   :  { %2402 = vmatprep.subr.bf16.mxu1 %v6456_v28 }
 0x78d   :  { %2444 = vmatpush1.bf16.msra.mxu0 %v6360_v51 }
 0x78e   :  { %2445 = vmatprep.subr.bf16.mxu0 %v6366_v0 }
 0x78f   :  { %2403 = vmatpush1.bf16.msra.mxu1 %v6464_v25 }
 0x790   :  { %2404 = vmatprep.subr.bf16.mxu1 %v6470_v29 }
 0x791   :  { %2446 = vmatpush1.bf16.msra.mxu0 %v6372_v3 }
 0x792   :  { %2447 = vmatprep.subr.bf16.mxu0 %v6378_v15 }
 0x793   :  { %2405 = vmatpush1.bf16.msra.mxu1 %v6478_v44 }
 0x794   :  { %2406 = vmatprep.subr.bf16.mxu1 %v6484_v59 }
 0x795   :  { %2448 = vmatpush1.bf16.msra.mxu0 %v6384_v49 }
 0x796   :  { %2449 = vmatprep.subr.bf16.mxu0 %v6491_v47 }
 0x797   :  { %2407 = vmatpush1.bf16.msra.mxu1 %v6497_v32 }
 0x798   :  { %2408 = vmatprep.subr.bf16.mxu1 %v6503_v5 }
 0x799   :  { %2450 = vmatpush1.bf16.msra.mxu0 %v6509_v22 }
 0x79a   :  { %4391 = vmatprep.subr.msk.bf16.mxu0 %vm299_vm2, %v5264_v19 }
 0x79b   :  { %2409 = vmatpush1.bf16.msra.mxu1 %v6517_v33 }
 0x79c   :  { %4371 = vmatmul.mubr.msk.bf16.vlgmr.msra.gmra.mxu0 %vm295_vm5, %v2301_v54  ;;  %4661 = vmatprep.subr.bf16.mxu1 %v6793_v34 }
 0x79d   :  { %2616 = vmatpush1.bf16.msra.mxu0 %v5270_v21  ;;  %2647 = vmatprep.mubr.bf16.mxu0 %v6772_v12 }
 0x79e   :  { %4369 = vmatmul.mubr.msk.bf16.vlgmr.msra.gmra.mxu1 %vm295_vm5, %v2390_v26  ;;  %2617 = vmatprep.subr.bf16.mxu0 %v6419_v61 }
 0x79f   :  { %4662 = vmatpush3.bf16.msra.mxu1 %v4757_v35  ;;  %4669 = vmatprep.mubr.msk.bf16.mxu1 %vm5145_vm0, %v6793_v34 }
 0x7a0   :  { %4663 = vmatprep.subr.bf16.mxu1 %v6793_v34 }
 0x7a1   :  { %2618 = vmatpush1.bf16.msra.mxu0 %v6284_v36 }
 0x7a2   :  { %2619 = vmatprep.subr.bf16.mxu0 %v6428_v63 }
 0x7a3   :  { %4664 = vmatpush3.bf16.msra.mxu1 %v4758_v37 }
 0x7a4   :  { %4665 = vmatprep.subr.bf16.mxu1 %v6793_v34 }
 0x7a5   :  { %2620 = vmatpush1.bf16.msra.mxu0 %v6436_v1 }
 0x7a6   :  { %2621 = vmatprep.subr.bf16.mxu0 %v6442_v14 }
 0x7a7   :  { %4666 = vmatpush3.bf16.msra.mxu1 %v4759_v38 }
 0x7a8   :  { %4667 = vmatprep.subr.bf16.mxu1 %v6793_v34 }
 0x7a9   :  { %2622 = vmatpush1.bf16.msra.mxu0 %v6450_v48 }
 0x7aa   :  { %2623 = vmatprep.subr.bf16.mxu0 %v6456_v28 }
 0x7ab   :  { %4668 = vmatpush3.bf16.msra.mxu1 %v4760_v7 }
 0x7ac   :  { %4393 = vmatprep.subr.msk.bf16.mxu1 %vm299_vm2, %v6794_v39 }
 0x7ad   :  { %2624 = vmatpush1.bf16.msra.mxu0 %v6464_v25 }
 0x7ae   :  { %4670 = vmatmul.mubr.msk.bf16.vlgmr.msra.gmra.mxu1 %vm136_vm1, %v6795_v40  ;;  %2625 = vmatprep.subr.bf16.mxu0 %v6470_v29 }
 0x7af   :  { %2660 = vmatpush1.bf16.msra.mxu1 %v5262_v18  ;;  %2691 = vmatprep.mubr.bf16.mxu1 %v6772_v12 }
 0x7b0   :  { %2661 = vmatprep.subr.bf16.mxu1 %v6311_v41 }
 0x7b1   :  { %2626 = vmatpush1.bf16.msra.mxu0 %v6478_v44 }
 0x7b2   :  { %2627 = vmatprep.subr.bf16.mxu0 %v6484_v59 }
 0x7b3   :  { %2662 = vmatpush1.bf16.msra.mxu1 %v6319_v42 }
 0x7b4   :  { %2663 = vmatprep.subr.bf16.mxu1 %v6325_v43 }
 0x7b5   :  { %2628 = vmatpush1.bf16.msra.mxu0 %v6497_v32 }
 0x7b6   :  { %2629 = vmatprep.subr.bf16.mxu0 %v6503_v5 }
 0x7b7   :  { %2664 = vmatpush1.bf16.msra.mxu1 %v6333_v20 }
 0x7b8   :  { %2665 = vmatprep.subr.bf16.mxu1 %v6339_v46 }
 0x7b9   :  { %2630 = vmatpush1.bf16.msra.mxu0 %v6517_v33 }
 0x7ba   :  { %4395 = vmatprep.subr.msk.bf16.mxu0 %vm299_vm2, %v5264_v19 }
 0x7bb   :  { %2666 = vmatpush1.bf16.msra.mxu1 %v6348_v52 }
 0x7bc   :  { %2667 = vmatprep.subr.bf16.mxu1 %v6354_v2 }
 0x7bf   :  { %2668 = vmatpush1.bf16.msra.mxu1 %v6360_v51 }
 0x7c0   :  { %2669 = vmatprep.subr.bf16.mxu1 %v6366_v0 }
 0x7c3   :  { %2670 = vmatpush1.bf16.msra.mxu1 %v6372_v3 }
 0x7c4   :  { %2671 = vmatprep.subr.bf16.mxu1 %v6378_v15 }
 0x7c7   :  { %2672 = vmatpush1.bf16.msra.mxu1 %v6384_v49 }
 0x7c8   :  { %2673 = vmatprep.subr.bf16.mxu1 %v6491_v47 }
 0x7cb   :  { %2674 = vmatpush1.bf16.msra.mxu1 %v6509_v22 }
 0x7cc   :  { %4397 = vmatprep.subr.msk.bf16.mxu1 %vm299_vm2, %v6794_v39 }
 0x83c   :  { %v2383_v19 = vpop.f32.mrf.mxu0 }
 0x83e   :  { %v2339_v34 = vpop.f32.mrf.mxu1  ;;  %v2385_v40 = vpop.f32.mrf.mxu0 }
 0x83f   :  { %v2384_v24 = vadd.f32 %v2383_v19, %v2339_v34 }
 0x840   :  { %v2341_v23 = vpop.f32.mrf.mxu1  ;;  %v2387_v30 = vpop.f32.mrf.mxu0 }
 0x841   :  { %v2386_v31 = vadd.f32 %v2385_v40, %v2341_v23  ;;  %v2476_v56 = vadd.f32 %v2384_v24, %v6776_v8 }
 0x842   :  { %v2343_v45 = vpop.f32.mrf.mxu1  ;;  %v2388_v53 = vpop.f32.mrf.mxu0 }
 0x843   :  { %v2477_v57 = vadd.f32 %v2386_v31, %v6796_v17  ;;  %v2480_v16 = vmin.f32 %v2476_v56, 0.0  ;;  %vm2478_vm0 = vcmp.gt.f32.partialorder %v2476_v56, 0.0 }
 0x844   :  { %v2344_v27 = vpop.f32.mrf.mxu1 }
 0x845   :  { %v2481_v58 = vmin.f32 %v2477_v57, 0.0  ;;  %v2482_v54 = vmul.f32 1.442695, %v2480_v16  ;;  %vm2479_vm2 = vcmp.gt.f32.partialorder %v2477_v57, 0.0 }
 0x847   :  { %v2484_v26 = vmul.f32 1.442695, %v2481_v58  ;;  %5029 = vpow2.f32 %v2482_v54 }
 0x849   :  { %5031 = vpow2.f32 %v2484_v26 }
 0x854   :  { %v5030_v58 = vpop.eup %5029 }
 0x855   :  { %v4372_v26 = vadd.f32 -1.0, %v5030_v58 }
 0x85c   :  { %v2469_v35 = vpop.f32.mrf.mxu0 }
 0x85e   :  { %v2428_v39 = vpop.f32.mrf.mxu1  ;;  %v2471_v37 = vpop.f32.mrf.mxu0 }
 0x85f   :  { %v2470_v38 = vadd.f32 %v2469_v35, %v2428_v39  ;;  %v5032_v35 = vpop.eup %5031 }
 0x860   :  { %v2430_v7 = vpop.f32.mrf.mxu1  ;;  %v2473_v30 = vpop.f32.mrf.mxu0 }
 0x861   :  { %v2494_v45 = vadd.f32 %v2470_v38, %v6776_v8  ;;  %v2472_v19 = vadd.f32 %v2471_v37, %v2430_v7  ;;  %v4373_v38 = vadd.f32 -1.0, %v5032_v35 }
 0x862   :  { %v2432_v34 = vpop.f32.mrf.mxu1  ;;  %v2474_v40 = vpop.f32.mrf.mxu0 }
 0x863   :  { %v2498_v23 = vmin.f32 %v2494_v45, 0.0  ;;  %v2495_v53 = vadd.f32 %v2472_v19, %v6796_v17  ;;  %vm2496_vm6 = vcmp.gt.f32.partialorder %v2494_v45, 0.0 }
 0x864   :  { %v2433_v27 = vpop.f32.mrf.mxu1 }
 0x865   :  { %v2500_v24 = vmul.f32 1.442695, %v2498_v23  ;;  %v2499_v31 = vmin.f32 %v2495_v53, 0.0  ;;  %v2488_v23 = vsel %vm2478_vm0, %v2476_v56, %v4372_v26  ;;  %vm2497_vm7 = vcmp.gt.f32.partialorder %v2495_v53, 0.0 }
 0x866   :  { %v2490_v35 = vmul.f32 %v2488_v23, %v5601_v50 }
 0x867   :  { %5033 = vpow2.f32 %v2500_v24  ;;  %v2502_v16 = vmul.f32 1.442695, %v2499_v31  ;;  %v2489_v24 = vsel %vm2479_vm2, %v2477_v57, %v4373_v38 }
 0x868   :  { %v2492_v26 = vadd.f32 %v2490_v35, %v5607_v6 }
 0x869   :  { %5035 = vpow2.f32 %v2502_v16 }
 0x86e   :  { %v2586_v54 = vpop.f32.mrf.mxu1 }
 0x86f   :  { %v2587_v39 = vadd.f32 %v2586_v54, %v6797_v13 }
 0x870   :  { %v4671_v30 = vpop.f32.mrf.mxu1 }
 0x871   :  { %v2595_v37 = vmin.f32 %v2587_v39, 0.0  ;;  %v2491_v30 = vmul.f32 %v2489_v24, %v5604_v60  ;;  %vm2593_vm8 = vcmp.gt.f32.partialorder %v2587_v39, 0.0 }
 0x872   :  { %v2589_v7 = vpop.f32.mrf.mxu1 }
 0x873   :  { %v2597_v34 = vmul.f32 1.442695, %v2595_v37  ;;  %v2590_v19 = vadd.f32 %v2589_v7, %v5448_v55  ;;  %v2493_v38 = vadd.f32 %v2491_v30, %v5610_v9 }
 0x874   :  { %v5034_v40 = vpop.eup %5033  ;;  %v4672_v27 = vpop.f32.mrf.mxu1 }
 0x875   :  { %v4374_v31 = vadd.f32 -1.0, %v5034_v40  ;;  %5037 = vpow2.f32 %v2597_v34  ;;  %v2596_v16 = vmin.f32 %v2590_v19, 0.0  ;;  %vm2594_vm9 = vcmp.gt.f32.partialorder %v2590_v19, 0.0 }
 0x876   :  { %v5036_v17 = vpop.eup %5035 }
 0x877   :  { %v2506_v13 = vsel %vm2496_vm6, %v2494_v45, %v4374_v31  ;;  %v4375_v58 = vadd.f32 -1.0, %v5036_v17  ;;  %v2599_v54 = vmul.f32 1.442695, %v2596_v16 }
 0x878   :  { %v2508_v37 = vmul.f32 %v2506_v13, %v5601_v50 }
 0x879   :  { %v2507_v55 = vsel %vm2497_vm7, %v2495_v53, %v4375_v58  ;;  %5039 = vpow2.f32 %v2599_v54 }
 0x87a   :  { %v2510_v56 = vadd.f32 %v2508_v37, %v5607_v6  ;;  %v2509_v57 = vmul.f32 %v2507_v55, %v5604_v60 }
 0x87c   :  { %v2511_v17 = vadd.f32 %v2509_v57, %v5610_v9  ;;  %v2512_v45 = vmax.f32 %v2492_v26, %v2510_v56 }
 0x87e   :  { %v2513_v7 = vmax.f32 %v2493_v38, %v2511_v17 }
 0x880   :  { %v2514_v34 = vmax.f32 %v2512_v45, %v2513_v7 }
 0x882   :  { %v5038_v40 = vpop.eup %5037  ;;  %2515 = vst [vmem:[#allocation2 + $0x6] sm:$0x1] %v2514_v34  ;;  %2516 = vst [vmem:[#allocation2 + $0xd] sm:$0x2] %v2514_v34 }
 0x883   :  { %2517 = vst [vmem:[#allocation2 + $0x14] sm:$0x4] %v2514_v34  ;;  %2518 = vst [vmem:[#allocation2 + $0x1b] sm:$0x8] %v2514_v34  ;;  %v4389_v53 = vadd.f32 -1.0, %v5038_v40  ;;  %v6798_v40 = vld [vmem:[#allocation13_spill] sm:$0xff] }
 0x885   :  { %v2603_v23 = vsel %vm2593_vm8, %v2587_v39, %v4389_v53  ;;  %v4814_v39 = vld [vmem:[#allocation4 + $0xec] ss:$16 sps:$4 sm:$0xff]  }
 0x886   :  { %v5040_v27 = vpop.eup %5039  ;;  %v2605_v31 = vmul.f32 %v2603_v23, %v5451_v62  ;;  %v4766_v62 = vld [vmem:[#allocation4 + $0x1ec] ss:$16 sps:$4 sm:$0xff]  }
 0x887   :  { %v4390_v24 = vadd.f32 -1.0, %v5040_v27 }
 0x888   :  { %v2607_v58 = vadd.f32 %v2605_v31, %v5457_v10  ;;  %v4764_v10 = vld [vmem:[#allocation4 + $0x1e8] ss:$16 sps:$4 sm:$0xff]  }
 0x889   :  { %v2604_v16 = vsel %vm2594_vm9, %v2590_v19, %v4390_v24 }
 0x88a   :  { %v2606_v13 = vmul.f32 %v2604_v16, %v5453_v4  ;;  %v4761_v4 = vld [vmem:[#allocation4 + $0x1e0] ss:$16 sps:$4 sm:$0xff]  }
 0x88c   :  { %v2608_v54 = vadd.f32 %v2606_v13, %v5459_v11  ;;  %v4769_v11 = vld [vmem:[#allocation4 + $0x1c4] ss:$16 sps:$4 sm:$0xff]  }
 0x88e   :  { %v2609_v35 = vpack.c.bf16 %v2608_v54, %v2607_v58 }
 0x890   :  { %4394 = vmatmul.mubr.msk.bf16.vlgmr.msra.gmra.mxu1 %vm295_vm5, %v2609_v35  ;;  %v2611_v30 = vrot.slane %v2609_v35, 2 }
 0x891   :  { %2746 = vmatpush1.bf16.msra.mxu1 %v5262_v18  ;;  %2777 = vmatprep.mubr.bf16.mxu1 %v6772_v12  ;;  %v2700_v18 = vrot.slane %v2609_v35, 4 }
 0x892   :  { %4392 = vmatmul.mubr.msk.bf16.vlgmr.msra.gmra.mxu0 %vm295_vm5, %v2611_v30  ;;  %2747 = vmatprep.subr.bf16.mxu1 %v6311_v41  ;;  %v4767_v41 = vld [vmem:[#allocation4 + $0x1c0] ss:$16 sps:$4 sm:$0xff]  }
 0x893   :  { %2705 = vmatpush1.bf16.msra.mxu0 %v5270_v21  ;;  %2736 = vmatprep.mubr.bf16.mxu0 %v6772_v12  ;;  %v4763_v21 = vld [vmem:[#allocation4 + $0x1e4] ss:$16 sps:$4 sm:$0xff]  }
 0x894   :  { %2706 = vmatprep.subr.bf16.mxu0 %v6419_v61  ;;  %v4785_v61 = vld [vmem:[#allocation4 + $0x160] ss:$16 sps:$4 sm:$0xff]  }
 0x895   :  { %2748 = vmatpush1.bf16.msra.mxu1 %v6319_v42  ;;  %v4770_v42 = vld [vmem:[#allocation4 + $0x1c8] ss:$16 sps:$4 sm:$0xff]  }
 0x896   :  { %2749 = vmatprep.subr.bf16.mxu1 %v6325_v43  ;;  %v4775_v43 = vld [vmem:[#allocation4 + $0x1a4] ss:$16 sps:$4 sm:$0xff]  }
 0x897   :  { %2707 = vmatpush1.bf16.msra.mxu0 %v6284_v36  ;;  %v4772_v36 = vld [vmem:[#allocation4 + $0x1cc] ss:$16 sps:$4 sm:$0xff]  }
 0x898   :  { %2708 = vmatprep.subr.bf16.mxu0 %v6428_v63  ;;  %v4788_v63 = vld [vmem:[#allocation4 + $0x168] ss:$16 sps:$4 sm:$0xff]  }
 0x899   :  { %2750 = vmatpush1.bf16.msra.mxu1 %v6333_v20  ;;  %v4778_v20 = vld [vmem:[#allocation4 + $0x1ac] ss:$16 sps:$4 sm:$0xff]  }
 0x89a   :  { %2751 = vmatprep.subr.bf16.mxu1 %v6339_v46  ;;  %v4773_v46 = vld [vmem:[#allocation4 + $0x1a0] ss:$16 sps:$4 sm:$0xff]  }
 0x89b   :  { %2709 = vmatpush1.bf16.msra.mxu0 %v6436_v1  ;;  %v4793_v1 = vld [vmem:[#allocation4 + $0x144] ss:$16 sps:$4 sm:$0xff]  }
 0x89c   :  { %2710 = vmatprep.subr.bf16.mxu0 %v6442_v14  ;;  %v4796_v14 = vld [vmem:[#allocation4 + $0x14c] ss:$16 sps:$4 sm:$0xff]  }
 0x89d   :  { %2752 = vmatpush1.bf16.msra.mxu1 %v6348_v52  ;;  %v4776_v52 = vld [vmem:[#allocation4 + $0x1a8] ss:$16 sps:$4 sm:$0xff]  }
 0x89e   :  { %2753 = vmatprep.subr.bf16.mxu1 %v6354_v2  ;;  %v4781_v2 = vld [vmem:[#allocation4 + $0x184] ss:$16 sps:$4 sm:$0xff]  }
 0x89f   :  { %2711 = vmatpush1.bf16.msra.mxu0 %v6450_v48  ;;  %v4791_v48 = vld [vmem:[#allocation4 + $0x140] ss:$16 sps:$4 sm:$0xff]  }
 0x8a0   :  { %2712 = vmatprep.subr.bf16.mxu0 %v6456_v28  ;;  %v4794_v28 = vld [vmem:[#allocation4 + $0x148] ss:$16 sps:$4 sm:$0xff]  }
 0x8a1   :  { %2754 = vmatpush1.bf16.msra.mxu1 %v6360_v51  ;;  %v4784_v51 = vld [vmem:[#allocation4 + $0x18c] ss:$16 sps:$4 sm:$0xff]  }
 0x8a2   :  { %2755 = vmatprep.subr.bf16.mxu1 %v6366_v0  ;;  %v4779_v0 = vld [vmem:[#allocation4 + $0x180] ss:$16 sps:$4 sm:$0xff]  }
 0x8a3   :  { %2713 = vmatpush1.bf16.msra.mxu0 %v6464_v25  ;;  %v4799_v25 = vld [vmem:[#allocation4 + $0x124] ss:$16 sps:$4 sm:$0xff]  }
 0x8a4   :  { %2714 = vmatprep.subr.bf16.mxu0 %v6470_v29  ;;  %v4802_v29 = vld [vmem:[#allocation4 + $0x12c] ss:$16 sps:$4 sm:$0xff]  }
 0x8a5   :  { %2756 = vmatpush1.bf16.msra.mxu1 %v6372_v3  ;;  %v4782_v3 = vld [vmem:[#allocation4 + $0x188] ss:$16 sps:$4 sm:$0xff]  }
 0x8a6   :  { %2757 = vmatprep.subr.bf16.mxu1 %v6378_v15  ;;  %v4787_v15 = vld [vmem:[#allocation4 + $0x164] ss:$16 sps:$4 sm:$0xff]  }
 0x8a7   :  { %2715 = vmatpush1.bf16.msra.mxu0 %v6478_v44  ;;  %v4797_v44 = vld [vmem:[#allocation4 + $0x120] ss:$16 sps:$4 sm:$0xff]  }
 0x8a8   :  { %2716 = vmatprep.subr.bf16.mxu0 %v6484_v59  ;;  %v4800_v59 = vld [vmem:[#allocation4 + $0x128] ss:$16 sps:$4 sm:$0xff]  }
 0x8a9   :  { %2758 = vmatpush1.bf16.msra.mxu1 %v6384_v49  ;;  %v4790_v49 = vld [vmem:[#allocation4 + $0x16c] ss:$16 sps:$4 sm:$0xff]  }
 0x8aa   :  { %2759 = vmatprep.subr.bf16.mxu1 %v6491_v47  ;;  %v4805_v47 = vld [vmem:[#allocation4 + $0x104] ss:$16 sps:$4 sm:$0xff]  }
 0x8ab   :  { %2717 = vmatpush1.bf16.msra.mxu0 %v6497_v32  ;;  %v4808_v32 = vld [vmem:[#allocation4 + $0x10c] ss:$16 sps:$4 sm:$0xff]  }
 0x8ac   :  { %2718 = vmatprep.subr.bf16.mxu0 %v6503_v5  ;;  %v4803_v5 = vld [vmem:[#allocation4 + $0x100] ss:$16 sps:$4 sm:$0xff]  }
 0x8ad   :  { %2760 = vmatpush1.bf16.msra.mxu1 %v6509_v22  ;;  %v4806_v22 = vld [vmem:[#allocation4 + $0x108] ss:$16 sps:$4 sm:$0xff]  }
 0x8ae   :  { %3101 = vmatprep.subr.bf16.mxu1 %v4766_v62 }
 0x8af   :  { %2719 = vmatpush1.bf16.msra.mxu0 %v6517_v33  ;;  %v4811_v33 = vld [vmem:[#allocation4 + $0xe4] ss:$16 sps:$4 sm:$0xff]  }
 0x8b0   :  { %4398 = vmatmul.mubr.msk.bf16.vlgmr.msra.gmra.mxu1 %vm295_vm5, %v2611_v30  ;;  %3060 = vmatprep.subr.bf16.mxu0 %v4763_v21 }
 0x8b1   :  { %3133 = vmatprep.mubr.bf16.mxu1 %v6772_v12  ;;  %3102 = vmatpush1.bf16.msra.mxu1 %v4764_v10 }
 0x8b2   :  { %4396 = vmatmul.mubr.msk.bf16.vlgmr.msra.gmra.mxu0 %vm295_vm5, %v2700_v18  ;;  %3103 = vmatprep.subr.bf16.mxu1 %v4772_v36 }
 0x8b3   :  { %3092 = vmatprep.mubr.bf16.mxu0 %v6772_v12  ;;  %3061 = vmatpush1.bf16.msra.mxu0 %v4761_v4 }
 0x8b4   :  { %3062 = vmatprep.subr.bf16.mxu0 %v4769_v11 }
 0x8b5   :  { %3104 = vmatpush1.bf16.msra.mxu1 %v4770_v42 }
 0x8b6   :  { %3105 = vmatprep.subr.bf16.mxu1 %v4778_v20 }
 0x8b7   :  { %3063 = vmatpush1.bf16.msra.mxu0 %v4767_v41 }
 0x8b8   :  { %3064 = vmatprep.subr.bf16.mxu0 %v4775_v43 }
 0x8b9   :  { %3106 = vmatpush1.bf16.msra.mxu1 %v4776_v52 }
 0x8ba   :  { %3107 = vmatprep.subr.bf16.mxu1 %v4784_v51 }
 0x8bb   :  { %3065 = vmatpush1.bf16.msra.mxu0 %v4773_v46 }
 0x8bc   :  { %3066 = vmatprep.subr.bf16.mxu0 %v4781_v2 }
 0x8bd   :  { %3108 = vmatpush1.bf16.msra.mxu1 %v4782_v3 }
 0x8be   :  { %3109 = vmatprep.subr.bf16.mxu1 %v4790_v49 }
 0x8bf   :  { %3067 = vmatpush1.bf16.msra.mxu0 %v4779_v0 }
 0x8c0   :  { %3068 = vmatprep.subr.bf16.mxu0 %v4787_v15 }
 0x8c1   :  { %3110 = vmatpush1.bf16.msra.mxu1 %v4788_v63 }
 0x8c2   :  { %3111 = vmatprep.subr.bf16.mxu1 %v4796_v14 }
 0x8c3   :  { %3069 = vmatpush1.bf16.msra.mxu0 %v4785_v61 }
 0x8c4   :  { %3070 = vmatprep.subr.bf16.mxu0 %v4793_v1 }
 0x8c5   :  { %3112 = vmatpush1.bf16.msra.mxu1 %v4794_v28 }
 0x8c6   :  { %3113 = vmatprep.subr.bf16.mxu1 %v4802_v29 }
 0x8c7   :  { %3071 = vmatpush1.bf16.msra.mxu0 %v4791_v48 }
 0x8c8   :  { %3072 = vmatprep.subr.bf16.mxu0 %v4799_v25 }
 0x8c9   :  { %3114 = vmatpush1.bf16.msra.mxu1 %v4800_v59 }
 0x8ca   :  { %3115 = vmatprep.subr.bf16.mxu1 %v4808_v32 }
 0x8cb   :  { %3073 = vmatpush1.bf16.msra.mxu0 %v4797_v44 }
 0x8cc   :  { %3074 = vmatprep.subr.bf16.mxu0 %v4805_v47 }
 0x8cd   :  { %3116 = vmatpush1.bf16.msra.mxu1 %v4806_v22  ;;  %v4812_v22 = vld [vmem:[#allocation4 + $0xe8] ss:$16 sps:$4 sm:$0xff]  }
 0x8ce   :  { %3343 = vmatprep.subr.bf16.mxu1 %v4814_v39 }
 0x8cf   :  { %3075 = vmatpush1.bf16.msra.mxu0 %v4803_v5 }
 0x8d0   :  { %3302 = vmatprep.subr.bf16.mxu0 %v4811_v33 }
 0x950   :  { %v2693_v19 = vpop.f32.mrf.mxu1 }
 0x952   :  { %v2649_v37 = vpop.f32.mrf.mxu0  ;;  %v2695_v55 = vpop.f32.mrf.mxu1 }
 0x953   :  { %v2694_v45 = vadd.f32 %v2693_v19, %v2649_v37  ;;  %v4817_v19 = vld [vmem:[#allocation4 + $0xc4] ss:$16 sps:$4 sm:$0xff]   ;;  %v4820_v37 = vld [vmem:[#allocation4 + $0xcc] ss:$16 sps:$4 sm:$0xff]  }
 0x954   :  { %v2651_v56 = vpop.f32.mrf.mxu0  ;;  %v2697_v57 = vpop.f32.mrf.mxu1 }
 0x955   :  { %v2696_v7 = vadd.f32 %v2695_v55, %v2651_v56  ;;  %v2786_v34 = vadd.f32 %v2694_v45, %v6776_v8  ;;  %v4826_v55 = vld [vmem:[#allocation4 + $0xac] ss:$16 sps:$4 sm:$0xff]   ;;  %v4821_v56 = vld [vmem:[#allocation4 + $0xa0] ss:$16 sps:$4 sm:$0xff]   ;;  %v4824_v57 = vld [vmem:[#allocation4 + $0xa8] ss:$16 sps:$4 sm:$0xff]  }
 0x956   :  { %v2653_v26 = vpop.f32.mrf.mxu0  ;;  %v2698_v38 = vpop.f32.mrf.mxu1  ;;  %v4830_v45 = vld [vmem:[#allocation4 + $0x88] ss:$16 sps:$4 sm:$0xff]  }
 0x957   :  { %v2787_v53 = vadd.f32 %v2696_v7, %v6798_v40  ;;  %v2790_v23 = vmin.f32 %v2786_v34, 0.0  ;;  %vm2788_vm5 = vcmp.gt.f32.partialorder %v2786_v34, 0.0  ;;  %v4829_v26 = vld [vmem:[#allocation4 + $0x84] ss:$16 sps:$4 sm:$0xff]   ;;  %v4832_v38 = vld [vmem:[#allocation4 + $0x8c] ss:$16 sps:$4 sm:$0xff]  }
 0x958   :  { %v2654_v17 = vpop.f32.mrf.mxu0  ;;  %v4835_v7 = vld [vmem:[#allocation4 + $0x64] ss:$16 sps:$4 sm:$0xff]  }
 0x959   :  { %v2791_v27 = vmin.f32 %v2787_v53, 0.0  ;;  %v2792_v24 = vmul.f32 1.442695, %v2790_v23  ;;  %vm2789_vm10 = vcmp.gt.f32.partialorder %v2787_v53, 0.0  ;;  %v4827_v17 = vld [vmem:[#allocation4 + $0x80] ss:$16 sps:$4 sm:$0xff]  }
 0x95a   :  { %v4841_v23 = vld [vmem:[#allocation4 + $0x44] ss:$16 sps:$4 sm:$0xff]  }
 0x95b   :  { %v2794_v16 = vmul.f32 1.442695, %v2791_v27  ;;  %5041 = vpow2.f32 %v2792_v24  ;;  %v4844_v27 = vld [vmem:[#allocation4 + $0x4c] ss:$16 sps:$4 sm:$0xff]   ;;  %v4839_v24 = vld [vmem:[#allocation4 + $0x40] ss:$16 sps:$4 sm:$0xff]  }
 0x95d   :  { %5043 = vpow2.f32 %v2794_v16  ;;  %v4847_v16 = vld [vmem:[#allocation4 + $0x24] ss:$16 sps:$4 sm:$0xff]  }
 0x968   :  { %v5042_v20 = vpop.eup %5041 }
 0x969   :  { %v4399_v52 = vadd.f32 -1.0, %v5042_v20  ;;  %v4863_v20 = vld [vmem:[#allocation4 + $0x2c0] ss:$16 sps:$4 sm:$0xff]  }
 0x96a   :  { %v5044_v46 = vpop.eup %5043 }
 0x96b   :  { %v4400_v2 = vadd.f32 -1.0, %v5044_v46  ;;  %v4866_v46 = vld [vmem:[#allocation4 + $0x2c8] ss:$16 sps:$4 sm:$0xff]  }
 0x96d   :  { %v2799_v0 = vsel %vm2789_vm10, %v2787_v53, %v4400_v2  ;;  %v4836_v53 = vld [vmem:[#allocation4 + $0x68] ss:$16 sps:$4 sm:$0xff]   ;;  %v4874_v2 = vld [vmem:[#allocation4 + $0x2ac] ss:$16 sps:$4 sm:$0xff]  }
 0x96e   :  { %v2801_v1 = vmul.f32 %v2799_v0, %v5604_v60  ;;  %v4877_v0 = vld [vmem:[#allocation4 + $0x284] ss:$16 sps:$4 sm:$0xff]  }
 0x970   :  { %v2779_v31 = vpop.f32.mrf.mxu1  ;;  %v2803_v44 = vadd.f32 %v2801_v1, %v5610_v9  ;;  %v4881_v1 = vld [vmem:[#allocation4 + $0x260] ss:$16 sps:$4 sm:$0xff]  }
 0x972   :  { %v2738_v13 = vpop.f32.mrf.mxu0  ;;  %v2781_v58 = vpop.f32.mrf.mxu1 }
 0x973   :  { %v2780_v54 = vadd.f32 %v2779_v31, %v2738_v13  ;;  %v4842_v31 = vld [vmem:[#allocation4 + $0x48] ss:$16 sps:$4 sm:$0xff]   ;;  %v4850_v13 = vld [vmem:[#allocation4 + $0x2c] ss:$16 sps:$4 sm:$0xff]  }
 0x974   :  { %v2740_v35 = vpop.f32.mrf.mxu0  ;;  %v2783_v30 = vpop.f32.mrf.mxu1 }
 0x975   :  { %v2804_v18 = vadd.f32 %v2780_v54, %v6776_v8  ;;  %v2782_v21 = vadd.f32 %v2781_v58, %v2740_v35  ;;  %v2798_v8 = vsel %vm2788_vm5, %v2786_v34, %v4399_v52  ;;  %v4838_v34 = vld [vmem:[#allocation4 + $0x6c] ss:$16 sps:$4 sm:$0xff]   ;;  %v4845_v58 = vld [vmem:[#allocation4 + $0x20] ss:$16 sps:$4 sm:$0xff]   ;;  %v4848_v54 = vld [vmem:[#allocation4 + $0x28] ss:$16 sps:$4 sm:$0xff]  }
 0x976   :  { %v2742_v62 = vpop.f32.mrf.mxu0  ;;  %v2784_v4 = vpop.f32.mrf.mxu1  ;;  %v2800_v63 = vmul.f32 %v2798_v8, %v5601_v50  ;;  %v4853_v35 = vld [vmem:[#allocation4 + $0x4] ss:$16 sps:$4 sm:$0xff]   ;;  %v4856_v30 = vld [vmem:[#allocation4 + $0xc] ss:$16 sps:$4 sm:$0xff]   ;;  %v4872_v8 = vld [vmem:[#allocation4 + $0x2a8] ss:$16 sps:$4 sm:$0xff]  }
 0x977   :  { %v2808_v10 = vmin.f32 %v2804_v18, 0.0  ;;  %v2805_v11 = vadd.f32 %v2782_v21, %v6798_v40  ;;  %vm2806_vm11 = vcmp.gt.f32.partialorder %v2804_v18, 0.0  ;;  %v4833_v40 = vld [vmem:[#allocation4 + $0x60] ss:$16 sps:$4 sm:$0xff]   ;;  %v4854_v21 = vld [vmem:[#allocation4 + $0x8] ss:$16 sps:$4 sm:$0xff]  }
 0x978   :  { %v2743_v36 = vpop.f32.mrf.mxu0  ;;  %v2802_v29 = vadd.f32 %v2800_v63, %v5607_v6  ;;  %v4859_v62 = vld [vmem:[#allocation4 + $0x2e4] ss:$16 sps:$4 sm:$0xff]   ;;  %v4862_v4 = vld [vmem:[#allocation4 + $0x2ec] ss:$16 sps:$4 sm:$0xff]  }
 0x979   :  { %v2810_v41 = vmul.f32 1.442695, %v2808_v10  ;;  %v2809_v42 = vmin.f32 %v2805_v11, 0.0  ;;  %vm2807_vm12 = vcmp.gt.f32.partialorder %v2805_v11, 0.0  ;;  %v4860_v36 = vld [vmem:[#allocation4 + $0x2e8] ss:$16 sps:$4 sm:$0xff]  }
 0x97a   :  { %v4871_v52 = vld [vmem:[#allocation4 + $0x2a4] ss:$16 sps:$4 sm:$0xff]   ;;  %v4886_v63 = vld [vmem:[#allocation4 + $0x26c] ss:$16 sps:$4 sm:$0xff]  }
 0x97b   :  { %5045 = vpow2.f32 %v2810_v41  ;;  %v2812_v43 = vmul.f32 1.442695, %v2809_v42  ;;  %v4865_v42 = vld [vmem:[#allocation4 + $0x2c4] ss:$16 sps:$4 sm:$0xff]  }
 0x97d   :  { %5047 = vpow2.f32 %v2812_v43  ;;  %v4868_v43 = vld [vmem:[#allocation4 + $0x2cc] ss:$16 sps:$4 sm:$0xff]  }
 0x988   :  { %v5046_v51 = vpop.eup %5045 }
 0x989   :  { %v4401_v3 = vadd.f32 -1.0, %v5046_v51  ;;  %v4869_v51 = vld [vmem:[#allocation4 + $0x2a0] ss:$16 sps:$4 sm:$0xff]  }
 0x98a   :  { %v5048_v15 = vpop.eup %5047 }
 0x98b   :  { %v2816_v49 = vsel %vm2806_vm11, %v2804_v18, %v4401_v3  ;;  %v4402_v61 = vadd.f32 -1.0, %v5048_v15  ;;  %v4851_v18 = vld [vmem:[#allocation4] ss:$16 sps:$4 sm:$0xff]   ;;  %v4880_v3 = vld [vmem:[#allocation4 + $0x28c] ss:$16 sps:$4 sm:$0xff]  }
 0x98c   :  { %v2818_v14 = vmul.f32 %v2816_v49, %v5601_v50  ;;  %v4809_v50 = vld [vmem:[#allocation4 + $0xe0] ss:$16 sps:$4 sm:$0xff]   ;;  %v4878_v49 = vld [vmem:[#allocation4 + $0x288] ss:$16 sps:$4 sm:$0xff]  }
 0x98d   :  { %v2817_v48 = vsel %vm2807_vm12, %v2805_v11, %v4402_v61  ;;  %v4857_v11 = vld [vmem:[#allocation4 + $0x2e0] ss:$16 sps:$4 sm:$0xff]   ;;  %v4883_v61 = vld [vmem:[#allocation4 + $0x264] ss:$16 sps:$4 sm:$0xff]  }
 0x98e   :  { %v2820_v28 = vadd.f32 %v2818_v14, %v5607_v6  ;;  %v2819_v25 = vmul.f32 %v2817_v48, %v5604_v60  ;;  %v4815_v60 = vld [vmem:[#allocation4 + $0xc0] ss:$16 sps:$4 sm:$0xff]   ;;  %v4818_v6 = vld [vmem:[#allocation4 + $0xc8] ss:$16 sps:$4 sm:$0xff]   ;;  %v4889_v48 = vld [vmem:[#allocation4 + $0x244] ss:$16 sps:$4 sm:$0xff]  }
 0x98f   :  { %v4875_v15 = vld [vmem:[#allocation4 + $0x280] ss:$16 sps:$4 sm:$0xff]   ;;  %v4884_v14 = vld [vmem:[#allocation4 + $0x268] ss:$16 sps:$4 sm:$0xff]  }
 0x990   :  { %v2821_v59 = vadd.f32 %v2819_v25, %v5610_v9  ;;  %v2822_v47 = vmax.f32 %v2802_v29, %v2820_v28  ;;  %v4823_v9 = vld [vmem:[#allocation4 + $0xa4] ss:$16 sps:$4 sm:$0xff]   ;;  %v4892_v28 = vld [vmem:[#allocation4 + $0x24c] ss:$16 sps:$4 sm:$0xff]   ;;  %v4887_v25 = vld [vmem:[#allocation4 + $0x240] ss:$16 sps:$4 sm:$0xff]  }
 0x991   :  { %v4890_v29 = vld [vmem:[#allocation4 + $0x248] ss:$16 sps:$4 sm:$0xff]  }
 0x992   :  { %v2823_v32 = vmax.f32 %v2803_v44, %v2821_v59  ;;  %v4895_v44 = vld [vmem:[#allocation4 + $0x224] ss:$16 sps:$4 sm:$0xff]   ;;  %v4898_v59 = vld [vmem:[#allocation4 + $0x22c] ss:$16 sps:$4 sm:$0xff]  }
 0x994   :  { %v2824_v5 = vmax.f32 %v2822_v47, %v2823_v32  ;;  %v4893_v47 = vld [vmem:[#allocation4 + $0x220] ss:$16 sps:$4 sm:$0xff]   ;;  %v4896_v32 = vld [vmem:[#allocation4 + $0x228] ss:$16 sps:$4 sm:$0xff]  }
 0x996   :  { %2825 = vst [vmem:[#allocation2 + $0x7] sm:$0x1] %v2824_v5  ;;  %2826 = vst [vmem:[#allocation2 + $0xe] sm:$0x2] %v2824_v5 }
 0x997   :  { %2827 = vst [vmem:[#allocation2 + $0x15] sm:$0x4] %v2824_v5  ;;  %2828 = vst [vmem:[#allocation2 + $0x1c] sm:$0x8] %v2824_v5  ;;  %v4901_v5 = vld [vmem:[#allocation4 + $0x204] ss:$16 sps:$4 sm:$0xff]  }
 0x99d   :  { %v2865_v33 = vld [vmem:[#allocation2 + $0x8] sm:$0xff]  ;;  %v2831_v10 = vld [vmem:[#allocation2] sm:$0xff] }
 0x99e   :  { %v2866_v39 = vpack.c.bf16 %v2865_v33, %v2865_v33  ;;  %v2832_v41 = vpack.c.bf16 %v2831_v10, %v2831_v10  ;;  %v4902_v33 = vld [vmem:[#allocation4 + $0x208] ss:$16 sps:$4 sm:$0xff]   ;;  %v4947_v10 = vld [vmem:[#allocation4 + $0x300] ss:$16 sps:$4 sm:$0xff]  }
 0x9a0   :  { %3093 = vmatmul.mubr.bf16.vlgmr.msra.gmra.mxu0 %v2866_v39  ;;  %3134 = vmatmul.mubr.bf16.vlgmr.msra.gmra.mxu1 %v2866_v39  ;;  %v4907_v39 = vld [vmem:[#allocation4 + $0x3e4] ss:$16 sps:$4 sm:$0xff]  }
 0x9a1   :  { %3303 = vmatpush1.bf16.msra.mxu0 %v4809_v50  ;;  %3344 = vmatpush1.bf16.msra.mxu1 %v4812_v22  ;;  %v4904_v50 = vld [vmem:[#allocation4 + $0x20c] ss:$16 sps:$4 sm:$0xff]   ;;  %v4899_v22 = vld [vmem:[#allocation4 + $0x200] ss:$16 sps:$4 sm:$0xff]  }
 0x9a2   :  { %3304 = vmatprep.subr.bf16.mxu0 %v4817_v19  ;;  %3345 = vmatprep.subr.bf16.mxu1 %v4820_v37  ;;  %v4910_v19 = vld [vmem:[#allocation4 + $0x3ec] ss:$16 sps:$4 sm:$0xff]  }
 0x9a3   :  { %3334 = vmatprep.mubr.bf16.mxu0 %v6772_v12  ;;  %3375 = vmatprep.mubr.bf16.mxu1 %v6772_v12  ;;  %v3384_v37 = vld [vmem:[#allocation2 + $0x10] sm:$0xff] }
 0x9a5   :  { %3305 = vmatpush1.bf16.msra.mxu0 %v4815_v60  ;;  %3346 = vmatpush1.bf16.msra.mxu1 %v4818_v6  ;;  %v4905_v60 = vld [vmem:[#allocation4 + $0x3e0] ss:$16 sps:$4 sm:$0xff]   ;;  %v4908_v6 = vld [vmem:[#allocation4 + $0x3e8] ss:$16 sps:$4 sm:$0xff]  }
 0x9a6   :  { %3306 = vmatprep.subr.bf16.mxu0 %v4823_v9  ;;  %3347 = vmatprep.subr.bf16.mxu1 %v4826_v55  ;;  %v3385_v9 = vpack.c.bf16 %v3384_v37, %v3384_v37  ;;  %v4913_v55 = vld [vmem:[#allocation4 + $0x3c4] ss:$16 sps:$4 sm:$0xff]  }
 0x9a9   :  { %3307 = vmatpush1.bf16.msra.mxu0 %v4821_v56  ;;  %3348 = vmatpush1.bf16.msra.mxu1 %v4824_v57  ;;  %v4916_v56 = vld [vmem:[#allocation4 + $0x3cc] ss:$16 sps:$4 sm:$0xff]   ;;  %v4911_v57 = vld [vmem:[#allocation4 + $0x3c0] ss:$16 sps:$4 sm:$0xff]  }
 0x9aa   :  { %3308 = vmatprep.subr.bf16.mxu0 %v4829_v26  ;;  %3349 = vmatprep.subr.bf16.mxu1 %v4832_v38  ;;  %v4914_v26 = vld [vmem:[#allocation4 + $0x3c8] ss:$16 sps:$4 sm:$0xff]   ;;  %v4919_v38 = vld [vmem:[#allocation4 + $0x3a4] ss:$16 sps:$4 sm:$0xff]  }
 0x9ad   :  { %3309 = vmatpush1.bf16.msra.mxu0 %v4827_v17  ;;  %3350 = vmatpush1.bf16.msra.mxu1 %v4830_v45  ;;  %v4922_v17 = vld [vmem:[#allocation4 + $0x3ac] ss:$16 sps:$4 sm:$0xff]   ;;  %v4917_v45 = vld [vmem:[#allocation4 + $0x3a0] ss:$16 sps:$4 sm:$0xff]  }
 0x9ae   :  { %3310 = vmatprep.subr.bf16.mxu0 %v4835_v7  ;;  %3351 = vmatprep.subr.bf16.mxu1 %v4838_v34  ;;  %v4920_v7 = vld [vmem:[#allocation4 + $0x3a8] ss:$16 sps:$4 sm:$0xff]   ;;  %v4925_v34 = vld [vmem:[#allocation4 + $0x384] ss:$16 sps:$4 sm:$0xff]  }
 0x9b1   :  { %3311 = vmatpush1.bf16.msra.mxu0 %v4833_v40  ;;  %3352 = vmatpush1.bf16.msra.mxu1 %v4836_v53  ;;  %v4928_v40 = vld [vmem:[#allocation4 + $0x38c] ss:$16 sps:$4 sm:$0xff]   ;;  %v4923_v53 = vld [vmem:[#allocation4 + $0x380] ss:$16 sps:$4 sm:$0xff]  }
 0x9b2   :  { %3312 = vmatprep.subr.bf16.mxu0 %v4841_v23  ;;  %3353 = vmatprep.subr.bf16.mxu1 %v4844_v27  ;;  %v4926_v23 = vld [vmem:[#allocation4 + $0x388] ss:$16 sps:$4 sm:$0xff]   ;;  %v4931_v27 = vld [vmem:[#allocation4 + $0x364] ss:$16 sps:$4 sm:$0xff]  }
 0x9b5   :  { %3313 = vmatpush1.bf16.msra.mxu0 %v4839_v24  ;;  %3354 = vmatpush1.bf16.msra.mxu1 %v4842_v31  ;;  %v4934_v24 = vld [vmem:[#allocation4 + $0x36c] ss:$16 sps:$4 sm:$0xff]   ;;  %v4929_v31 = vld [vmem:[#allocation4 + $0x360] ss:$16 sps:$4 sm:$0xff]  }
 0x9b6   :  { %3314 = vmatprep.subr.bf16.mxu0 %v4847_v16  ;;  %3355 = vmatprep.subr.bf16.mxu1 %v4850_v13  ;;  %v4937_v16 = vld [vmem:[#allocation4 + $0x344] ss:$16 sps:$4 sm:$0xff]   ;;  %v4940_v13 = vld [vmem:[#allocation4 + $0x34c] ss:$16 sps:$4 sm:$0xff]  }
 0x9b9   :  { %3315 = vmatpush1.bf16.msra.mxu0 %v4845_v58  ;;  %3356 = vmatpush1.bf16.msra.mxu1 %v4848_v54  ;;  %v4935_v58 = vld [vmem:[#allocation4 + $0x340] ss:$16 sps:$4 sm:$0xff]   ;;  %v4938_v54 = vld [vmem:[#allocation4 + $0x348] ss:$16 sps:$4 sm:$0xff]  }
 0x9ba   :  { %3316 = vmatprep.subr.bf16.mxu0 %v4853_v35  ;;  %3357 = vmatprep.subr.bf16.mxu1 %v4856_v30  ;;  %v4943_v35 = vld [vmem:[#allocation4 + $0x324] ss:$16 sps:$4 sm:$0xff]   ;;  %v4946_v30 = vld [vmem:[#allocation4 + $0x32c] ss:$16 sps:$4 sm:$0xff]  }
 0x9bd   :  { %3317 = vmatpush1.bf16.msra.mxu0 %v4851_v18  ;;  %3358 = vmatpush1.bf16.msra.mxu1 %v4854_v21  ;;  %v4941_v18 = vld [vmem:[#allocation4 + $0x320] ss:$16 sps:$4 sm:$0xff]   ;;  %v4944_v21 = vld [vmem:[#allocation4 + $0x328] ss:$16 sps:$4 sm:$0xff]  }
 0x9be   :  { %3579 = vmatprep.subr.bf16.mxu0 %v4859_v62  ;;  %3620 = vmatprep.subr.bf16.mxu1 %v4862_v4  ;;  %v4949_v62 = vld [vmem:[#allocation4 + $0x304] ss:$16 sps:$4 sm:$0xff]   ;;  %v4952_v4 = vld [vmem:[#allocation4 + $0x30c] ss:$16 sps:$4 sm:$0xff]  }
 0x9c0   :  { %3335 = vmatmul.mubr.bf16.vlgmr.msra.gmra.mxu0 %v2832_v41  ;;  %3376 = vmatmul.mubr.bf16.vlgmr.msra.gmra.mxu1 %v2832_v41 }
 0x9c1   :  { %3580 = vmatpush1.bf16.msra.mxu0 %v4857_v11  ;;  %3621 = vmatpush1.bf16.msra.mxu1 %v4860_v36  ;;  %v4950_v11 = vld [vmem:[#allocation4 + $0x308] ss:$16 sps:$4 sm:$0xff]  }
 0x9c2   :  { %3581 = vmatprep.subr.bf16.mxu0 %v4865_v42  ;;  %3622 = vmatprep.subr.bf16.mxu1 %v4868_v43  ;;  %v3665_v36 = vld [vmem:[#allocation2 + $0x18] sm:$0xff] }
 0x9c3   :  { %3611 = vmatprep.mubr.bf16.mxu0 %v6772_v12  ;;  %3652 = vmatprep.mubr.bf16.mxu1 %v6772_v12  ;;  %v3666_v41 = vpack.c.bf16 %v3665_v36, %v3665_v36 }
 0x9c5   :  { %3582 = vmatpush1.bf16.msra.mxu0 %v4863_v20  ;;  %3623 = vmatpush1.bf16.msra.mxu1 %v4866_v46 }
 0x9c6   :  { %3583 = vmatprep.subr.bf16.mxu0 %v4871_v52  ;;  %3624 = vmatprep.subr.bf16.mxu1 %v4874_v2 }
 0x9c9   :  { %3584 = vmatpush1.bf16.msra.mxu0 %v4869_v51  ;;  %3625 = vmatpush1.bf16.msra.mxu1 %v4872_v8 }
 0x9ca   :  { %3585 = vmatprep.subr.bf16.mxu0 %v4877_v0  ;;  %3626 = vmatprep.subr.bf16.mxu1 %v4880_v3 }
 0x9cd   :  { %3586 = vmatpush1.bf16.msra.mxu0 %v4875_v15  ;;  %3627 = vmatpush1.bf16.msra.mxu1 %v4878_v49 }
 0x9ce   :  { %3587 = vmatprep.subr.bf16.mxu0 %v4883_v61  ;;  %3628 = vmatprep.subr.bf16.mxu1 %v4886_v63 }
 0x9d1   :  { %3588 = vmatpush1.bf16.msra.mxu0 %v4881_v1  ;;  %3629 = vmatpush1.bf16.msra.mxu1 %v4884_v14 }
 0x9d2   :  { %3589 = vmatprep.subr.bf16.mxu0 %v4889_v48  ;;  %3630 = vmatprep.subr.bf16.mxu1 %v4892_v28 }
 0x9d5   :  { %3590 = vmatpush1.bf16.msra.mxu0 %v4887_v25  ;;  %3631 = vmatpush1.bf16.msra.mxu1 %v4890_v29 }
 0x9d6   :  { %3591 = vmatprep.subr.bf16.mxu0 %v4895_v44  ;;  %3632 = vmatprep.subr.bf16.mxu1 %v4898_v59 }
 0x9d9   :  { %3592 = vmatpush1.bf16.msra.mxu0 %v4893_v47  ;;  %3633 = vmatpush1.bf16.msra.mxu1 %v4896_v32 }
 0x9da   :  { %3593 = vmatprep.subr.bf16.mxu0 %v4901_v5  ;;  %3634 = vmatprep.subr.bf16.mxu1 %v4904_v50 }
 0x9dd   :  { %3594 = vmatpush1.bf16.msra.mxu0 %v4899_v22  ;;  %3635 = vmatpush1.bf16.msra.mxu1 %v4902_v33  ;;  %v6657_v22 = vld [vmem:[%s6713_s6] sm:$0x77]  ;;  %v6662_v33 = vld [vmem:[%s6713_s6 + $0x8] sm:$0x77]  ;;  %s5147_s6 = smov 64  }
 0x9de   :  { %3860 = vmatprep.subr.bf16.mxu0 %v4907_v39  ;;  %3901 = vmatprep.subr.bf16.mxu1 %v4910_v19  ;;  %v6799_v39 = vld [vmem:[#allocation10_spill] sm:$0xff] }
 0x9df   :  { %v3951_v19 = vrot.slane %v6657_v22, %v6799_v39  ;;  %v3959_v37 = vrot.slane %v6662_v33, %v6799_v39 }
 0x9e0   :  { %3612 = vmatmul.mubr.bf16.vlgmr.msra.gmra.mxu0 %v3385_v9  ;;  %3653 = vmatmul.mubr.bf16.vlgmr.msra.gmra.mxu1 %v3385_v9  ;;  %v6800_v9 = vld [vmem:[#allocation11_spill] sm:$0xff] }
 0x9e1   :  { %3861 = vmatpush1.bf16.msra.mxu0 %v4905_v60  ;;  %3902 = vmatpush1.bf16.msra.mxu1 %v4908_v6  ;;  %v3971_v6 = vrot.slane %v3951_v19, %v6799_v39 }
 0x9e2   :  { %3862 = vmatprep.subr.bf16.mxu0 %v4913_v55  ;;  %3903 = vmatprep.subr.bf16.mxu1 %v4916_v56  ;;  %v3955_v55 = vrot.slane %v6657_v22, %v6800_v9  ;;  %v3963_v56 = vrot.slane %v6662_v33, %v6800_v9 }
 0x9e3   :  { %3892 = vmatprep.mubr.bf16.mxu0 %v6772_v12  ;;  %3933 = vmatprep.mubr.bf16.mxu1 %v6772_v12  ;;  %v4932_v12 = vld [vmem:[#allocation4 + $0x368] ss:$16 sps:$4 sm:$0xff]  }
 0x9e5   :  { %3863 = vmatpush1.bf16.msra.mxu0 %v4911_v57  ;;  %3904 = vmatpush1.bf16.msra.mxu1 %v4914_v26 }
 0x9e6   :  { %3864 = vmatprep.subr.bf16.mxu0 %v4919_v38  ;;  %3905 = vmatprep.subr.bf16.mxu1 %v4922_v17  ;;  %v3979_v17 = vrot.slane %v3959_v37, %v6799_v39 }
 0x9e9   :  { %3865 = vmatpush1.bf16.msra.mxu0 %v4917_v45  ;;  %3906 = vmatpush1.bf16.msra.mxu1 %v4920_v7 }
 0x9ea   :  { %3866 = vmatprep.subr.bf16.mxu0 %v4925_v34  ;;  %3907 = vmatprep.subr.bf16.mxu1 %v4928_v40 }
 0x9ed   :  { %3867 = vmatpush1.bf16.msra.mxu0 %v4923_v53  ;;  %3908 = vmatpush1.bf16.msra.mxu1 %v4926_v23 }
 0x9ee   :  { %3868 = vmatprep.subr.bf16.mxu0 %v4931_v27  ;;  %3909 = vmatprep.subr.bf16.mxu1 %v4934_v24  ;;  %v3975_v24 = vrot.slane %v3955_v55, %v6799_v39 }
 0x9f1   :  { %3869 = vmatpush1.bf16.msra.mxu0 %v4929_v31  ;;  %3910 = vmatpush1.bf16.msra.mxu1 %v4932_v12  ;;  %v3983_v12 = vrot.slane %v3963_v56, %v6799_v39 }
 0x9f2   :  { %3870 = vmatprep.subr.bf16.mxu0 %v4937_v16  ;;  %3911 = vmatprep.subr.bf16.mxu1 %v4940_v13 }
 0x9f5   :  { %3871 = vmatpush1.bf16.msra.mxu0 %v4935_v58  ;;  %3912 = vmatpush1.bf16.msra.mxu1 %v4938_v54 }
 0x9f6   :  { %3872 = vmatprep.subr.bf16.mxu0 %v4943_v35  ;;  %3913 = vmatprep.subr.bf16.mxu1 %v4946_v30 }
 0x9f9   :  { %3873 = vmatpush1.bf16.msra.mxu0 %v4941_v18  ;;  %3914 = vmatpush1.bf16.msra.mxu1 %v4944_v21 }
 0x9fa   :  { %3874 = vmatprep.subr.bf16.mxu0 %v4949_v62  ;;  %3915 = vmatprep.subr.bf16.mxu1 %v4952_v4 }
 0x9fd   :  { %3875 = vmatpush1.bf16.msra.mxu0 %v4947_v10  ;;  %3916 = vmatpush1.bf16.msra.mxu1 %v4950_v11 }
 0xa00   :  { %3893 = vmatmul.mubr.bf16.vlgmr.msra.gmra.mxu0 %v3666_v41  ;;  %3934 = vmatmul.mubr.bf16.vlgmr.msra.gmra.mxu1 %v3666_v41 }
 0xa60   :  { %v3094_v42 = vpop.f32.mrf.mxu0  ;;  %v3135_v43 = vpop.f32.mrf.mxu1 }
 0xa62   :  { %v3096_v20 = vpop.f32.mrf.mxu0  ;;  %v3137_v46 = vpop.f32.mrf.mxu1 }
 0xa64   :  { %v3098_v52 = vpop.f32.mrf.mxu0  ;;  %v3139_v2 = vpop.f32.mrf.mxu1 }
 0xa65   :  { %v6801_v52 = vld [vmem:[#allocation14_spill] sm:$0xff] }
 0xa66   :  { %v3099_v51 = vpop.f32.mrf.mxu0  ;;  %v3140_v8 = vpop.f32.mrf.mxu1  ;;  %v4015_v2 = vrot.slane %v6657_v22, %v6801_v52 }
 0xa67   :  { %v6802_v51 = vld [vmem:[#allocation16_spill] sm:$0xff] }
 0xa68   :  { %v4055_v8 = vrot.slane %v6657_v22, %v6802_v51 }
 0xa80   :  { %v3336_v0 = vpop.f32.mrf.mxu0  ;;  %v3377_v3 = vpop.f32.mrf.mxu1 }
 0xa81   :  { %v3378_v15 = vadd.f32 %v3377_v3, %v3135_v43  ;;  %v3337_v60 = vadd.f32 %v3336_v0, %v3094_v42  ;;  %v4023_v0 = vrot.slane %v6662_v33, %v6801_v52  ;;  %v6803_v3 = vld [vmem:[#allocation15_spill] sm:$0xff] }
 0xa82   :  { %v3338_v49 = vpop.f32.mrf.mxu0  ;;  %v3379_v61 = vpop.f32.mrf.mxu1 }
 0xa83   :  { %v3380_v63 = vadd.f32 %v3379_v61, %v3137_v46  ;;  %v3339_v57 = vadd.f32 %v3338_v49, %v3096_v20  ;;  %v4035_v61 = vrot.slane %v4015_v2, %v6801_v52 }
 0xa84   :  { %v3340_v1 = vpop.f32.mrf.mxu0  ;;  %v3381_v14 = vpop.f32.mrf.mxu1 }
 0xa86   :  { %v3341_v48 = vpop.f32.mrf.mxu0  ;;  %v3382_v28 = vpop.f32.mrf.mxu1 }
 0xa87   :  { %v6804_v48 = vld [vmem:[#allocation17_spill] sm:$0xff] }
 0xa88   :  { %v4059_v28 = vrot.slane %v6657_v22, %v6804_v48 }
 0xaa0   :  { %v3613_v25 = vpop.f32.mrf.mxu0  ;;  %v3654_v29 = vpop.f32.mrf.mxu1 }
 0xaa1   :  { %v3661_v26 = vadd.f32 %v3613_v25, %v3337_v60  ;;  %v3663_v38 = vadd.f32 %v3654_v29, %v3378_v15  ;;  %v4019_v15 = vrot.slane %v6657_v22, %v6803_v3  ;;  %v4027_v25 = vrot.slane %v6662_v33, %v6803_v3 }
 0xaa2   :  { %v3615_v44 = vpop.f32.mrf.mxu0  ;;  %v3656_v59 = vpop.f32.mrf.mxu1  ;;  %v4075_v29 = vrot.slane %v4055_v8, %v6802_v51 }
 0xaa3   :  { %v3662_v34 = vadd.f32 %v3615_v44, %v3339_v57  ;;  %v3664_v40 = vadd.f32 %v3656_v59, %v3380_v63  ;;  %v4063_v63 = vrot.slane %v6662_v33, %v6802_v51  ;;  %v4043_v59 = vrot.slane %v4023_v0, %v6801_v52 }
 0xaa4   :  { %v3617_v47 = vpop.f32.mrf.mxu0  ;;  %v3658_v32 = vpop.f32.mrf.mxu1  ;;  %v4047_v55 = vrot.slane %v4027_v25, %v6801_v52 }
 0xaa5   :  { %v4083_v60 = vrot.slane %v4063_v63, %v6802_v51 }
 0xaa6   :  { %v3618_v5 = vpop.f32.mrf.mxu0  ;;  %v3659_v50 = vpop.f32.mrf.mxu1 }
 0xaa7   :  { %v4039_v5 = vrot.slane %v4019_v15, %v6801_v52  ;;  %v4067_v50 = vrot.slane %v6662_v33, %v6804_v48 }
 0xac0   :  { %v3894_v45 = vpop.f32.mrf.mxu0  ;;  %v3935_v7 = vpop.f32.mrf.mxu1 }
 0xac1   :  { %v3942_v53 = vadd.f32 %v3894_v45, %v3661_v26  ;;  %v3944_v23 = vadd.f32 %v3935_v7, %v3663_v38  ;;  %v4087_v7 = vrot.slane %v4067_v50, %v6802_v51 }
 0xac2   :  { %v3896_v27 = vpop.f32.mrf.mxu0  ;;  %v3937_v31 = vpop.f32.mrf.mxu1 }
 0xac3   :  { %v3984_v16 = vadd.f32 %v3971_v6, %v3942_v53  ;;  %v3986_v13 = vadd.f32 %v3979_v17, %v3944_v23  ;;  %v3943_v58 = vadd.f32 %v3896_v27, %v3662_v34  ;;  %v3945_v54 = vadd.f32 %v3937_v31, %v3664_v40 }
 0xac4   :  { %v3898_v35 = vpop.f32.mrf.mxu0  ;;  %v3939_v30 = vpop.f32.mrf.mxu1  ;;  %v4079_v6 = vrot.slane %v4059_v28, %v6802_v51 }
 0xac5   :  { %v3992_v18 = vmin.f32 %v3984_v16, 0.0  ;;  %v3994_v21 = vmin.f32 %v3986_v13, 0.0  ;;  %v3985_v62 = vadd.f32 %v3975_v24, %v3943_v58  ;;  %v3987_v4 = vadd.f32 %v3983_v12, %v3945_v54  ;;  %v4535_v35 = vld [vmem:[%s6714_s7] ss:$0 sm:$0xff] }
 0xac6   :  { %v3899_v10 = vpop.f32.mrf.mxu0  ;;  %v3940_v11 = vpop.f32.mrf.mxu1  ;;  %vm3988_vm13 = vcmp.gt.f32.partialorder %v3984_v16, 0.0  ;;  %vm3990_vm14 = vcmp.gt.f32.partialorder %v3986_v13, 0.0 }
 0xac7   :  { %v3996_v36 = vmul.f32 1.442695, %v3992_v18  ;;  %v4000_v41 = vmul.f32 1.442695, %v3994_v21  ;;  %v3993_v42 = vmin.f32 %v3985_v62, 0.0  ;;  %v3995_v43 = vmin.f32 %v3987_v4, 0.0 }
 0xac8   :  { %vm3989_vm15 = vcmp.gt.f32.partialorder %v3985_v62, 0.0  ;;  %vm3991_vm3 = vcmp.gt.f32.partialorder %v3987_v4, 0.0 }
 0xac9   :  { %5049 = vpow2.f32 %v3996_v36  ;;  %v3998_v20 = vmul.f32 1.442695, %v3993_v42  ;;  %v4002_v46 = vmul.f32 1.442695, %v3995_v43 }
 0xaca   :  { %5051 = vpow2.f32 %v4000_v41 }
 0xacb   :  { %5053 = vpow2.f32 %v3998_v20 }
 0xacc   :  { %5055 = vpow2.f32 %v4002_v46 }
 0xad6   :  { %v5050_v49 = vpop.eup %5049 }
 0xad7   :  { %v5052_v1 = vpop.eup %5051  ;;  %v4531_v14 = vadd.f32 -1.0, %v5050_v49 }
 0xad8   :  { %v4533_v44 = vadd.f32 -1.0, %v5052_v1  ;;  %v5054_v47 = vpop.eup %5053 }
 0xad9   :  { %v4008_v32 = vsel %vm3988_vm13, %v3984_v16, %v4531_v14  ;;  %v5056_v39 = vpop.eup %5055  ;;  %v4532_v22 = vadd.f32 -1.0, %v5054_v47 }
 0xada   :  { %v4048_v19 = vmul.f32 %v4035_v61, %v4008_v32  ;;  %v4010_v37 = vsel %vm3990_vm14, %v3986_v13, %v4533_v44  ;;  %v4534_v9 = vadd.f32 -1.0, %v5056_v39 }
 0xadb   :  { %v4009_v57 = vsel %vm3989_vm15, %v3985_v62, %v4532_v22  ;;  %v4050_v26 = vmul.f32 %v4043_v59, %v4010_v37  ;;  %v4536_v62 = vld [vmem:[#allocation3] ss:$0 sm:$0xff] }
 0xadc   :  { %v4088_v56 = vadd.f32 %v4075_v29, %v4048_v19  ;;  %v4049_v38 = vmul.f32 %v4039_v5, %v4009_v57  ;;  %v4011_v17 = vsel %vm3991_vm3, %v3987_v4, %v4534_v9 }
 0xadd   :  { %v4051_v45 = vmul.f32 %v4047_v55, %v4011_v17  ;;  %v4090_v34 = vadd.f32 %v4083_v60, %v4050_v26 }
 0xade   :  { %4093 = vrot.lane.b32.xlu0 %v4088_v56, %s5147_s6  ;;  %v4089_v33 = vadd.f32 %v4079_v6, %v4049_v38 }
 0xadf   :  { %v4091_v40 = vadd.f32 %v4087_v7, %v4051_v45 }
 0xae0   :  { %4099 = vrot.lane.b32.xlu1 %v4089_v33, %s5147_s6 }
 0xae2   :  { %4105 = vrot.lane.b32.xlu0 %v4090_v34, %s5147_s6 }
 0xae4   :  { %4111 = vrot.lane.b32.xlu1 %v4091_v40, %s5147_s6 }
 0xb50   :  { %v4094_v53 = vpop.permute.xlu0 %4093 }
 0xb51   :  { %v4096_v23 = vmax.f32 %v4088_v56, %v4094_v53 }
 0xb52   :  { %v4100_v24 = vpop.permute.xlu1 %4099 }
 0xb53   :  { %v4097_v27 = vmax.f32 %v4096_v23, %v4089_v33 }
 0xb54   :  { %v4106_v16 = vpop.permute.xlu0 %4105 }
 0xb55   :  { %v4102_v31 = vmax.f32 %v4097_v27, %v4100_v24 }
 0xb56   :  { %v4112_v54 = vpop.permute.xlu1 %4111 }
 0xb57   :  { %v4103_v12 = vmax.f32 %v4102_v31, %v4090_v34 }
 0xb59   :  { %v4108_v13 = vmax.f32 %v4103_v12, %v4106_v16 }
 0xb5b   :  { %v4109_v58 = vmax.f32 %v4108_v13, %v4091_v40 }
 0xb5d   :  { %v4114_v30 = vmax.f32 %v4109_v58, %v4112_v54 }
 0xb5f   :  { %v4122_v18 = vmul.f32 %v4535_v35, %v4114_v30 }
 0xb61   :  { %v4123_v21 = vsel %vm136_vm1, %v4122_v18, 0.0 }
 0xb62   :  { %4124 = vadd.xlane.f32.xlu0 %v4123_v21 }
 0xbeb   :  { %v4125_v4 = vpop.xlane.xlu0 %4124 }
 0xbec   :  { %v4133_v10 = vadd.f32 %v4536_v62, %v4125_v4 }
 0xbee   :  { %v4134_v11 = vsub.f32 0.0, %v4133_v10 }
 0xbf0   :  { %v4135_v36 = vmul.f32 1.442695, %v4134_v11 }
 0xbf2   :  { %5057 = vpow2.f32 %v4135_v36 }
 0xbff   :  { %v5058_v41 = vpop.eup %5057 }
 0xc00   :  { %v4137_v42 = vadd.f32 1.0, %v5058_v41 }
 0xc02   :  { %5059 = vrcp.f32 %v4137_v42 }
 0xc0f   :  { %v5060_v43 = vpop.eup %5059 }
 0xc10   :  { %4141 = vst.msk [vmem:[%s6716_s9] sm:$0xff] %vm4140_vm4, %v5060_v43 }
 0xc11   :  { %4146 = vsyncpa [#allocation5], 1 }

</bundles_post_ra>
